<compile_context>
chip_gen: v7x
topology: tpu7x:2x2x1
jax: 0.10.0
libtpu: 0.0.40
codegen_flags: <defaults>
</compile_context>

<pallas_src>
import jax
import jax.numpy as jnp
from jax import lax
from jax.experimental import pallas as pl
from jax.experimental.pallas import tpu as pltpu

LN_EPS = 1e-5  # torch.nn.LayerNorm default


def _round_up(x, m):
    return ((x + m - 1) // m) * m


def _make_encoder_kernel(num_linears):
    """Kernel: chain of Linear(+ReLU except last) then LayerNorm on one tile.

    Kernel args: (mlp_id_smem, x_ref, w0, b0, ..., wL, bL, gamma, beta, out_ref)
    The correct MLP's parameters were already selected by the index_map using
    the scalar-prefetched mlp_id table, so the body is branch-free.
    """

    def kernel(mlp_id_ref, x_ref, *refs):
        del mlp_id_ref  # only used by the index_maps
        out_ref = refs[-1]
        params = refs[:-1]  # w0, b0, ..., wL, bL, gamma, beta  (leading dim 1)

        h = x_ref[...]
        if h.dtype != jnp.float32:
            h = h.astype(jnp.float32)

        for l in range(num_linears):
            w = params[2 * l][0]       # [d_in, d_out]
            b = params[2 * l + 1][0]   # [1, d_out]
            h = jnp.dot(h, w, preferred_element_type=jnp.float32) + b
            if l < num_linears - 1:    # activate_final=False -> no ReLU on last
                h = jnp.maximum(h, 0.0)

        gamma = params[-2][0]          # [1, d_out]
        beta = params[-1][0]           # [1, d_out]

        # Single-pass LayerNorm statistics: var = E[h^2] - E[h]^2 (biased).
        mean = jnp.mean(h, axis=-1, keepdims=True)
        mean_sq = jnp.mean(h * h, axis=-1, keepdims=True)
        var = mean_sq - mean * mean
        h = (h - mean) * lax.rsqrt(var + LN_EPS)
        out_ref[...] = (h * gamma + beta).astype(out_ref.dtype)

    return kernel


def encoder_forward(node_features, edge_features, node_params, edge_params,
                    max_tile_rows=2048):
    """Fused Encoder forward: (node_latents, edge_latents)."""
    n_node, d_node = node_features.shape
    n_edge, d_edge = edge_features.shape

    node_lin = node_params["linears"]
    edge_lin = edge_params["linears"]
    assert len(node_lin) == len(edge_lin)
    num_linears = len(node_lin)
    out_dim = node_lin[-1][0].shape[1]
    assert edge_lin[-1][0].shape[1] == out_dim

    d_pad = max(d_node, d_edge)

    # Row tile: as large as possible (multiple of 8), capped for VMEM headroom
    # (2048 rows * ~48 f32 lanes * double-buffering << 1 MiB -> safe on v7x's
    # 64 MiB VMEM as well as v5e/v6e's 128 MiB).
    tile = _round_up(min(max_tile_rows, max(n_node, n_edge)), 8)
    n_node_pad = _round_up(n_node, tile)
    n_edge_pad = _round_up(n_edge, tile)
    n_total = n_node_pad + n_edge_pad

    # Pad + concatenate rows; pad input-feature columns to the common width.
    xn = jnp.pad(node_features.astype(jnp.float32),
                 ((0, n_node_pad - n_node), (0, d_pad - d_node)))
    xe = jnp.pad(edge_features.astype(jnp.float32),
                 ((0, n_edge_pad - n_edge), (0, d_pad - d_edge)))
    x = jnp.concatenate([xn, xe], axis=0)

    # Per-row-tile MLP id (0 = node MLP, 1 = edge MLP); scalar-prefetched to
    # SMEM and consumed by the parameter index_maps.
    mlp_id = jnp.concatenate([
        jnp.zeros((n_node_pad // tile,), jnp.int32),
        jnp.ones((n_edge_pad // tile,), jnp.int32),
    ])

    # Stack both MLPs' params along a leading axis of size 2 so one
    # data-dependent index_map picks the right weights per tile.
    flat_params = []
    for l in range(num_linears):
        wn, bn = node_lin[l]
        we, be = edge_lin[l]
        if l == 0:  # first layer: pad input dim with zero rows to d_pad
            wn = jnp.pad(wn, ((0, d_pad - wn.shape[0]), (0, 0)))
            we = jnp.pad(we, ((0, d_pad - we.shape[0]), (0, 0)))
        flat_params.append(jnp.stack([wn, we]))   # [2, d_in, d_out]
        flat_params.append(jnp.stack([bn, be]))   # [2, 1, d_out]
    gn, bn_ln = node_params["ln"]
    ge, be_ln = edge_params["ln"]
    flat_params.append(jnp.stack([gn, ge]))       # [2, 1, out_dim]
    flat_params.append(jnp.stack([bn_ln, be_ln]))  # [2, 1, out_dim]

    def row_map(i, mlp_id_ref):
        return (i, 0)

    def param_map(i, mlp_id_ref):
        return (mlp_id_ref[i], 0, 0)

    in_specs = [pl.BlockSpec((tile, d_pad), row_map)]
    for p in flat_params:
        in_specs.append(pl.BlockSpec((1,) + p.shape[1:], param_map))
    out_spec = pl.BlockSpec((tile, out_dim), row_map)

    kernel = _make_encoder_kernel(num_linears)

    out = pl.pallas_call(
        kernel,
        out_shape=jax.ShapeDtypeStruct((n_total, out_dim), jnp.float32),
        grid_spec=pltpu.PrefetchScalarGridSpec(
            num_scalar_prefetch=1,
            grid=(n_total // tile,),
            in_specs=in_specs,
            out_specs=out_spec,
        ),
        compiler_params=pltpu.CompilerParams(
            dimension_semantics=("parallel",),
        ),
    )(mlp_id, x, *flat_params)

    node_latents = out[:n_node]
    edge_latents = out[n_node_pad:n_node_pad + n_edge]
    return node_latents, edge_latents


def init_mlp_params(key, input_dim, hidden_dim, output_dim, num_layers):
    """Deterministic synthetic params matching the torch MLP layer shapes.

    Weights stored pre-transposed as [in_dim, out_dim]; biases/LN as [1, dim].
    """
    dims = [input_dim] + [hidden_dim] * num_layers + [output_dim]
    linears = []
    for i in range(len(dims) - 1):
        key, wk, bk = jax.random.split(key, 3)
        w = jax.random.normal(wk, (dims[i], dims[i + 1]), jnp.float32) * 0.1
        b = jax.random.normal(bk, (1, dims[i + 1]), jnp.float32) * 0.01
        linears.append((w, b))
    gamma = jnp.ones((1, output_dim), jnp.float32)
    beta = jnp.zeros((1, output_dim), jnp.float32)
    return {"linears": linears, "ln": (gamma, beta)}


def mlp_reference(x, params):
    """Pure-JAX reference of the same MLP for a correctness check."""
    h = x
    linears = params["linears"]
    for i, (w, b) in enumerate(linears):
        h = h @ w + b
        if i < len(linears) - 1:
            h = jnp.maximum(h, 0.0)
    gamma, beta = params["ln"]
    mean = jnp.mean(h, axis=-1, keepdims=True)
    var = jnp.mean((h - mean) ** 2, axis=-1, keepdims=True)
    return (h - mean) * lax.rsqrt(var + LN_EPS) * gamma + beta


if __name__ == "__main__":
    # Small shapes consistent with the module's forward:
    #   node_features: [num_nodes, input_dim_node]
    #   edge_features: [num_edges, input_dim_edge]
    input_dim_node = 12
    input_dim_edge = 4
    hidden_dim = 32
    num_layers = 2
    num_nodes = 256
    num_edges = 512

    key = jax.random.PRNGKey(0)
    k_node_x, k_edge_x, k_node_p, k_edge_p = jax.random.split(key, 4)

    node_features = jax.random.normal(
        k_node_x, (num_nodes, input_dim_node), jnp.float32)
    edge_features = jax.random.normal(
        k_edge_x, (num_edges, input_dim_edge), jnp.float32)

    node_params = init_mlp_params(
        k_node_p, input_dim_node, hidden_dim, hidden_dim, num_layers)
    edge_params = init_mlp_params(
        k_edge_p, input_dim_edge, hidden_dim, hidden_dim, num_layers)

    node_latents, edge_latents = encoder_forward(
        node_features, edge_features, node_params, edge_params)
    jax.block_until_ready((node_latents, edge_latents))

    # sanity check against pure-JAX reference
    ref_nodes = mlp_reference(node_features, node_params)
    ref_edges = mlp_reference(edge_features, edge_params)
    assert node_latents.shape == (num_nodes, hidden_dim)
    assert edge_latents.shape == (num_edges, hidden_dim)
    assert jnp.allclose(node_latents, ref_nodes, atol=1e-4, rtol=1e-4)
    assert jnp.allclose(edge_latents, ref_edges, atol=1e-4, rtol=1e-4)

    print("KERNEL_OK")
</pallas_src>

<mosaic_0001>
module attributes {stable_mosaic.version = 11 : i64} {
  func.func @kernel(%arg0: i32, %arg1: memref<2xi32, #tpu.memory_space<smem>>, %arg2: memref<512x12xf32, #tpu.memory_space<vmem>>, %arg3: memref<1x12x32xf32, #tpu.memory_space<vmem>>, %arg4: memref<1x1x32xf32, #tpu.memory_space<vmem>>, %arg5: memref<1x32x32xf32, #tpu.memory_space<vmem>>, %arg6: memref<1x1x32xf32, #tpu.memory_space<vmem>>, %arg7: memref<1x32x32xf32, #tpu.memory_space<vmem>>, %arg8: memref<1x1x32xf32, #tpu.memory_space<vmem>>, %arg9: memref<1x1x32xf32, #tpu.memory_space<vmem>>, %arg10: memref<1x1x32xf32, #tpu.memory_space<vmem>>, %arg11: memref<512x32xf32, #tpu.memory_space<vmem>>) attributes {dimension_semantics = [#tpu.dimension_semantics<parallel>], iteration_bounds = array<i64: 2>, scalar_prefetch = 1 : i64, scratch_operands = 0 : i64, tpu.core_type = #tpu.core_type<tc>, window_params = [{transform_indices = @transform_0, window_bounds = array<i64: 512, 12>}, {transform_indices = @transform_1, window_bounds = array<i64: 1, 12, 32>}, {transform_indices = @transform_2, window_bounds = array<i64: 1, 1, 32>}, {transform_indices = @transform_3, window_bounds = array<i64: 1, 32, 32>}, {transform_indices = @transform_4, window_bounds = array<i64: 1, 1, 32>}, {transform_indices = @transform_5, window_bounds = array<i64: 1, 32, 32>}, {transform_indices = @transform_6, window_bounds = array<i64: 1, 1, 32>}, {transform_indices = @transform_7, window_bounds = array<i64: 1, 1, 32>}, {transform_indices = @transform_8, window_bounds = array<i64: 1, 1, 32>}, {transform_indices = @transform_9, window_bounds = array<i64: 512, 32>}]} {
    %c0 = arith.constant 0 : index
    %c0_0 = arith.constant 0 : index
    %0 = vector.load %arg2[%c0, %c0_0] : memref<512x12xf32, #tpu.memory_space<vmem>>, vector<512x12xf32>
    %c0_1 = arith.constant 0 : index
    %c0_2 = arith.constant 0 : index
    %c0_3 = arith.constant 0 : index
    %1 = vector.load %arg3[%c0_1, %c0_2, %c0_3] : memref<1x12x32xf32, #tpu.memory_space<vmem>>, vector<1x12x32xf32>
    %2 = vector.shape_cast %1 : vector<1x12x32xf32> to vector<12x32xf32>
    %c0_4 = arith.constant 0 : index
    %c0_5 = arith.constant 0 : index
    %c0_6 = arith.constant 0 : index
    %3 = vector.load %arg4[%c0_4, %c0_5, %c0_6] : memref<1x1x32xf32, #tpu.memory_space<vmem>>, vector<1x1x32xf32>
    %4 = vector.shape_cast %3 : vector<1x1x32xf32> to vector<1x32xf32>
    %cst = arith.constant dense<0.000000e+00> : vector<512x32xf32>
    %5 = tpu.matmul %0, %2, %cst {dimension_numbers = #tpu.dot_dimension_numbers<[1], [0], [0], [1], [0, 0, 1, 1], [], []>} : vector<512x12xf32>, vector<12x32xf32>, vector<512x32xf32> -> vector<512x32xf32>
    %6 = vector.broadcast %4 : vector<1x32xf32> to vector<512x32xf32>
    %7 = arith.addf %5, %6 : vector<512x32xf32>
    %cst_7 = arith.constant 0.000000e+00 : f32
    %8 = vector.broadcast %cst_7 : f32 to vector<512x32xf32>
    %9 = arith.maximumf %7, %8 : vector<512x32xf32>
    %c0_8 = arith.constant 0 : index
    %c0_9 = arith.constant 0 : index
    %c0_10 = arith.constant 0 : index
    %10 = vector.load %arg5[%c0_8, %c0_9, %c0_10] : memref<1x32x32xf32, #tpu.memory_space<vmem>>, vector<1x32x32xf32>
    %11 = vector.shape_cast %10 : vector<1x32x32xf32> to vector<32x32xf32>
    %c0_11 = arith.constant 0 : index
    %c0_12 = arith.constant 0 : index
    %c0_13 = arith.constant 0 : index
    %12 = vector.load %arg6[%c0_11, %c0_12, %c0_13] : memref<1x1x32xf32, #tpu.memory_space<vmem>>, vector<1x1x32xf32>
    %13 = vector.shape_cast %12 : vector<1x1x32xf32> to vector<1x32xf32>
    %cst_14 = arith.constant dense<0.000000e+00> : vector<512x32xf32>
    %14 = tpu.matmul %9, %11, %cst_14 {dimension_numbers = #tpu.dot_dimension_numbers<[1], [0], [0], [1], [0, 0, 1, 1], [], []>} : vector<512x32xf32>, vector<32x32xf32>, vector<512x32xf32> -> vector<512x32xf32>
    %15 = vector.broadcast %13 : vector<1x32xf32> to vector<512x32xf32>
    %16 = arith.addf %14, %15 : vector<512x32xf32>
    %cst_15 = arith.constant 0.000000e+00 : f32
    %17 = vector.broadcast %cst_15 : f32 to vector<512x32xf32>
    %18 = arith.maximumf %16, %17 : vector<512x32xf32>
    %c0_16 = arith.constant 0 : index
    %c0_17 = arith.constant 0 : index
    %c0_18 = arith.constant 0 : index
    %19 = vector.load %arg7[%c0_16, %c0_17, %c0_18] : memref<1x32x32xf32, #tpu.memory_space<vmem>>, vector<1x32x32xf32>
    %20 = vector.shape_cast %19 : vector<1x32x32xf32> to vector<32x32xf32>
    %c0_19 = arith.constant 0 : index
    %c0_20 = arith.constant 0 : index
    %c0_21 = arith.constant 0 : index
    %21 = vector.load %arg8[%c0_19, %c0_20, %c0_21] : memref<1x1x32xf32, #tpu.memory_space<vmem>>, vector<1x1x32xf32>
    %22 = vector.shape_cast %21 : vector<1x1x32xf32> to vector<1x32xf32>
    %cst_22 = arith.constant dense<0.000000e+00> : vector<512x32xf32>
    %23 = tpu.matmul %18, %20, %cst_22 {dimension_numbers = #tpu.dot_dimension_numbers<[1], [0], [0], [1], [0, 0, 1, 1], [], []>} : vector<512x32xf32>, vector<32x32xf32>, vector<512x32xf32> -> vector<512x32xf32>
    %24 = vector.broadcast %22 : vector<1x32xf32> to vector<512x32xf32>
    %25 = arith.addf %23, %24 : vector<512x32xf32>
    %c0_23 = arith.constant 0 : index
    %c0_24 = arith.constant 0 : index
    %c0_25 = arith.constant 0 : index
    %26 = vector.load %arg9[%c0_23, %c0_24, %c0_25] : memref<1x1x32xf32, #tpu.memory_space<vmem>>, vector<1x1x32xf32>
    %27 = vector.shape_cast %26 : vector<1x1x32xf32> to vector<1x32xf32>
    %c0_26 = arith.constant 0 : index
    %c0_27 = arith.constant 0 : index
    %c0_28 = arith.constant 0 : index
    %28 = vector.load %arg10[%c0_26, %c0_27, %c0_28] : memref<1x1x32xf32, #tpu.memory_space<vmem>>, vector<1x1x32xf32>
    %29 = vector.shape_cast %28 : vector<1x1x32xf32> to vector<1x32xf32>
    %cst_29 = arith.constant dense<0.000000e+00> : vector<512xf32>
    %30 = vector.multi_reduction <add>, %25, %cst_29 [1] : vector<512x32xf32> to vector<512xf32>
    %31 = vector.shape_cast %30 : vector<512xf32> to vector<512x1xf32>
    %cst_30 = arith.constant 3.200000e+01 : f32
    %32 = vector.broadcast %cst_30 : f32 to vector<512x1xf32>
    %33 = arith.divf %31, %32 : vector<512x1xf32>
    %34 = arith.mulf %25, %25 : vector<512x32xf32>
    %cst_31 = arith.constant dense<0.000000e+00> : vector<512xf32>
    %35 = vector.multi_reduction <add>, %34, %cst_31 [1] : vector<512x32xf32> to vector<512xf32>
    %36 = vector.shape_cast %35 : vector<512xf32> to vector<512x1xf32>
    %cst_32 = arith.constant 3.200000e+01 : f32
    %37 = vector.broadcast %cst_32 : f32 to vector<512x1xf32>
    %38 = arith.divf %36, %37 : vector<512x1xf32>
    %39 = arith.mulf %33, %33 : vector<512x1xf32>
    %40 = arith.subf %38, %39 : vector<512x1xf32>
    %41 = vector.broadcast %33 : vector<512x1xf32> to vector<512x32xf32>
    %42 = arith.subf %25, %41 : vector<512x32xf32>
    %cst_33 = arith.constant 9.99999974E-6 : f32
    %43 = vector.broadcast %cst_33 : f32 to vector<512x1xf32>
    %44 = arith.addf %40, %43 : vector<512x1xf32>
    %45 = math.rsqrt %44 : vector<512x1xf32>
    %46 = vector.broadcast %45 : vector<512x1xf32> to vector<512x32xf32>
    %47 = arith.mulf %42, %46 : vector<512x32xf32>
    %48 = vector.broadcast %27 : vector<1x32xf32> to vector<512x32xf32>
    %49 = arith.mulf %47, %48 : vector<512x32xf32>
    %50 = vector.broadcast %29 : vector<1x32xf32> to vector<512x32xf32>
    %51 = arith.addf %49, %50 : vector<512x32xf32>
    %c0_34 = arith.constant 0 : index
    %c0_35 = arith.constant 0 : index
    %52 = vector.load %arg11[%c0_34, %c0_35] : memref<512x32xf32, #tpu.memory_space<vmem>>, vector<512x32xf32>
    tpu.vector_store %arg11[%c0_34, %c0_35], %51 {strides = array<i32>} : memref<512x32xf32, #tpu.memory_space<vmem>>, vector<512x32xf32>,
    return
  }
  func.func @transform_0(%arg0: i32, %arg1: memref<2xi32, #tpu.memory_space<smem>>) -> (i32, i32) {
    %c0_i32 = arith.constant 0 : i32
    %c0_i32_0 = arith.constant 0 : i32
    return %arg0, %c0_i32 : i32, i32
  }
  func.func @transform_1(%arg0: i32, %arg1: memref<2xi32, #tpu.memory_space<smem>>) -> (i32, i32, i32) {
    %0 = arith.index_cast %arg0 : i32 to index
    %1 = memref.load %arg1[%0] : memref<2xi32, #tpu.memory_space<smem>>
    %c0_i32 = arith.constant 0 : i32
    %c0_i32_0 = arith.constant 0 : i32
    %c0_i32_1 = arith.constant 0 : i32
    return %1, %c0_i32, %c0_i32_0 : i32, i32, i32
  }
  func.func @transform_2(%arg0: i32, %arg1: memref<2xi32, #tpu.memory_space<smem>>) -> (i32, i32, i32) {
    %0 = arith.index_cast %arg0 : i32 to index
    %1 = memref.load %arg1[%0] : memref<2xi32, #tpu.memory_space<smem>>
    %c0_i32 = arith.constant 0 : i32
    %c0_i32_0 = arith.constant 0 : i32
    %c0_i32_1 = arith.constant 0 : i32
    return %1, %c0_i32, %c0_i32_0 : i32, i32, i32
  }
  func.func @transform_3(%arg0: i32, %arg1: memref<2xi32, #tpu.memory_space<smem>>) -> (i32, i32, i32) {
    %0 = arith.index_cast %arg0 : i32 to index
    %1 = memref.load %arg1[%0] : memref<2xi32, #tpu.memory_space<smem>>
    %c0_i32 = arith.constant 0 : i32
    %c0_i32_0 = arith.constant 0 : i32
    %c0_i32_1 = arith.constant 0 : i32
    return %1, %c0_i32, %c0_i32_0 : i32, i32, i32
  }
  func.func @transform_4(%arg0: i32, %arg1: memref<2xi32, #tpu.memory_space<smem>>) -> (i32, i32, i32) {
    %0 = arith.index_cast %arg0 : i32 to index
    %1 = memref.load %arg1[%0] : memref<2xi32, #tpu.memory_space<smem>>
    %c0_i32 = arith.constant 0 : i32
    %c0_i32_0 = arith.constant 0 : i32
    %c0_i32_1 = arith.constant 0 : i32
    return %1, %c0_i32, %c0_i32_0 : i32, i32, i32
  }
  func.func @transform_5(%arg0: i32, %arg1: memref<2xi32, #tpu.memory_space<smem>>) -> (i32, i32, i32) {
    %0 = arith.index_cast %arg0 : i32 to index
    %1 = memref.load %arg1[%0] : memref<2xi32, #tpu.memory_space<smem>>
    %c0_i32 = arith.constant 0 : i32
    %c0_i32_0 = arith.constant 0 : i32
    %c0_i32_1 = arith.constant 0 : i32
    return %1, %c0_i32, %c0_i32_0 : i32, i32, i32
  }
  func.func @transform_6(%arg0: i32, %arg1: memref<2xi32, #tpu.memory_space<smem>>) -> (i32, i32, i32) {
    %0 = arith.index_cast %arg0 : i32 to index
    %1 = memref.load %arg1[%0] : memref<2xi32, #tpu.memory_space<smem>>
    %c0_i32 = arith.constant 0 : i32
    %c0_i32_0 = arith.constant 0 : i32
    %c0_i32_1 = arith.constant 0 : i32
    return %1, %c0_i32, %c0_i32_0 : i32, i32, i32
  }
  func.func @transform_7(%arg0: i32, %arg1: memref<2xi32, #tpu.memory_space<smem>>) -> (i32, i32, i32) {
    %0 = arith.index_cast %arg0 : i32 to index
    %1 = memref.load %arg1[%0] : memref<2xi32, #tpu.memory_space<smem>>
    %c0_i32 = arith.constant 0 : i32
    %c0_i32_0 = arith.constant 0 : i32
    %c0_i32_1 = arith.constant 0 : i32
    return %1, %c0_i32, %c0_i32_0 : i32, i32, i32
  }
  func.func @transform_8(%arg0: i32, %arg1: memref<2xi32, #tpu.memory_space<smem>>) -> (i32, i32, i32) {
    %0 = arith.index_cast %arg0 : i32 to index
    %1 = memref.load %arg1[%0] : memref<2xi32, #tpu.memory_space<smem>>
    %c0_i32 = arith.constant 0 : i32
    %c0_i32_0 = arith.constant 0 : i32
    %c0_i32_1 = arith.constant 0 : i32
    return %1, %c0_i32, %c0_i32_0 : i32, i32, i32
  }
  func.func @transform_9(%arg0: i32, %arg1: memref<2xi32, #tpu.memory_space<smem>>) -> (i32, i32) {
    %c0_i32 = arith.constant 0 : i32
    %c0_i32_0 = arith.constant 0 : i32
    return %arg0, %c0_i32 : i32, i32
  }
}

</mosaic_0001>

<bundles_post_ra>
// kernel: tpu_custom_call.1
= control target key start
LH: loop header
LB: loop body
LE: loop exit
PB: predicated region body
PF: predicated region fallthrough
CT: control target
= control target key end

     0   :  { %s6629_s0 = inlined_call_operand.vmem [shape: s32[2], index: 0, kind: input, shape index: {}]   ;;  %s6630_s1 = inlined_call_operand.vmem [shape: f32[1024,12], index: 1, kind: input, shape index: {}]   ;;  %s6631_s2 = inlined_call_operand.vmem [shape: f32[2,12,32], index: 2, kind: input, shape index: {}]   ;;  %s6632_s3 = inlined_call_operand.vmem [shape: f32[2,1,32], index: 3, kind: input, shape index: {}]   ;;  %s6633_s4 = inlined_call_operand.vmem [shape: f32[2,32,32], index: 4, kind: input, shape index: {}]   ;;  %s6634_s5 = inlined_call_operand.vmem [shape: f32[2,1,32], index: 5, kind: input, shape index: {}]   ;;  %s6635_s6 = inlined_call_operand.vmem [shape: f32[2,32,32], index: 6, kind: input, shape index: {}]   ;;  %s6636_s7 = inlined_call_operand.vmem [shape: f32[2,1,32], index: 7, kind: input, shape index: {}]   ;;  %s6637_s8 = inlined_call_operand.vmem [shape: f32[2,1,32], index: 8, kind: input, shape index: {}]   ;;  %s6638_s9 = inlined_call_operand.vmem [shape: f32[2,1,32], index: 9, kind: input, shape index: {}]   ;;  %s6639_s10 = inlined_call_operand.vmem [shape: f32[1024,32], index: 10, kind: output, shape index: {}]  }
   0x1   :  { %s15_s15 = sshll.u32 %s6629_s0, 4  ;;  %s16_s15 = int_to_ptr.vmem [resolvable:$true] %s15_s15 }
   0x2   :  { %s4686_s16 = scalar_lea.vmem %s16_s15, 16  ;;  %p4691_p1 = scmp.lt.s32.totalorder %s16_s15, %s16_s15 }
   0x3   :  { %p4687_p0 = scmp.ne.s32.totalorder %s16_s15, %s4686_s16  ;;  %p4692_p2 = scmp.lt.s32.totalorder %s4686_s16, %s4686_s16 }
   0x5   :  { %p4693_p3 = por %p4692_p2, %p4691_p1 }
   0x7   :  { %p4694_p4 = pnand %p4693_p3, %p4687_p0 }
   0x9   :  { %4697 = shalt.err (!%p4694_p4)  }
   0xa   :  { %s4708_s17 = smov [#allocation3]  }
   0xb   :  { %18 = dma.vmem_to_smem %s16_s15, 16, %s4708_s17, [#allocation2] }
   0xc   :  { %4702 = dma.done.wait [#allocation2], 16 }
   0xd   :  { %4703 = vsyncadd [#allocation2], 4294967280 }
   0xe   :  { %20 = sfence }
   0xf   :  { %s4768_s18 = smov 0  }
  0x10 LB: > { %s4774_s0 = sadd.s32 4294967295, %s4706_s18   ;;  %p3797_p5 = scmp.ge.s32.totalorder %s4706_s18, 1  ;;  %s4706_s18 = sphi %s4768_s18, %s26_s18  }
  0x11   : > { %p397_p6 = scmp.lt.s32.totalorder %s4706_s18, 3 }
  0x13   : > { %p398_p7 = pnand %p3797_p5, %p397_p6 }
  0x15   : > { %401 = sbr.rel (%p398_p7) target bundleno = 1117 (0x45d), region = 56 }
  0x1c   : > { %s477_s19 = sld [smem:[#allocation3 + %s4774_s0]]  ;;  %s3798_s20 = sshll.u32 %s4774_s0, 6  ;;  %vm602_vm0 = vcmask 97280   ;;  %vm795_vm1 = vcmask 1043456   ;;  %vm4709_vm2 = vmmov 1   ;;  %vm1259_vm4 = vcmask 261120  }
  0x1d   : > { %p472_p8 = scmp.lt.s32.totalorder %s3798_s20, 127  ;;  %s489_s21 = sld [smem:[#allocation3 + %s4774_s0]]  ;;  %vm4522_vm3 = vmpackc.low %vm795_vm1, %vm4709_vm2 }
  0x1e   : > { %s501_s14 = sld [smem:[#allocation3 + %s4774_s0]] }
  0x1f   : > { %s6713_s20 = smov (!%p472_p8, %s3798_s20), 127 }
  0x20   : > { %s3799_s22 = sshll.u32 %s6713_s20, 3 }
  0x21   : > { %s4789_s25 = scalar_lea.vmem %s6630_s1, %s3799_s22 }
  0x22   : > { %p478_p9 = scmp.lt.s32.totalorder %s477_s19, 1  ;;  %v529_v0 = vld [vmem:[%s4789_s25] sm:$0xff]  ;;  %v530_v4 = vld [vmem:[%s4789_s25 + $0x8] sm:$0xff]  ;;  %v531_v5 = vld [vmem:[%s4789_s25 + $0x10] sm:$0xff] }
  0x23   : > { %p490_p10 = scmp.lt.s32.totalorder %s489_s21, 1  ;;  %4217 = vmatprep.mubr.msk.f32.mxu0 %vm602_vm0, %v529_v0  ;;  %v561_v6 = vld [vmem:[%s4789_s25 + $0x100] sm:$0xff]  ;;  %v562_v7 = vld [vmem:[%s4789_s25 + $0x108] sm:$0xff]  ;;  %v563_v8 = vld [vmem:[%s4789_s25 + $0x110] sm:$0xff] }
  0x24   : > { %s6715_s19 = smov (!%p478_p9, %s477_s19), 1  ;;  %4265 = vmatprep.mubr.msk.f32.mxu1 %vm602_vm0, %v561_v6  ;;  %v532_v9 = vld [vmem:[%s4789_s25 + $0x18] sm:$0xff]  ;;  %v533_v10 = vld [vmem:[%s4789_s25 + $0x20] sm:$0xff]  ;;  %v534_v16 = vld [vmem:[%s4789_s25 + $0x28] sm:$0xff]  ;;  %p502_p11 = scmp.lt.s32.totalorder %s501_s14, 1 }
  0x25   : > { %s6717_s21 = smov (!%p490_p10, %s489_s21), 1  ;;  %s4008_s26 = sshll.u32 %s6715_s19, 4  ;;  %v564_v11 = vld [vmem:[%s4789_s25 + $0x118] sm:$0xff]  ;;  %v565_v14 = vld [vmem:[%s4789_s25 + $0x120] sm:$0xff]  ;;  %v535_v17 = vld [vmem:[%s4789_s25 + $0x30] sm:$0xff] }
  0x26   : > { %s482_s29 = scalar_lea.vmem %s6631_s2, %s4008_s26  ;;  %s4009_s30 = sshll.u32 %s6717_s21, 5  ;;  %v566_v18 = vld [vmem:[%s4789_s25 + $0x128] sm:$0xff]  ;;  %v567_v20 = vld [vmem:[%s4789_s25 + $0x130] sm:$0xff]  ;;  %v536_v23 = vld [vmem:[%s4789_s25 + $0x38] sm:$0xff] }
  0x27   : > { %v593_v1 = vld [vmem:[%s482_s29] sm:$0xff]  ;;  %v594_v2 = vld [vmem:[%s482_s29 + $0x8] sm:$0xf]  ;;  %s494_s13 = scalar_lea.vmem %s6633_s4, %s4009_s30  ;;  %v568_v25 = vld [vmem:[%s4789_s25 + $0x138] sm:$0xff]  ;;  %s6719_s14 = smov (!%p502_p11, %s501_s14), 1 }
  0x28   : > { %v4521_v3 = vpack.c.bf16 %v594_v2, %v593_v1  ;;  %v1248_v12 = vld [vmem:[%s494_s13] sm:$0xff]  ;;  %v1249_v13 = vld [vmem:[%s494_s13 + $0x8] sm:$0xff]  ;;  %v1250_v19 = vld [vmem:[%s494_s13 + $0x10] sm:$0xff]  ;;  %s4010_s15 = sshll.u32 %s6719_s14, 5  ;;  %s484_s21 = sld [smem:[#allocation3 + %s4774_s0]] }
  0x29   : > { %v4527_v15 = vpack.c.bf16 %v1249_v13, %v1248_v12  ;;  %v1251_v21 = vld [vmem:[%s494_s13 + $0x18] sm:$0xff]  ;;  %v537_v24 = vld [vmem:[%s4789_s25 + $0x40] sm:$0xff]  ;;  %v538_v27 = vld [vmem:[%s4789_s25 + $0x48] sm:$0xff]  ;;  %s506_s19 = scalar_lea.vmem %s6635_s6, %s4010_s15  ;;  %s496_s26 = sld [smem:[#allocation3 + %s4774_s0]] }
  0x2a   : > { %4523 = vmatprep.subr.msk.bf16.mxu0 %vm4522_vm3, %v4521_v3  ;;  %4543 = vmatprep.subr.msk.bf16.mxu1 %vm4522_vm3, %v4521_v3  ;;  %v4531_v22 = vpack.c.bf16 %v1251_v21, %v1250_v19  ;;  %v569_v26 = vld [vmem:[%s4789_s25 + $0x140] sm:$0xff]  ;;  %v539_v28 = vld [vmem:[%s4789_s25 + $0x50] sm:$0xff]  ;;  %v570_v29 = vld [vmem:[%s4789_s25 + $0x148] sm:$0xff]  ;;  %s508_s30 = sld [smem:[#allocation3 + %s4774_s0]] }
  0x2b   : > { %4526 = vmatpush3.bf16.msk.msra.mxu0 %vm4522_vm3, %v4521_v3  ;;  %4544 = vmatpush3.bf16.msk.msra.mxu1 %vm4522_vm3, %v4521_v3  ;;  %v571_v30 = vld [vmem:[%s4789_s25 + $0x150] sm:$0xff]  ;;  %v540_v31 = vld [vmem:[%s4789_s25 + $0x58] sm:$0xff]  ;;  %v541_v32 = vld [vmem:[%s4789_s25 + $0x60] sm:$0xff]  ;;  %s5712_s14 = sld [smem:[#allocation3 + %s4774_s0]] }
  0x2c   : > { %4528 = vmatprep.subr.bf16.mxu1 %v4527_v15  ;;  %v572_v33 = vld [vmem:[%s4789_s25 + $0x158] sm:$0xff]  ;;  %v573_v34 = vld [vmem:[%s4789_s25 + $0x160] sm:$0xff]  ;;  %v542_v35 = vld [vmem:[%s4789_s25 + $0x68] sm:$0xff]  ;;  %s5717_s15 = sld [smem:[#allocation3 + %s4774_s0]] }
  0x2d   : > { %v543_v36 = vld [vmem:[%s4789_s25 + $0x70] sm:$0xff]  ;;  %v574_v37 = vld [vmem:[%s4789_s25 + $0x168] sm:$0xff]  ;;  %v544_v39 = vld [vmem:[%s4789_s25 + $0x78] sm:$0xff] }
  0x2e   : > { %4218 = vmatmul.mubr.msk.f32.vlgmr.msra.gmra.mrb[0].mxu0 %vm602_vm0, %v530_v4  ;;  %4266 = vmatmul.mubr.msk.f32.vlgmr.msra.gmra.mrb[0].mxu1 %vm602_vm0, %v562_v7  ;;  %v575_v38 = vld [vmem:[%s4789_s25 + $0x170] sm:$0xff]  ;;  %v545_v40 = vld [vmem:[%s4789_s25 + $0x80] sm:$0xff]  ;;  %v576_v41 = vld [vmem:[%s4789_s25 + $0x178] sm:$0xff]  ;;  %p485_p12 = scmp.lt.s32.totalorder %s484_s21, 1 }
  0x2f   : > { %4220 = vmatprep.mubr.msk.f32.mxu0 %vm602_vm0, %v531_v5  ;;  %4268 = vmatprep.mubr.msk.f32.mxu1 %vm602_vm0, %v563_v8  ;;  %v577_v42 = vld [vmem:[%s4789_s25 + $0x180] sm:$0xff]  ;;  %v546_v43 = vld [vmem:[%s4789_s25 + $0x88] sm:$0xff]  ;;  %v547_v44 = vld [vmem:[%s4789_s25 + $0x90] sm:$0xff]  ;;  %p497_p13 = scmp.lt.s32.totalorder %s496_s26, 1 }
  0x30   : > { %4530 = vmatpush3.bf16.msra.mxu1 %v4527_v15  ;;  %v578_v45 = vld [vmem:[%s4789_s25 + $0x188] sm:$0xff]  ;;  %v579_v46 = vld [vmem:[%s4789_s25 + $0x190] sm:$0xff]  ;;  %v548_v47 = vld [vmem:[%s4789_s25 + $0x98] sm:$0xff]  ;;  %s6721_s21 = smov (!%p485_p12, %s484_s21), 1  ;;  %p509_p0 = scmp.lt.s32.totalorder %s508_s30, 1 }
  0x31   : > { %4532 = vmatprep.subr.bf16.mxu1 %v4531_v22  ;;  %v549_v48 = vld [vmem:[%s4789_s25 + $0xa0] sm:$0xff]  ;;  %v580_v49 = vld [vmem:[%s4789_s25 + $0x198] sm:$0xff]  ;;  %v550_v51 = vld [vmem:[%s4789_s25 + $0xa8] sm:$0xff]  ;;  %s6723_s26 = smov (!%p497_p13, %s496_s26), 1  ;;  %p514_p1 = scmp.lt.s32.totalorder %s5712_s14, 1 }
  0x32   : > { %4221 = vmatmul.mubr.msk.f32.gmra.mrb[2].mxu0 %vm602_vm0, %v532_v9  ;;  %4269 = vmatmul.mubr.msk.f32.gmra.mrb[2].mxu1 %vm602_vm0, %v564_v11  ;;  %v581_v50 = vld [vmem:[%s4789_s25 + $0x1a0] sm:$0xff]  ;;  %v551_v52 = vld [vmem:[%s4789_s25 + $0xb0] sm:$0xff]  ;;  %v582_v53 = vld [vmem:[%s4789_s25 + $0x1a8] sm:$0xff]  ;;  %s499_s29 = scalar_lea.vmem %s6634_s5, %s6723_s26  ;;  %s6725_s30 = smov (!%p509_p0, %s508_s30), 1 }
  0x33   : > { %4223 = vmatprep.mubr.msk.f32.mxu0 %vm602_vm0, %v533_v10  ;;  %4271 = vmatprep.mubr.msk.f32.mxu1 %vm602_vm0, %v565_v14  ;;  %v583_v54 = vld [vmem:[%s4789_s25 + $0x1b0] sm:$0xff]  ;;  %v552_v55 = vld [vmem:[%s4789_s25 + $0xb8] sm:$0xff]  ;;  %v553_v56 = vld [vmem:[%s4789_s25 + $0xc0] sm:$0xff]  ;;  %s5297_s13 = scalar_lea.vmem %s6636_s7, %s6725_s30  ;;  %p519_p2 = scmp.lt.s32.totalorder %s5717_s15, 1 }
  0x34   : > { %4534 = vmatpush3.bf16.msra.mxu1 %v4531_v22  ;;  %v584_v57 = vld [vmem:[%s4789_s25 + $0x1b8] sm:$0xff]  ;;  %v585_v58 = vld [vmem:[%s4789_s25 + $0x1c0] sm:$0xff]  ;;  %v554_v59 = vld [vmem:[%s4789_s25 + $0xc8] sm:$0xff]  ;;  %s6727_s14 = smov (!%p514_p1, %s5712_s14), 1  ;;  %s5820_s26 = scalar_lea.vmem %s6639_s10, %s3799_s22 }
  0x35   : > { %v555_v60 = vld [vmem:[%s4789_s25 + $0xd0] sm:$0xff]  ;;  %v586_v61 = vld [vmem:[%s4789_s25 + $0x1c8] sm:$0xff]  ;;  %v556_v63 = vld [vmem:[%s4789_s25 + $0xd8] sm:$0xff]  ;;  %s6729_s15 = smov (!%p519_p2, %s5717_s15), 1  ;;  %s5775_s17 = scalar_lea.vmem %s6637_s8, %s6727_s14 }
  0x36   : > { %4224 = vmatmul.mubr.msk.f32.gmra.mrb[4].mxu0 %vm602_vm0, %v534_v16  ;;  %4272 = vmatmul.mubr.msk.f32.gmra.mrb[4].mxu1 %vm602_vm0, %v566_v18  ;;  %v587_v62 = vld [vmem:[%s4789_s25 + $0x1d0] sm:$0xff]  ;;  %v557_v0 = vld [vmem:[%s4789_s25 + $0xe0] sm:$0xff]  ;;  %v588_v1 = vld [vmem:[%s4789_s25 + $0x1d8] sm:$0xff]  ;;  %s5789_s23 = scalar_lea.vmem %s6638_s9, %s6729_s15 }
  0x37   : > { %4226 = vmatprep.mubr.msk.f32.mxu0 %vm602_vm0, %v535_v17  ;;  %4274 = vmatprep.mubr.msk.f32.mxu1 %vm602_vm0, %v567_v20  ;;  %v589_v2 = vld [vmem:[%s4789_s25 + $0x1e0] sm:$0xff]  ;;  %v558_v3 = vld [vmem:[%s4789_s25 + $0xe8] sm:$0xff]  ;;  %v559_v4 = vld [vmem:[%s4789_s25 + $0xf0] sm:$0xff] }
  0x38   : > { %v590_v5 = vld [vmem:[%s4789_s25 + $0x1e8] sm:$0xff]  ;;  %v591_v6 = vld [vmem:[%s4789_s25 + $0x1f0] sm:$0xff]  ;;  %v560_v7 = vld [vmem:[%s4789_s25 + $0xf8] sm:$0xff] }
  0x39   : > { %v592_v8 = vld [vmem:[%s4789_s25 + $0x1f8] sm:$0xff]  ;;  %v1901_v9 = vld [vmem:[%s506_s19] sm:$0xff]  ;;  %v1902_v10 = vld [vmem:[%s506_s19 + $0x8] sm:$0xff]  ;;  %s487_s25 = scalar_lea.vmem %s6632_s3, %s6721_s21 }
  0x3a   : > { %4227 = vmatmul.mubr.msk.f32.gmra.mrb[6].mxu0 %vm602_vm0, %v536_v23  ;;  %4275 = vmatmul.mubr.msk.f32.gmra.mrb[6].mxu1 %vm602_vm0, %v568_v25  ;;  %v4535_v11 = vpack.c.bf16 %v1902_v10, %v1901_v9  ;;  %v1903_v12 = vld [vmem:[%s506_s19 + $0x10] sm:$0xff]  ;;  %v1904_v13 = vld [vmem:[%s506_s19 + $0x18] sm:$0xff]  ;;  %v4933_v15 = vld [vmem:[%s487_s25] ss:$0 sm:$0xff] }
  0x3b   : > { %4229 = vmatprep.mubr.msk.f32.mxu0 %vm602_vm0, %v537_v24  ;;  %4277 = vmatprep.mubr.msk.f32.mxu1 %vm602_vm0, %v569_v26  ;;  %v4539_v14 = vpack.c.bf16 %v1904_v13, %v1903_v12 }
  0x3c   : > { %4536 = vmatprep.subr.bf16.mxu0 %v4535_v11 }
  0x3d   : > { %4538 = vmatpush3.bf16.msra.mxu0 %v4535_v11 }
  0x3e   : > { %4230 = vmatmul.mubr.msk.f32.gmra.mrb[8].mxu0 %vm602_vm0, %v538_v27  ;;  %4278 = vmatmul.mubr.msk.f32.gmra.mrb[8].mxu1 %vm602_vm0, %v570_v29 }
  0x3f   : > { %4232 = vmatprep.mubr.msk.f32.mxu0 %vm602_vm0, %v539_v28  ;;  %4280 = vmatprep.mubr.msk.f32.mxu1 %vm602_vm0, %v571_v30 }
  0x40   : > { %4540 = vmatprep.subr.bf16.mxu0 %v4539_v14 }
  0x41   : > { %4542 = vmatpush3.bf16.msra.mxu0 %v4539_v14 }
  0x42   : > { %4233 = vmatmul.mubr.msk.f32.gmra.mrb[10].mxu0 %vm602_vm0, %v540_v31  ;;  %4281 = vmatmul.mubr.msk.f32.gmra.mrb[10].mxu1 %vm602_vm0, %v572_v33 }
  0x43   : > { %4235 = vmatprep.mubr.msk.f32.mxu0 %vm602_vm0, %v541_v32  ;;  %4283 = vmatprep.mubr.msk.f32.mxu1 %vm602_vm0, %v573_v34 }
  0x46   : > { %4236 = vmatmul.mubr.msk.f32.gmra.mrb[12].mxu0 %vm602_vm0, %v542_v35  ;;  %4284 = vmatmul.mubr.msk.f32.gmra.mrb[12].mxu1 %vm602_vm0, %v574_v37 }
  0x47   : > { %4238 = vmatprep.mubr.msk.f32.mxu0 %vm602_vm0, %v543_v36  ;;  %4286 = vmatprep.mubr.msk.f32.mxu1 %vm602_vm0, %v575_v38 }
  0x4a   : > { %4239 = vmatmul.mubr.msk.f32.gmra.mrb[14].mxu0 %vm602_vm0, %v544_v39  ;;  %4287 = vmatmul.mubr.msk.f32.gmra.mrb[14].mxu1 %vm602_vm0, %v576_v41 }
  0x4b   : > { %4241 = vmatprep.mubr.msk.f32.mxu0 %vm602_vm0, %v545_v40  ;;  %4289 = vmatprep.mubr.msk.f32.mxu1 %vm602_vm0, %v577_v42 }
  0x4e   : > { %4242 = vmatmul.mubr.msk.f32.gmra.mrb[16].mxu0 %vm602_vm0, %v546_v43  ;;  %4290 = vmatmul.mubr.msk.f32.gmra.mrb[16].mxu1 %vm602_vm0, %v578_v45 }
  0x4f   : > { %4244 = vmatprep.mubr.msk.f32.mxu0 %vm602_vm0, %v547_v44  ;;  %4292 = vmatprep.mubr.msk.f32.mxu1 %vm602_vm0, %v579_v46 }
  0x52   : > { %4245 = vmatmul.mubr.msk.f32.gmra.mrb[18].mxu0 %vm602_vm0, %v548_v47  ;;  %4293 = vmatmul.mubr.msk.f32.gmra.mrb[18].mxu1 %vm602_vm0, %v580_v49 }
  0x53   : > { %4247 = vmatprep.mubr.msk.f32.mxu0 %vm602_vm0, %v549_v48  ;;  %4295 = vmatprep.mubr.msk.f32.mxu1 %vm602_vm0, %v581_v50 }
  0x56   : > { %4248 = vmatmul.mubr.msk.f32.gmra.mrb[20].mxu0 %vm602_vm0, %v550_v51  ;;  %4296 = vmatmul.mubr.msk.f32.gmra.mrb[20].mxu1 %vm602_vm0, %v582_v53 }
  0x57   : > { %4250 = vmatprep.mubr.msk.f32.mxu0 %vm602_vm0, %v551_v52  ;;  %4298 = vmatprep.mubr.msk.f32.mxu1 %vm602_vm0, %v583_v54 }
  0x5a   : > { %4251 = vmatmul.mubr.msk.f32.gmra.mrb[22].mxu0 %vm602_vm0, %v552_v55  ;;  %4299 = vmatmul.mubr.msk.f32.gmra.mrb[22].mxu1 %vm602_vm0, %v584_v57 }
  0x5b   : > { %4253 = vmatprep.mubr.msk.f32.mxu0 %vm602_vm0, %v553_v56  ;;  %4301 = vmatprep.mubr.msk.f32.mxu1 %vm602_vm0, %v585_v58 }
  0x5e   : > { %4254 = vmatmul.mubr.msk.f32.gmra.mrb[24].mxu0 %vm602_vm0, %v554_v59  ;;  %4302 = vmatmul.mubr.msk.f32.gmra.mrb[24].mxu1 %vm602_vm0, %v586_v61 }
  0x5f   : > { %4256 = vmatprep.mubr.msk.f32.mxu0 %vm602_vm0, %v555_v60  ;;  %4304 = vmatprep.mubr.msk.f32.mxu1 %vm602_vm0, %v587_v62 }
  0x62   : > { %4257 = vmatmul.mubr.msk.f32.gmra.mrb[26].mxu0 %vm602_vm0, %v556_v63  ;;  %4305 = vmatmul.mubr.msk.f32.gmra.mrb[26].mxu1 %vm602_vm0, %v588_v1 }
  0x63   : > { %4259 = vmatprep.mubr.msk.f32.mxu0 %vm602_vm0, %v557_v0  ;;  %4307 = vmatprep.mubr.msk.f32.mxu1 %vm602_vm0, %v589_v2 }
  0x66   : > { %4260 = vmatmul.mubr.msk.f32.gmra.mrb[28].mxu0 %vm602_vm0, %v558_v3  ;;  %4308 = vmatmul.mubr.msk.f32.gmra.mrb[28].mxu1 %vm602_vm0, %v590_v5 }
  0x67   : > { %4262 = vmatprep.mubr.msk.f32.mxu0 %vm602_vm0, %v559_v4  ;;  %4310 = vmatprep.mubr.msk.f32.mxu1 %vm602_vm0, %v591_v6 }
  0x6a   : > { %4263 = vmatmul.mubr.msk.f32.gmra.mrb[30].mxu0 %vm602_vm0, %v560_v7  ;;  %4311 = vmatmul.mubr.msk.f32.gmra.mrb[30].mxu1 %vm602_vm0, %v592_v8 }
 0x101   : > { %v4219_v16 = vpop.f32.mrb[0].mxu0  ;;  %v4267_v19 = vpop.f32.mrb[0].mxu1 }
 0x102   : > { %v871_v17 = vadd.f32 %v4219_v16, %v4933_v15  ;;  %v865_v18 = vpop.f32.mrb[1].mxu0  ;;  %v4938_v21 = vadd.f32 %v4267_v19, %v4933_v15  ;;  %v4940_v22 = vpop.f32.mrb[1].mxu1 }
 0x103   : > { %v866_v20 = vadd.f32 %v4933_v15, %v865_v18 }
 0x104   : > { %v1185_v25 = vmax.f32 %v871_v17, 0.0 }
 0x105   : > { %v1184_v23 = vmax.f32 %v866_v20, 0.0  ;;  %v4222_v24 = vpop.f32.mrb[2].mxu0  ;;  %v4270_v28 = vpop.f32.mrb[2].mxu1 }
 0x106   : > { %v881_v26 = vadd.f32 %v4222_v24, %v4933_v15  ;;  %v875_v27 = vpop.f32.mrb[3].mxu0  ;;  %v4946_v30 = vadd.f32 %v4270_v28, %v4933_v15  ;;  %v1035_v31 = vpop.f32.mrb[3].mxu1 }
 0x107   : > { %v876_v29 = vadd.f32 %v4933_v15, %v875_v27  ;;  %4321 = vmatprep.mubr.msk.f32.mxu1 %vm1259_vm4, %v1184_v23  ;;  %v4950_v33 = vadd.f32 %v4933_v15, %v1035_v31 }
 0x108   : > { %v1187_v32 = vmax.f32 %v881_v26, 0.0  ;;  %4322 = vmatmul.mubr.msk.f32.vlgmr.msra.gmra.mrb[32].mxu1 %vm1259_vm4, %v1185_v25 }
 0x109   : > { %v1186_v34 = vmax.f32 %v876_v29, 0.0  ;;  %v4225_v35 = vpop.f32.mrb[4].mxu0  ;;  %v4273_v38 = vpop.f32.mrb[4].mxu1 }
 0x10a   : > { %v891_v36 = vadd.f32 %v4225_v35, %v4933_v15  ;;  %v885_v37 = vpop.f32.mrb[5].mxu0  ;;  %v4956_v40 = vadd.f32 %v4273_v38, %v4933_v15  ;;  %v1045_v41 = vpop.f32.mrb[5].mxu1 }
 0x10b   : > { %4324 = vmatprep.mubr.msk.f32.mxu1 %vm1259_vm4, %v1186_v34  ;;  %v886_v39 = vadd.f32 %v4933_v15, %v885_v37  ;;  %v4960_v43 = vadd.f32 %v4933_v15, %v1045_v41 }
 0x10c   : > { %4325 = vmatmul.mubr.msk.f32.gmra.mrb[34].mxu1 %vm1259_vm4, %v1187_v32  ;;  %v1189_v42 = vmax.f32 %v891_v36, 0.0 }
 0x10d   : > { %v1188_v44 = vmax.f32 %v886_v39, 0.0  ;;  %v4228_v45 = vpop.f32.mrb[6].mxu0  ;;  %v4276_v48 = vpop.f32.mrb[6].mxu1 }
 0x10e   : > { %v901_v46 = vadd.f32 %v4228_v45, %v4933_v15  ;;  %v895_v47 = vpop.f32.mrb[7].mxu0  ;;  %v4966_v50 = vadd.f32 %v4276_v48, %v4933_v15  ;;  %v1055_v51 = vpop.f32.mrb[7].mxu1 }
 0x10f   : > { %4327 = vmatprep.mubr.msk.f32.mxu1 %vm1259_vm4, %v1188_v44  ;;  %v896_v49 = vadd.f32 %v4933_v15, %v895_v47  ;;  %v4970_v53 = vadd.f32 %v4933_v15, %v1055_v51 }
 0x110   : > { %4328 = vmatmul.mubr.msk.f32.gmra.mrb[36].mxu1 %vm1259_vm4, %v1189_v42  ;;  %v1191_v52 = vmax.f32 %v901_v46, 0.0 }
 0x111   : > { %v1190_v54 = vmax.f32 %v896_v49, 0.0  ;;  %v4231_v55 = vpop.f32.mrb[8].mxu0  ;;  %v4279_v58 = vpop.f32.mrb[8].mxu1 }
 0x112   : > { %v911_v56 = vadd.f32 %v4231_v55, %v4933_v15  ;;  %v905_v57 = vpop.f32.mrb[9].mxu0  ;;  %v4976_v60 = vadd.f32 %v4279_v58, %v4933_v15  ;;  %v1065_v61 = vpop.f32.mrb[9].mxu1 }
 0x113   : > { %4330 = vmatprep.mubr.msk.f32.mxu1 %vm1259_vm4, %v1190_v54  ;;  %v906_v59 = vadd.f32 %v4933_v15, %v905_v57  ;;  %v4980_v63 = vadd.f32 %v4933_v15, %v1065_v61 }
 0x114   : > { %4331 = vmatmul.mubr.msk.f32.gmra.mrb[38].mxu1 %vm1259_vm4, %v1191_v52  ;;  %v1193_v62 = vmax.f32 %v911_v56, 0.0 }
 0x115   : > { %v1192_v0 = vmax.f32 %v906_v59, 0.0  ;;  %v4234_v1 = vpop.f32.mrb[10].mxu0  ;;  %v4282_v4 = vpop.f32.mrb[10].mxu1 }
 0x116   : > { %v921_v2 = vadd.f32 %v4234_v1, %v4933_v15  ;;  %v915_v3 = vpop.f32.mrb[11].mxu0  ;;  %v4986_v6 = vadd.f32 %v4282_v4, %v4933_v15  ;;  %v1075_v7 = vpop.f32.mrb[11].mxu1 }
 0x117   : > { %4333 = vmatprep.mubr.msk.f32.mxu1 %vm1259_vm4, %v1192_v0  ;;  %v916_v5 = vadd.f32 %v4933_v15, %v915_v3  ;;  %v4990_v9 = vadd.f32 %v4933_v15, %v1075_v7 }
 0x118   : > { %4334 = vmatmul.mubr.msk.f32.gmra.mrb[40].mxu1 %vm1259_vm4, %v1193_v62  ;;  %v1195_v8 = vmax.f32 %v921_v2, 0.0 }
 0x119   : > { %v1194_v10 = vmax.f32 %v916_v5, 0.0  ;;  %v4237_v11 = vpop.f32.mrb[12].mxu0  ;;  %v4285_v14 = vpop.f32.mrb[12].mxu1 }
 0x11a   : > { %v931_v12 = vadd.f32 %v4237_v11, %v4933_v15  ;;  %v925_v13 = vpop.f32.mrb[13].mxu0  ;;  %v4996_v17 = vadd.f32 %v4285_v14, %v4933_v15  ;;  %v1085_v18 = vpop.f32.mrb[13].mxu1 }
 0x11b   : > { %4336 = vmatprep.mubr.msk.f32.mxu1 %vm1259_vm4, %v1194_v10  ;;  %v926_v16 = vadd.f32 %v4933_v15, %v925_v13  ;;  %v5000_v20 = vadd.f32 %v4933_v15, %v1085_v18 }
 0x11c   : > { %4337 = vmatmul.mubr.msk.f32.gmra.mrb[42].mxu1 %vm1259_vm4, %v1195_v8  ;;  %v1197_v19 = vmax.f32 %v931_v12, 0.0 }
 0x11d   : > { %v1196_v23 = vmax.f32 %v926_v16, 0.0  ;;  %v4240_v24 = vpop.f32.mrb[14].mxu0  ;;  %v4288_v27 = vpop.f32.mrb[14].mxu1 }
 0x11e   : > { %v941_v25 = vadd.f32 %v4240_v24, %v4933_v15  ;;  %v935_v26 = vpop.f32.mrb[15].mxu0  ;;  %v5006_v29 = vadd.f32 %v4288_v27, %v4933_v15  ;;  %v1095_v31 = vpop.f32.mrb[15].mxu1 }
 0x11f   : > { %4339 = vmatprep.mubr.msk.f32.mxu1 %vm1259_vm4, %v1196_v23  ;;  %v936_v28 = vadd.f32 %v4933_v15, %v935_v26  ;;  %v5010_v34 = vadd.f32 %v4933_v15, %v1095_v31 }
 0x120   : > { %4340 = vmatmul.mubr.msk.f32.gmra.mrb[44].mxu1 %vm1259_vm4, %v1197_v19  ;;  %v1199_v32 = vmax.f32 %v941_v25, 0.0 }
 0x121   : > { %v1198_v35 = vmax.f32 %v936_v28, 0.0  ;;  %v4243_v36 = vpop.f32.mrb[16].mxu0  ;;  %v4291_v39 = vpop.f32.mrb[16].mxu1 }
 0x122   : > { %v951_v37 = vadd.f32 %v4243_v36, %v4933_v15  ;;  %v945_v38 = vpop.f32.mrb[17].mxu0  ;;  %v5016_v42 = vadd.f32 %v4291_v39, %v4933_v15  ;;  %v1105_v44 = vpop.f32.mrb[17].mxu1 }
 0x123   : > { %4342 = vmatprep.mubr.msk.f32.mxu1 %vm1259_vm4, %v1198_v35  ;;  %v946_v41 = vadd.f32 %v4933_v15, %v945_v38  ;;  %v5020_v46 = vadd.f32 %v4933_v15, %v1105_v44 }
 0x124   : > { %4343 = vmatmul.mubr.msk.f32.gmra.mrb[46].mxu1 %vm1259_vm4, %v1199_v32  ;;  %v1201_v45 = vmax.f32 %v951_v37, 0.0 }
 0x125   : > { %v1200_v47 = vmax.f32 %v946_v41, 0.0  ;;  %v4246_v48 = vpop.f32.mrb[18].mxu0  ;;  %v4294_v52 = vpop.f32.mrb[18].mxu1 }
 0x126   : > { %v961_v49 = vadd.f32 %v4246_v48, %v4933_v15  ;;  %v955_v51 = vpop.f32.mrb[19].mxu0  ;;  %v5026_v55 = vadd.f32 %v4294_v52, %v4933_v15  ;;  %v1115_v56 = vpop.f32.mrb[19].mxu1 }
 0x127   : > { %4345 = vmatprep.mubr.msk.f32.mxu1 %vm1259_vm4, %v1200_v47  ;;  %v956_v54 = vadd.f32 %v4933_v15, %v955_v51  ;;  %v5030_v58 = vadd.f32 %v4933_v15, %v1115_v56 }
 0x128   : > { %4346 = vmatmul.mubr.msk.f32.gmra.mrb[48].mxu1 %vm1259_vm4, %v1201_v45  ;;  %v1203_v57 = vmax.f32 %v961_v49, 0.0 }
 0x129   : > { %v1202_v59 = vmax.f32 %v956_v54, 0.0  ;;  %v4249_v61 = vpop.f32.mrb[20].mxu0  ;;  %v4297_v1 = vpop.f32.mrb[20].mxu1 }
 0x12a   : > { %v971_v62 = vadd.f32 %v4249_v61, %v4933_v15  ;;  %v965_v0 = vpop.f32.mrb[21].mxu0  ;;  %v5036_v3 = vadd.f32 %v4297_v1, %v4933_v15  ;;  %v1125_v4 = vpop.f32.mrb[21].mxu1 }
 0x12b   : > { %4348 = vmatprep.mubr.msk.f32.mxu1 %vm1259_vm4, %v1202_v59  ;;  %v966_v2 = vadd.f32 %v4933_v15, %v965_v0  ;;  %v5040_v7 = vadd.f32 %v4933_v15, %v1125_v4 }
 0x12c   : > { %4349 = vmatmul.mubr.msk.f32.gmra.mrb[50].mxu1 %vm1259_vm4, %v1203_v57  ;;  %v1205_v5 = vmax.f32 %v971_v62, 0.0 }
 0x12d   : > { %v1204_v8 = vmax.f32 %v966_v2, 0.0  ;;  %v4252_v10 = vpop.f32.mrb[22].mxu0  ;;  %v4300_v13 = vpop.f32.mrb[22].mxu1 }
 0x12e   : > { %v981_v11 = vadd.f32 %v4252_v10, %v4933_v15  ;;  %v975_v12 = vpop.f32.mrb[23].mxu0  ;;  %v5046_v16 = vadd.f32 %v4300_v13, %v4933_v15  ;;  %v1135_v18 = vpop.f32.mrb[23].mxu1  ;;  %v1026_v10 = vadd.f32 %v4933_v15, %v4940_v22 }
 0x12f   : > { %4351 = vmatprep.mubr.msk.f32.mxu1 %vm1259_vm4, %v1204_v8  ;;  %v976_v14 = vadd.f32 %v4933_v15, %v975_v12  ;;  %v5050_v23 = vadd.f32 %v4933_v15, %v1135_v18 }
 0x130   : > { %4352 = vmatmul.mubr.msk.f32.gmra.mrb[52].mxu1 %vm1259_vm4, %v1205_v5  ;;  %v1207_v19 = vmax.f32 %v981_v11, 0.0  ;;  %v1216_v22 = vmax.f32 %v1026_v10, 0.0 }
 0x131   : > { %v1206_v24 = vmax.f32 %v976_v14, 0.0  ;;  %v4255_v25 = vpop.f32.mrb[24].mxu0  ;;  %v4303_v28 = vpop.f32.mrb[24].mxu1 }
 0x132   : > { %v991_v26 = vadd.f32 %v4255_v25, %v4933_v15  ;;  %v985_v27 = vpop.f32.mrb[25].mxu0  ;;  %v5056_v32 = vadd.f32 %v4303_v28, %v4933_v15  ;;  %v1145_v35 = vpop.f32.mrb[25].mxu1  ;;  %v1218_v28 = vmax.f32 %v4950_v33, 0.0  ;;  %v1223_v33 = vmax.f32 %v4966_v50, 0.0 }
 0x133   : > { %4354 = vmatprep.mubr.msk.f32.mxu1 %vm1259_vm4, %v1206_v24  ;;  %v986_v31 = vadd.f32 %v4933_v15, %v985_v27  ;;  %v5060_v37 = vadd.f32 %v4933_v15, %v1145_v35  ;;  %v1217_v27 = vmax.f32 %v4938_v21, 0.0  ;;  %v1221_v35 = vmax.f32 %v4956_v40, 0.0 }
 0x134   : > { %4355 = vmatmul.mubr.msk.f32.gmra.mrb[54].mxu1 %vm1259_vm4, %v1207_v19  ;;  %v1209_v36 = vmax.f32 %v991_v26, 0.0  ;;  %v1222_v21 = vmax.f32 %v4970_v53, 0.0  ;;  %v1226_v40 = vmax.f32 %v4990_v9, 0.0  ;;  %v1227_v53 = vmax.f32 %v4986_v6, 0.0 }
 0x135   : > { %v1208_v38 = vmax.f32 %v986_v31, 0.0  ;;  %v4258_v39 = vpop.f32.mrb[26].mxu0  ;;  %v4306_v45 = vpop.f32.mrb[26].mxu1  ;;  %v1219_v31 = vmax.f32 %v4946_v30, 0.0  ;;  %v1224_v30 = vmax.f32 %v4980_v63, 0.0  ;;  %v1228_v50 = vmax.f32 %v5000_v20, 0.0 }
 0x136   : > { %v1001_v41 = vadd.f32 %v4258_v39, %v4933_v15  ;;  %v995_v44 = vpop.f32.mrb[27].mxu0  ;;  %v5066_v48 = vadd.f32 %v4306_v45, %v4933_v15  ;;  %v1155_v49 = vpop.f32.mrb[27].mxu1  ;;  %v1229_v63 = vmax.f32 %v4996_v17, 0.0  ;;  %v1232_v9 = vmax.f32 %v5020_v46, 0.0 }
 0x137   : > { %4357 = vmatprep.mubr.msk.f32.mxu1 %vm1259_vm4, %v1208_v38  ;;  %v996_v47 = vadd.f32 %v4933_v15, %v995_v44  ;;  %v5070_v52 = vadd.f32 %v4933_v15, %v1155_v49  ;;  %v1233_v6 = vmax.f32 %v5016_v42, 0.0  ;;  %v1234_v20 = vmax.f32 %v5030_v58, 0.0  ;;  %v5163_v38 = vld [vmem:[%s499_s29] ss:$0 sm:$0xff] }
 0x138   : > { %4358 = vmatmul.mubr.msk.f32.gmra.mrb[56].mxu1 %vm1259_vm4, %v1209_v36  ;;  %v1211_v51 = vmax.f32 %v1001_v41, 0.0  ;;  %v1230_v36 = vmax.f32 %v5010_v34, 0.0  ;;  %v1235_v17 = vmax.f32 %v5026_v55, 0.0  ;;  %v1237_v34 = vmax.f32 %v5036_v3, 0.0 }
 0x139   : > { %v1210_v54 = vmax.f32 %v996_v47, 0.0  ;;  %v4261_v56 = vpop.f32.mrb[28].mxu0  ;;  %v4309_v61 = vpop.f32.mrb[28].mxu1  ;;  %v1238_v42 = vmax.f32 %v5050_v23, 0.0  ;;  %v1239_v46 = vmax.f32 %v5046_v16, 0.0  ;;  %v1240_v55 = vmax.f32 %v5060_v37, 0.0 }
 0x13a   : > { %v1011_v57 = vadd.f32 %v4261_v56, %v4933_v15  ;;  %v1005_v59 = vpop.f32.mrb[29].mxu0  ;;  %v5076_v0 = vadd.f32 %v4309_v61, %v4933_v15  ;;  %v1165_v1 = vpop.f32.mrb[29].mxu1  ;;  %v1241_v58 = vmax.f32 %v5056_v32, 0.0  ;;  %v1242_v3 = vmax.f32 %v5070_v52, 0.0 }
 0x13b   : > { %4360 = vmatprep.mubr.msk.f32.mxu1 %vm1259_vm4, %v1210_v54  ;;  %v1006_v62 = vadd.f32 %v4933_v15, %v1005_v59  ;;  %v5080_v4 = vadd.f32 %v4933_v15, %v1165_v1 }
 0x13c   : > { %4361 = vmatmul.mubr.msk.f32.gmra.mrb[58].mxu1 %vm1259_vm4, %v1211_v51  ;;  %v1213_v2 = vmax.f32 %v1011_v57, 0.0  ;;  %v1245_v23 = vmax.f32 %v5076_v0, 0.0 }
 0x13d   : > { %v1212_v5 = vmax.f32 %v1006_v62, 0.0  ;;  %v4264_v8 = vpop.f32.mrb[30].mxu0  ;;  %v4312_v13 = vpop.f32.mrb[30].mxu1  ;;  %v1244_v16 = vmax.f32 %v5080_v4, 0.0 }
 0x13e   : > { %v1021_v11 = vadd.f32 %v4264_v8, %v4933_v15  ;;  %v1015_v12 = vpop.f32.mrb[31].mxu0  ;;  %v5088_v18 = vadd.f32 %v4312_v13, %v4933_v15  ;;  %v1175_v19 = vpop.f32.mrb[31].mxu1 }
 0x13f   : > { %4363 = vmatprep.mubr.msk.f32.mxu1 %vm1259_vm4, %v1212_v5  ;;  %v1016_v14 = vadd.f32 %v4933_v15, %v1015_v12  ;;  %v5092_v25 = vadd.f32 %v4933_v15, %v1175_v19  ;;  %v1220_v15 = vmax.f32 %v4960_v43, 0.0  ;;  %v1225_v43 = vmax.f32 %v4976_v60, 0.0 }
 0x140   : > { %4364 = vmatmul.mubr.msk.f32.gmra.mrb[60].mxu1 %vm1259_vm4, %v1213_v2  ;;  %v1215_v24 = vmax.f32 %v1021_v11, 0.0  ;;  %v1231_v60 = vmax.f32 %v5006_v29, 0.0  ;;  %v1236_v29 = vmax.f32 %v5040_v7, 0.0  ;;  %v1243_v7 = vmax.f32 %v5066_v48, 0.0 }
 0x141   : > { %v1214_v26 = vmax.f32 %v1016_v14, 0.0  ;;  %v1246_v32 = vmax.f32 %v5092_v25, 0.0  ;;  %v1247_v37 = vmax.f32 %v5088_v18, 0.0 }
 0x143   : > { %4366 = vmatprep.mubr.msk.f32.mxu1 %vm1259_vm4, %v1214_v26 }
 0x144   : > { %4367 = vmatmul.mubr.msk.f32.gmra.mrb[62].mxu1 %vm1259_vm4, %v1215_v24 }
 0x145   : > { %4369 = vmatprep.mubr.msk.f32.mxu1 %vm1259_vm4, %v1216_v22 }
 0x148   : > { %4370 = vmatmul.mubr.msk.f32.gmra.mrb[64].mxu1 %vm1259_vm4, %v1217_v27 }
 0x149   : > { %4372 = vmatprep.mubr.msk.f32.mxu1 %vm1259_vm4, %v1218_v28 }
 0x14c   : > { %4373 = vmatmul.mubr.msk.f32.gmra.mrb[66].mxu1 %vm1259_vm4, %v1219_v31 }
 0x14d   : > { %4375 = vmatprep.mubr.msk.f32.mxu1 %vm1259_vm4, %v1220_v15 }
 0x150   : > { %4376 = vmatmul.mubr.msk.f32.gmra.mrb[68].mxu1 %vm1259_vm4, %v1221_v35 }
 0x151   : > { %4378 = vmatprep.mubr.msk.f32.mxu1 %vm1259_vm4, %v1222_v21 }
 0x154   : > { %4379 = vmatmul.mubr.msk.f32.gmra.mrb[70].mxu1 %vm1259_vm4, %v1223_v33 }
 0x155   : > { %4381 = vmatprep.mubr.msk.f32.mxu1 %vm1259_vm4, %v1224_v30 }
 0x158   : > { %4382 = vmatmul.mubr.msk.f32.gmra.mrb[72].mxu1 %vm1259_vm4, %v1225_v43 }
 0x159   : > { %4384 = vmatprep.mubr.msk.f32.mxu1 %vm1259_vm4, %v1226_v40 }
 0x15c   : > { %4385 = vmatmul.mubr.msk.f32.gmra.mrb[74].mxu1 %vm1259_vm4, %v1227_v53 }
 0x15d   : > { %4387 = vmatprep.mubr.msk.f32.mxu1 %vm1259_vm4, %v1228_v50 }
 0x160   : > { %4388 = vmatmul.mubr.msk.f32.gmra.mrb[76].mxu1 %vm1259_vm4, %v1229_v63 }
 0x161   : > { %4390 = vmatprep.mubr.msk.f32.mxu1 %vm1259_vm4, %v1230_v36 }
 0x164   : > { %4391 = vmatmul.mubr.msk.f32.gmra.mrb[78].mxu1 %vm1259_vm4, %v1231_v60 }
 0x165   : > { %4393 = vmatprep.mubr.msk.f32.mxu1 %vm1259_vm4, %v1232_v9 }
 0x168   : > { %4394 = vmatmul.mubr.msk.f32.gmra.mrb[80].mxu1 %vm1259_vm4, %v1233_v6 }
 0x169   : > { %4396 = vmatprep.mubr.msk.f32.mxu1 %vm1259_vm4, %v1234_v20 }
 0x16c   : > { %4397 = vmatmul.mubr.msk.f32.gmra.mrb[82].mxu1 %vm1259_vm4, %v1235_v17 }
 0x16d   : > { %4399 = vmatprep.mubr.msk.f32.mxu1 %vm1259_vm4, %v1236_v29 }
 0x170   : > { %4400 = vmatmul.mubr.msk.f32.gmra.mrb[84].mxu1 %vm1259_vm4, %v1237_v34 }
 0x171   : > { %4402 = vmatprep.mubr.msk.f32.mxu1 %vm1259_vm4, %v1238_v42 }
 0x174   : > { %4403 = vmatmul.mubr.msk.f32.gmra.mrb[86].mxu1 %vm1259_vm4, %v1239_v46 }
 0x175   : > { %4405 = vmatprep.mubr.msk.f32.mxu1 %vm1259_vm4, %v1240_v55 }
 0x178   : > { %4406 = vmatmul.mubr.msk.f32.gmra.mrb[88].mxu1 %vm1259_vm4, %v1241_v58 }
 0x179   : > { %4408 = vmatprep.mubr.msk.f32.mxu1 %vm1259_vm4, %v1242_v3 }
 0x17c   : > { %4409 = vmatmul.mubr.msk.f32.gmra.mrb[90].mxu1 %vm1259_vm4, %v1243_v7 }
 0x17d   : > { %4411 = vmatprep.mubr.msk.f32.mxu1 %vm1259_vm4, %v1244_v16 }
 0x180   : > { %4412 = vmatmul.mubr.msk.f32.gmra.mrb[92].mxu1 %vm1259_vm4, %v1245_v23 }
 0x181   : > { %4414 = vmatprep.mubr.msk.f32.mxu1 %vm1259_vm4, %v1246_v32 }
 0x184   : > { %4415 = vmatmul.mubr.msk.f32.gmra.mrb[94].mxu1 %vm1259_vm4, %v1247_v37 }
 0x1db   : > { %v4323_v39 = vpop.f32.mrb[32].mxu1 }
 0x1dc   : > { %v1524_v41 = vadd.f32 %v4323_v39, %v5163_v38  ;;  %v1518_v44 = vpop.f32.mrb[33].mxu1 }
 0x1dd   : > { %v1519_v45 = vadd.f32 %v5163_v38, %v1518_v44 }
 0x1de   : > { %v1838_v49 = vmax.f32 %v1524_v41, 0.0 }
 0x1df   : > { %v1837_v47 = vmax.f32 %v1519_v45, 0.0  ;;  %v4326_v48 = vpop.f32.mrb[34].mxu1 }
 0x1e0   : > { %v1534_v51 = vadd.f32 %v4326_v48, %v5163_v38  ;;  %v1528_v52 = vpop.f32.mrb[35].mxu1 }
 0x1e1   : > { %v1529_v54 = vadd.f32 %v5163_v38, %v1528_v52  ;;  %4425 = vmatprep.mubr.msk.f32.mxu0 %vm1259_vm4, %v1837_v47 }
 0x1e2   : > { %4426 = vmatmul.mubr.msk.f32.vlgmr.msra.gmra.mrb[32].mxu0 %vm1259_vm4, %v1838_v49  ;;  %v1840_v59 = vmax.f32 %v1534_v51, 0.0 }
 0x1e3   : > { %v1839_v56 = vmax.f32 %v1529_v54, 0.0  ;;  %v4329_v57 = vpop.f32.mrb[36].mxu1 }
 0x1e4   : > { %v1544_v61 = vadd.f32 %v4329_v57, %v5163_v38  ;;  %v1538_v62 = vpop.f32.mrb[37].mxu1 }
 0x1e5   : > { %4428 = vmatprep.mubr.msk.f32.mxu0 %vm1259_vm4, %v1839_v56  ;;  %v1539_v0 = vadd.f32 %v5163_v38, %v1538_v62 }
 0x1e6   : > { %4429 = vmatmul.mubr.msk.f32.gmra.mrb[34].mxu0 %vm1259_vm4, %v1840_v59  ;;  %v1842_v1 = vmax.f32 %v1544_v61, 0.0 }
 0x1e7   : > { %v1841_v2 = vmax.f32 %v1539_v0, 0.0  ;;  %v4332_v4 = vpop.f32.mrb[38].mxu1 }
 0x1e8   : > { %v1554_v5 = vadd.f32 %v4332_v4, %v5163_v38  ;;  %v1548_v8 = vpop.f32.mrb[39].mxu1 }
 0x1e9   : > { %4431 = vmatprep.mubr.msk.f32.mxu0 %vm1259_vm4, %v1841_v2  ;;  %v1549_v10 = vadd.f32 %v5163_v38, %v1548_v8 }
 0x1ea   : > { %4432 = vmatmul.mubr.msk.f32.gmra.mrb[36].mxu0 %vm1259_vm4, %v1842_v1  ;;  %v1844_v11 = vmax.f32 %v1554_v5, 0.0 }
 0x1eb   : > { %v1843_v12 = vmax.f32 %v1549_v10, 0.0  ;;  %v4335_v13 = vpop.f32.mrb[40].mxu1 }
 0x1ec   : > { %v1564_v14 = vadd.f32 %v4335_v13, %v5163_v38  ;;  %v1558_v18 = vpop.f32.mrb[41].mxu1 }
 0x1ed   : > { %4434 = vmatprep.mubr.msk.f32.mxu0 %vm1259_vm4, %v1843_v12  ;;  %v1559_v19 = vadd.f32 %v5163_v38, %v1558_v18 }
 0x1ee   : > { %4435 = vmatmul.mubr.msk.f32.gmra.mrb[38].mxu0 %vm1259_vm4, %v1844_v11  ;;  %v1846_v24 = vmax.f32 %v1564_v14, 0.0 }
 0x1ef   : > { %v1845_v25 = vmax.f32 %v1559_v19, 0.0  ;;  %v4338_v26 = vpop.f32.mrb[42].mxu1 }
 0x1f0   : > { %v1574_v22 = vadd.f32 %v4338_v26, %v5163_v38  ;;  %v1568_v27 = vpop.f32.mrb[43].mxu1 }
 0x1f1   : > { %4437 = vmatprep.mubr.msk.f32.mxu0 %vm1259_vm4, %v1845_v25  ;;  %v1569_v28 = vadd.f32 %v5163_v38, %v1568_v27 }
 0x1f2   : > { %4438 = vmatmul.mubr.msk.f32.gmra.mrb[40].mxu0 %vm1259_vm4, %v1846_v24  ;;  %v1848_v31 = vmax.f32 %v1574_v22, 0.0 }
 0x1f3   : > { %v1847_v15 = vmax.f32 %v1569_v28, 0.0  ;;  %v4341_v35 = vpop.f32.mrb[44].mxu1 }
 0x1f4   : > { %v1584_v21 = vadd.f32 %v4341_v35, %v5163_v38  ;;  %v1578_v33 = vpop.f32.mrb[45].mxu1 }
 0x1f5   : > { %4440 = vmatprep.mubr.msk.f32.mxu0 %vm1259_vm4, %v1847_v15  ;;  %v1579_v30 = vadd.f32 %v5163_v38, %v1578_v33 }
 0x1f6   : > { %4441 = vmatmul.mubr.msk.f32.gmra.mrb[42].mxu0 %vm1259_vm4, %v1848_v31  ;;  %v1850_v43 = vmax.f32 %v1584_v21, 0.0 }
 0x1f7   : > { %v1849_v40 = vmax.f32 %v1579_v30, 0.0  ;;  %v4344_v53 = vpop.f32.mrb[46].mxu1 }
 0x1f8   : > { %v1594_v50 = vadd.f32 %v4344_v53, %v5163_v38  ;;  %v1588_v63 = vpop.f32.mrb[47].mxu1 }
 0x1f9   : > { %4443 = vmatprep.mubr.msk.f32.mxu0 %vm1259_vm4, %v1849_v40  ;;  %v1589_v36 = vadd.f32 %v5163_v38, %v1588_v63 }
 0x1fa   : > { %4444 = vmatmul.mubr.msk.f32.gmra.mrb[44].mxu0 %vm1259_vm4, %v1850_v43  ;;  %v1852_v60 = vmax.f32 %v1594_v50, 0.0 }
 0x1fb   : > { %v1851_v9 = vmax.f32 %v1589_v36, 0.0  ;;  %v4347_v6 = vpop.f32.mrb[48].mxu1 }
 0x1fc   : > { %v1604_v20 = vadd.f32 %v4347_v6, %v5163_v38  ;;  %v1598_v17 = vpop.f32.mrb[49].mxu1 }
 0x1fd   : > { %4446 = vmatprep.mubr.msk.f32.mxu0 %vm1259_vm4, %v1851_v9  ;;  %v1599_v29 = vadd.f32 %v5163_v38, %v1598_v17 }
 0x1fe   : > { %4447 = vmatmul.mubr.msk.f32.gmra.mrb[46].mxu0 %vm1259_vm4, %v1852_v60  ;;  %v1854_v34 = vmax.f32 %v1604_v20, 0.0 }
 0x1ff   : > { %v1853_v42 = vmax.f32 %v1599_v29, 0.0  ;;  %v4350_v46 = vpop.f32.mrb[50].mxu1 }
 0x200   : > { %v1614_v55 = vadd.f32 %v4350_v46, %v5163_v38  ;;  %v1608_v58 = vpop.f32.mrb[51].mxu1 }
 0x201   : > { %4449 = vmatprep.mubr.msk.f32.mxu0 %vm1259_vm4, %v1853_v42  ;;  %v1609_v3 = vadd.f32 %v5163_v38, %v1608_v58 }
 0x202   : > { %4450 = vmatmul.mubr.msk.f32.gmra.mrb[48].mxu0 %vm1259_vm4, %v1854_v34  ;;  %v1856_v7 = vmax.f32 %v1614_v55, 0.0 }
 0x203   : > { %v1855_v16 = vmax.f32 %v1609_v3, 0.0  ;;  %v4353_v23 = vpop.f32.mrb[52].mxu1 }
 0x204   : > { %v1624_v32 = vadd.f32 %v4353_v23, %v5163_v38  ;;  %v1618_v37 = vpop.f32.mrb[53].mxu1 }
 0x205   : > { %4452 = vmatprep.mubr.msk.f32.mxu0 %vm1259_vm4, %v1855_v16  ;;  %v1619_v39 = vadd.f32 %v5163_v38, %v1618_v37 }
 0x206   : > { %4453 = vmatmul.mubr.msk.f32.gmra.mrb[50].mxu0 %vm1259_vm4, %v1856_v7  ;;  %v1858_v41 = vmax.f32 %v1624_v32, 0.0 }
 0x207   : > { %v1857_v44 = vmax.f32 %v1619_v39, 0.0  ;;  %v4356_v45 = vpop.f32.mrb[54].mxu1 }
 0x208   : > { %v1634_v47 = vadd.f32 %v4356_v45, %v5163_v38  ;;  %v1628_v48 = vpop.f32.mrb[55].mxu1 }
 0x209   : > { %4455 = vmatprep.mubr.msk.f32.mxu0 %vm1259_vm4, %v1857_v44  ;;  %v1629_v49 = vadd.f32 %v5163_v38, %v1628_v48 }
 0x20a   : > { %4456 = vmatmul.mubr.msk.f32.gmra.mrb[52].mxu0 %vm1259_vm4, %v1858_v41  ;;  %v1860_v51 = vmax.f32 %v1634_v47, 0.0 }
 0x20b   : > { %v1859_v52 = vmax.f32 %v1629_v49, 0.0  ;;  %v4359_v54 = vpop.f32.mrb[56].mxu1 }
 0x20c   : > { %v1644_v56 = vadd.f32 %v4359_v54, %v5163_v38  ;;  %v1638_v57 = vpop.f32.mrb[57].mxu1 }
 0x20d   : > { %4458 = vmatprep.mubr.msk.f32.mxu0 %vm1259_vm4, %v1859_v52  ;;  %v1639_v59 = vadd.f32 %v5163_v38, %v1638_v57 }
 0x20e   : > { %4459 = vmatmul.mubr.msk.f32.gmra.mrb[54].mxu0 %vm1259_vm4, %v1860_v51  ;;  %v1862_v61 = vmax.f32 %v1644_v56, 0.0 }
 0x20f   : > { %v1861_v62 = vmax.f32 %v1639_v59, 0.0  ;;  %v4362_v0 = vpop.f32.mrb[58].mxu1 }
 0x210   : > { %v1654_v1 = vadd.f32 %v4362_v0, %v5163_v38  ;;  %v1648_v2 = vpop.f32.mrb[59].mxu1 }
 0x211   : > { %4461 = vmatprep.mubr.msk.f32.mxu0 %vm1259_vm4, %v1861_v62  ;;  %v1649_v4 = vadd.f32 %v5163_v38, %v1648_v2 }
 0x212   : > { %4462 = vmatmul.mubr.msk.f32.gmra.mrb[56].mxu0 %vm1259_vm4, %v1862_v61  ;;  %v1864_v5 = vmax.f32 %v1654_v1, 0.0 }
 0x213   : > { %v1863_v8 = vmax.f32 %v1649_v4, 0.0  ;;  %v4365_v10 = vpop.f32.mrb[60].mxu1 }
 0x214   : > { %v1664_v11 = vadd.f32 %v4365_v10, %v5163_v38  ;;  %v1658_v12 = vpop.f32.mrb[61].mxu1 }
 0x215   : > { %4464 = vmatprep.mubr.msk.f32.mxu0 %vm1259_vm4, %v1863_v8  ;;  %v1659_v13 = vadd.f32 %v5163_v38, %v1658_v12 }
 0x216   : > { %4465 = vmatmul.mubr.msk.f32.gmra.mrb[58].mxu0 %vm1259_vm4, %v1864_v5  ;;  %v1866_v14 = vmax.f32 %v1664_v11, 0.0 }
 0x217   : > { %v1865_v18 = vmax.f32 %v1659_v13, 0.0  ;;  %v4368_v19 = vpop.f32.mrb[62].mxu1 }
 0x218   : > { %v1674_v24 = vadd.f32 %v4368_v19, %v5163_v38  ;;  %v1668_v25 = vpop.f32.mrb[63].mxu1 }
 0x219   : > { %4467 = vmatprep.mubr.msk.f32.mxu0 %vm1259_vm4, %v1865_v18  ;;  %v1669_v26 = vadd.f32 %v5163_v38, %v1668_v25 }
 0x21a   : > { %4468 = vmatmul.mubr.msk.f32.gmra.mrb[60].mxu0 %vm1259_vm4, %v1866_v14  ;;  %v1868_v22 = vmax.f32 %v1674_v24, 0.0 }
 0x21b   : > { %v1867_v27 = vmax.f32 %v1669_v26, 0.0  ;;  %v4371_v28 = vpop.f32.mrb[64].mxu1 }
 0x21c   : > { %v1684_v31 = vadd.f32 %v4371_v28, %v5163_v38  ;;  %v1678_v15 = vpop.f32.mrb[65].mxu1 }
 0x21d   : > { %4470 = vmatprep.mubr.msk.f32.mxu0 %vm1259_vm4, %v1867_v27  ;;  %v1679_v35 = vadd.f32 %v5163_v38, %v1678_v15 }
 0x21e   : > { %4471 = vmatmul.mubr.msk.f32.gmra.mrb[62].mxu0 %vm1259_vm4, %v1868_v22  ;;  %v1870_v21 = vmax.f32 %v1684_v31, 0.0 }
 0x21f   : > { %v1869_v33 = vmax.f32 %v1679_v35, 0.0  ;;  %v4374_v30 = vpop.f32.mrb[66].mxu1 }
 0x220   : > { %v1694_v43 = vadd.f32 %v4374_v30, %v5163_v38  ;;  %v1688_v40 = vpop.f32.mrb[67].mxu1 }
 0x221   : > { %4473 = vmatprep.mubr.msk.f32.mxu0 %vm1259_vm4, %v1869_v33  ;;  %v1689_v53 = vadd.f32 %v5163_v38, %v1688_v40 }
 0x222   : > { %4474 = vmatmul.mubr.msk.f32.gmra.mrb[64].mxu0 %vm1259_vm4, %v1870_v21  ;;  %v1872_v50 = vmax.f32 %v1694_v43, 0.0 }
 0x223   : > { %v1871_v63 = vmax.f32 %v1689_v53, 0.0  ;;  %v4377_v36 = vpop.f32.mrb[68].mxu1 }
 0x224   : > { %v1704_v60 = vadd.f32 %v4377_v36, %v5163_v38  ;;  %v1698_v9 = vpop.f32.mrb[69].mxu1 }
 0x225   : > { %4476 = vmatprep.mubr.msk.f32.mxu0 %vm1259_vm4, %v1871_v63  ;;  %v1699_v6 = vadd.f32 %v5163_v38, %v1698_v9 }
 0x226   : > { %4477 = vmatmul.mubr.msk.f32.gmra.mrb[66].mxu0 %vm1259_vm4, %v1872_v50  ;;  %v1874_v20 = vmax.f32 %v1704_v60, 0.0 }
 0x227   : > { %v1873_v17 = vmax.f32 %v1699_v6, 0.0  ;;  %v4380_v29 = vpop.f32.mrb[70].mxu1 }
 0x228   : > { %v1714_v34 = vadd.f32 %v4380_v29, %v5163_v38  ;;  %v1708_v42 = vpop.f32.mrb[71].mxu1 }
 0x229   : > { %4479 = vmatprep.mubr.msk.f32.mxu0 %vm1259_vm4, %v1873_v17  ;;  %v1709_v46 = vadd.f32 %v5163_v38, %v1708_v42 }
 0x22a   : > { %4480 = vmatmul.mubr.msk.f32.gmra.mrb[68].mxu0 %vm1259_vm4, %v1874_v20  ;;  %v1876_v55 = vmax.f32 %v1714_v34, 0.0 }
 0x22b   : > { %v1875_v58 = vmax.f32 %v1709_v46, 0.0  ;;  %v4383_v3 = vpop.f32.mrb[72].mxu1 }
 0x22c   : > { %v1724_v7 = vadd.f32 %v4383_v3, %v5163_v38  ;;  %v1718_v16 = vpop.f32.mrb[73].mxu1 }
 0x22d   : > { %4482 = vmatprep.mubr.msk.f32.mxu0 %vm1259_vm4, %v1875_v58  ;;  %v1719_v23 = vadd.f32 %v5163_v38, %v1718_v16 }
 0x22e   : > { %4483 = vmatmul.mubr.msk.f32.gmra.mrb[70].mxu0 %vm1259_vm4, %v1876_v55  ;;  %v1878_v32 = vmax.f32 %v1724_v7, 0.0 }
 0x22f   : > { %v1877_v37 = vmax.f32 %v1719_v23, 0.0  ;;  %v4386_v39 = vpop.f32.mrb[74].mxu1 }
 0x230   : > { %v1734_v41 = vadd.f32 %v4386_v39, %v5163_v38  ;;  %v1728_v44 = vpop.f32.mrb[75].mxu1 }
 0x231   : > { %4485 = vmatprep.mubr.msk.f32.mxu0 %vm1259_vm4, %v1877_v37  ;;  %v1729_v45 = vadd.f32 %v5163_v38, %v1728_v44 }
 0x232   : > { %4486 = vmatmul.mubr.msk.f32.gmra.mrb[72].mxu0 %vm1259_vm4, %v1878_v32  ;;  %v1880_v47 = vmax.f32 %v1734_v41, 0.0 }
 0x233   : > { %v1879_v48 = vmax.f32 %v1729_v45, 0.0  ;;  %v4389_v49 = vpop.f32.mrb[76].mxu1 }
 0x234   : > { %v1744_v51 = vadd.f32 %v4389_v49, %v5163_v38  ;;  %v1738_v52 = vpop.f32.mrb[77].mxu1 }
 0x235   : > { %4488 = vmatprep.mubr.msk.f32.mxu0 %vm1259_vm4, %v1879_v48  ;;  %v1739_v54 = vadd.f32 %v5163_v38, %v1738_v52 }
 0x236   : > { %4489 = vmatmul.mubr.msk.f32.gmra.mrb[74].mxu0 %vm1259_vm4, %v1880_v47  ;;  %v1882_v56 = vmax.f32 %v1744_v51, 0.0 }
 0x237   : > { %v1881_v57 = vmax.f32 %v1739_v54, 0.0  ;;  %v4392_v59 = vpop.f32.mrb[78].mxu1 }
 0x238   : > { %v1754_v61 = vadd.f32 %v4392_v59, %v5163_v38  ;;  %v1748_v62 = vpop.f32.mrb[79].mxu1 }
 0x239   : > { %v1749_v0 = vadd.f32 %v5163_v38, %v1748_v62  ;;  %4491 = vmatprep.mubr.msk.f32.mxu0 %vm1259_vm4, %v1881_v57 }
 0x23a   : > { %v1884_v1 = vmax.f32 %v1754_v61, 0.0  ;;  %4492 = vmatmul.mubr.msk.f32.gmra.mrb[76].mxu0 %vm1259_vm4, %v1882_v56 }
 0x23b   : > { %v1883_v2 = vmax.f32 %v1749_v0, 0.0  ;;  %v4395_v4 = vpop.f32.mrb[80].mxu1 }
 0x23c   : > { %v1764_v5 = vadd.f32 %v4395_v4, %v5163_v38  ;;  %v1758_v8 = vpop.f32.mrb[81].mxu1 }
 0x23d   : > { %v1759_v10 = vadd.f32 %v5163_v38, %v1758_v8  ;;  %4494 = vmatprep.mubr.msk.f32.mxu0 %vm1259_vm4, %v1883_v2 }
 0x23e   : > { %v1886_v11 = vmax.f32 %v1764_v5, 0.0  ;;  %4495 = vmatmul.mubr.msk.f32.gmra.mrb[78].mxu0 %vm1259_vm4, %v1884_v1 }
 0x23f   : > { %v1885_v12 = vmax.f32 %v1759_v10, 0.0  ;;  %v4398_v13 = vpop.f32.mrb[82].mxu1 }
 0x240   : > { %v1774_v14 = vadd.f32 %v4398_v13, %v5163_v38  ;;  %v1768_v18 = vpop.f32.mrb[83].mxu1 }
 0x241   : > { %v1769_v19 = vadd.f32 %v5163_v38, %v1768_v18  ;;  %4497 = vmatprep.mubr.msk.f32.mxu0 %vm1259_vm4, %v1885_v12 }
 0x242   : > { %v1888_v24 = vmax.f32 %v1774_v14, 0.0  ;;  %4498 = vmatmul.mubr.msk.f32.gmra.mrb[80].mxu0 %vm1259_vm4, %v1886_v11 }
 0x243   : > { %v1887_v25 = vmax.f32 %v1769_v19, 0.0  ;;  %v4401_v26 = vpop.f32.mrb[84].mxu1 }
 0x244   : > { %v1784_v22 = vadd.f32 %v4401_v26, %v5163_v38  ;;  %v1778_v27 = vpop.f32.mrb[85].mxu1 }
 0x245   : > { %v1779_v28 = vadd.f32 %v5163_v38, %v1778_v27  ;;  %4500 = vmatprep.mubr.msk.f32.mxu0 %vm1259_vm4, %v1887_v25 }
 0x246   : > { %v1890_v31 = vmax.f32 %v1784_v22, 0.0  ;;  %4501 = vmatmul.mubr.msk.f32.gmra.mrb[82].mxu0 %vm1259_vm4, %v1888_v24 }
 0x247   : > { %v1889_v15 = vmax.f32 %v1779_v28, 0.0  ;;  %v4404_v35 = vpop.f32.mrb[86].mxu1 }
 0x248   : > { %v1794_v21 = vadd.f32 %v4404_v35, %v5163_v38  ;;  %v1788_v33 = vpop.f32.mrb[87].mxu1 }
 0x249   : > { %v1789_v30 = vadd.f32 %v5163_v38, %v1788_v33  ;;  %4503 = vmatprep.mubr.msk.f32.mxu0 %vm1259_vm4, %v1889_v15 }
 0x24a   : > { %v1892_v43 = vmax.f32 %v1794_v21, 0.0  ;;  %4504 = vmatmul.mubr.msk.f32.gmra.mrb[84].mxu0 %vm1259_vm4, %v1890_v31 }
 0x24b   : > { %v1891_v40 = vmax.f32 %v1789_v30, 0.0  ;;  %v4407_v53 = vpop.f32.mrb[88].mxu1 }
 0x24c   : > { %v1804_v50 = vadd.f32 %v4407_v53, %v5163_v38  ;;  %v1798_v63 = vpop.f32.mrb[89].mxu1 }
 0x24d   : > { %v1799_v36 = vadd.f32 %v5163_v38, %v1798_v63  ;;  %4506 = vmatprep.mubr.msk.f32.mxu0 %vm1259_vm4, %v1891_v40 }
 0x24e   : > { %v1894_v60 = vmax.f32 %v1804_v50, 0.0  ;;  %4507 = vmatmul.mubr.msk.f32.gmra.mrb[86].mxu0 %vm1259_vm4, %v1892_v43 }
 0x24f   : > { %v1893_v9 = vmax.f32 %v1799_v36, 0.0  ;;  %v4410_v6 = vpop.f32.mrb[90].mxu1 }
 0x250   : > { %v1814_v20 = vadd.f32 %v4410_v6, %v5163_v38  ;;  %v1808_v17 = vpop.f32.mrb[91].mxu1 }
 0x251   : > { %v1809_v29 = vadd.f32 %v5163_v38, %v1808_v17  ;;  %4509 = vmatprep.mubr.msk.f32.mxu0 %vm1259_vm4, %v1893_v9 }
 0x252   : > { %v1896_v34 = vmax.f32 %v1814_v20, 0.0  ;;  %4510 = vmatmul.mubr.msk.f32.gmra.mrb[88].mxu0 %vm1259_vm4, %v1894_v60 }
 0x253   : > { %v1895_v42 = vmax.f32 %v1809_v29, 0.0  ;;  %v4413_v46 = vpop.f32.mrb[92].mxu1 }
 0x254   : > { %v1824_v55 = vadd.f32 %v4413_v46, %v5163_v38  ;;  %v1818_v58 = vpop.f32.mrb[93].mxu1 }
 0x255   : > { %v1819_v3 = vadd.f32 %v5163_v38, %v1818_v58  ;;  %4512 = vmatprep.mubr.msk.f32.mxu0 %vm1259_vm4, %v1895_v42 }
 0x256   : > { %v1898_v7 = vmax.f32 %v1824_v55, 0.0  ;;  %4513 = vmatmul.mubr.msk.f32.gmra.mrb[90].mxu0 %vm1259_vm4, %v1896_v34 }
 0x257   : > { %v1897_v16 = vmax.f32 %v1819_v3, 0.0  ;;  %v4416_v23 = vpop.f32.mrb[94].mxu1 }
 0x258   : > { %v1834_v32 = vadd.f32 %v4416_v23, %v5163_v38  ;;  %v1828_v37 = vpop.f32.mrb[95].mxu1 }
 0x259   : > { %v1829_v39 = vadd.f32 %v5163_v38, %v1828_v37  ;;  %4515 = vmatprep.mubr.msk.f32.mxu0 %vm1259_vm4, %v1897_v16  ;;  %v5300_v38 = vld [vmem:[%s5297_s13] ss:$0 sm:$0xff] }
 0x25a   : > { %v1900_v41 = vmax.f32 %v1834_v32, 0.0  ;;  %4516 = vmatmul.mubr.msk.f32.gmra.mrb[92].mxu0 %vm1259_vm4, %v1898_v7 }
 0x25b   : > { %v1899_v44 = vmax.f32 %v1829_v39, 0.0 }
 0x25d   : > { %4518 = vmatprep.mubr.msk.f32.mxu0 %vm1259_vm4, %v1899_v44 }
 0x25e   : > { %4519 = vmatmul.mubr.msk.f32.gmra.mrb[94].mxu0 %vm1259_vm4, %v1900_v41 }
 0x2b5   : > { %v4427_v45 = vpop.f32.mrb[32].mxu0 }
 0x2b6   : > { %v5303_v47 = vadd.f32 %v4427_v45, %v5300_v38  ;;  %v2170_v48 = vpop.f32.mrb[33].mxu0 }
 0x2b7   : > { %v5306_v49 = vadd.f32 %v5300_v38, %v2170_v48 }
 0x2b8   : > { %v2494_v51 = vsel %vm1259_vm4, %v5303_v47, 0.0  ;;  %v2749_v52 = vmul.f32 %v5303_v47, %v5303_v47 }
 0x2b9   : > { %2495 = vadd.xlane.f32.xlu0 %v2494_v51  ;;  %v4430_v54 = vpop.f32.mrb[34].mxu0  ;;  %v2491_v62 = vsel %vm1259_vm4, %v5306_v49, 0.0  ;;  %v2748_v0 = vmul.f32 %v5306_v49, %v5306_v49 }
 0x2ba   : > { %v5313_v56 = vadd.f32 %v4430_v54, %v5300_v38  ;;  %v2180_v57 = vpop.f32.mrb[35].mxu0  ;;  %v2815_v59 = vsel %vm1259_vm4, %v2749_v52, 0.0 }
 0x2bb   : > { %2816 = vadd.xlane.f32.xlu1 %v2815_v59  ;;  %v5317_v61 = vadd.f32 %v5300_v38, %v2180_v57  ;;  %v2812_v5 = vsel %vm1259_vm4, %v2748_v0, 0.0 }
 0x2bc   : > { %v2500_v2 = vsel %vm1259_vm4, %v5313_v56, 0.0  ;;  %v2751_v12 = vmul.f32 %v5313_v56, %v5313_v56 }
 0x2bd   : > { %2492 = vadd.xlane.f32.xlu0 %v2491_v62  ;;  %v4433_v1 = vpop.f32.mrb[36].mxu0  ;;  %v2750_v8 = vmul.f32 %v5317_v61, %v5317_v61  ;;  %v2497_v11 = vsel %vm1259_vm4, %v5317_v61, 0.0 }
 0x2be   : > { %v2190_v4 = vpop.f32.mrb[37].mxu0  ;;  %v5337_v24 = vadd.f32 %v4433_v1, %v5300_v38  ;;  %v2821_v25 = vsel %vm1259_vm4, %v2751_v12, 0.0 }
 0x2bf   : > { %2501 = vadd.xlane.f32.xlu1 %v2500_v2  ;;  %v5333_v14 = vadd.f32 %v5300_v38, %v2190_v4  ;;  %v2818_v18 = vsel %vm1259_vm4, %v2750_v8, 0.0 }
 0x2c0   : > { %v2506_v31 = vsel %vm1259_vm4, %v5337_v24, 0.0  ;;  %v2753_v15 = vmul.f32 %v5337_v24, %v5337_v24 }
 0x2c1   : > { %2813 = vadd.xlane.f32.xlu0 %v2812_v5  ;;  %v4436_v10 = vpop.f32.mrb[38].mxu0  ;;  %v2503_v22 = vsel %vm1259_vm4, %v5333_v14, 0.0  ;;  %v2752_v27 = vmul.f32 %v5333_v14, %v5333_v14 }
 0x2c2   : > { %v2200_v13 = vpop.f32.mrb[39].mxu0  ;;  %v5353_v43 = vadd.f32 %v4436_v10, %v5300_v38  ;;  %v2827_v40 = vsel %vm1259_vm4, %v2753_v15, 0.0 }
 0x2c3   : > { %2498 = vadd.xlane.f32.xlu1 %v2497_v11  ;;  %v5349_v21 = vadd.f32 %v5300_v38, %v2200_v13  ;;  %v2824_v33 = vsel %vm1259_vm4, %v2752_v27, 0.0 }
 0x2c4   : > { %v2512_v60 = vsel %vm1259_vm4, %v5353_v43, 0.0  ;;  %v2755_v9 = vmul.f32 %v5353_v43, %v5353_v43 }
 0x2c5   : > { %2819 = vadd.xlane.f32.xlu0 %v2818_v18  ;;  %v4439_v19 = vpop.f32.mrb[40].mxu0  ;;  %v2509_v50 = vsel %vm1259_vm4, %v5349_v21, 0.0  ;;  %v2754_v63 = vmul.f32 %v5349_v21, %v5349_v21 }
 0x2c6   : > { %v2210_v26 = vpop.f32.mrb[41].mxu0  ;;  %v5371_v34 = vadd.f32 %v4439_v19, %v5300_v38  ;;  %v2833_v42 = vsel %vm1259_vm4, %v2755_v9, 0.0 }
 0x2c7   : > { %2822 = vadd.xlane.f32.xlu1 %v2821_v25  ;;  %v5365_v20 = vadd.f32 %v5300_v38, %v2210_v26  ;;  %v2830_v17 = vsel %vm1259_vm4, %v2754_v63, 0.0 }
 0x2c8   : > { %v2518_v7 = vsel %vm1259_vm4, %v5371_v34, 0.0  ;;  %v2757_v16 = vmul.f32 %v5371_v34, %v5371_v34 }
 0x2c9   : > { %2504 = vadd.xlane.f32.xlu0 %v2503_v22  ;;  %v4442_v28 = vpop.f32.mrb[42].mxu0  ;;  %v2515_v55 = vsel %vm1259_vm4, %v5365_v20, 0.0  ;;  %v2756_v58 = vmul.f32 %v5365_v20, %v5365_v20 }
 0x2ca   : > { %v2220_v35 = vpop.f32.mrb[43].mxu0  ;;  %v5393_v41 = vadd.f32 %v4442_v28, %v5300_v38  ;;  %v2839_v44 = vsel %vm1259_vm4, %v2757_v16, 0.0 }
 0x2cb   : > { %2507 = vadd.xlane.f32.xlu1 %v2506_v31  ;;  %v5387_v32 = vadd.f32 %v5300_v38, %v2220_v35  ;;  %v2836_v37 = vsel %vm1259_vm4, %v2756_v58, 0.0 }
 0x2cc   : > { %v2524_v54 = vsel %vm1259_vm4, %v5393_v41, 0.0  ;;  %v2759_v57 = vmul.f32 %v5393_v41, %v5393_v41 }
 0x2cd   : > { %2825 = vadd.xlane.f32.xlu0 %v2824_v33  ;;  %v4445_v30 = vpop.f32.mrb[44].mxu0  ;;  %v2521_v48 = vsel %vm1259_vm4, %v5387_v32, 0.0  ;;  %v2758_v51 = vmul.f32 %v5387_v32, %v5387_v32 }
 0x2ce   : > { %v2230_v53 = vpop.f32.mrb[45].mxu0  ;;  %v5417_v2 = vadd.f32 %v4445_v30, %v5300_v38  ;;  %v2845_v4 = vsel %vm1259_vm4, %v2759_v57, 0.0 }
 0x2cf   : > { %2828 = vadd.xlane.f32.xlu1 %v2827_v40  ;;  %v5411_v62 = vadd.f32 %v5300_v38, %v2230_v53  ;;  %v2842_v0 = vsel %vm1259_vm4, %v2758_v51, 0.0 }
 0x2d0   : > { %v2530_v12 = vsel %vm1259_vm4, %v5417_v2, 0.0  ;;  %v2761_v13 = vmul.f32 %v5417_v2, %v5417_v2 }
 0x2d1   : > { %2510 = vadd.xlane.f32.xlu0 %v2509_v50  ;;  %v4448_v36 = vpop.f32.mrb[46].mxu0  ;;  %v2527_v8 = vsel %vm1259_vm4, %v5411_v62, 0.0  ;;  %v2760_v10 = vmul.f32 %v5411_v62, %v5411_v62 }
 0x2d2   : > { %v2240_v6 = vpop.f32.mrb[47].mxu0  ;;  %v5441_v22 = vadd.f32 %v4448_v36, %v5300_v38  ;;  %v2851_v27 = vsel %vm1259_vm4, %v2761_v13, 0.0 }
 0x2d3   : > { %2513 = vadd.xlane.f32.xlu1 %v2512_v60  ;;  %v5435_v19 = vadd.f32 %v5300_v38, %v2240_v6  ;;  %v2848_v25 = vsel %vm1259_vm4, %v2760_v10, 0.0 }
 0x2d4   : > { %v2536_v33 = vsel %vm1259_vm4, %v5441_v22, 0.0  ;;  %v2763_v30 = vmul.f32 %v5441_v22, %v5441_v22 }
 0x2d5   : > { %2831 = vadd.xlane.f32.xlu0 %v2830_v17  ;;  %v5368_v29 = vpop.f32.mrb[48].mxu0  ;;  %v2533_v31 = vsel %vm1259_vm4, %v5435_v19, 0.0  ;;  %v2762_v15 = vmul.f32 %v5435_v19, %v5435_v19 }
 0x2d6   : > { %v2250_v46 = vpop.f32.mrb[49].mxu0  ;;  %v5466_v36 = vadd.f32 %v5368_v29, %v5300_v38  ;;  %v2857_v60 = vsel %vm1259_vm4, %v2763_v30, 0.0 }
 0x2d7   : > { %2834 = vadd.xlane.f32.xlu1 %v2833_v42  ;;  %v5459_v53 = vadd.f32 %v5300_v38, %v2250_v46  ;;  %v2854_v50 = vsel %vm1259_vm4, %v2762_v15, 0.0 }
 0x2d8   : > { %v2542_v46 = vsel %vm1259_vm4, %v5466_v36, 0.0  ;;  %v2765_v29 = vmul.f32 %v5466_v36, %v5466_v36 }
 0x2d9   : > { %2516 = vadd.xlane.f32.xlu0 %v2515_v55  ;;  %v5378_v3 = vpop.f32.mrb[50].mxu0  ;;  %v2539_v6 = vsel %vm1259_vm4, %v5459_v53, 0.0  ;;  %v2764_v17 = vmul.f32 %v5459_v53, %v5459_v53 }
 0x2da   : > { %v5384_v23 = vpop.f32.mrb[51].mxu0 }
 0x2db   : > { %2519 = vadd.xlane.f32.xlu1 %v2518_v7  ;;  %v5485_v58 = vadd.f32 %v5300_v38, %v5384_v23  ;;  %v2860_v7 = vsel %vm1259_vm4, %v2764_v17, 0.0 }
 0x2dd   : > { %2837 = vadd.xlane.f32.xlu0 %v2836_v37  ;;  %v5390_v39 = vpop.f32.mrb[52].mxu0  ;;  %v5492_v37 = vadd.f32 %v5378_v3, %v5300_v38  ;;  %v2545_v51 = vsel %vm1259_vm4, %v5485_v58, 0.0  ;;  %v2766_v23 = vmul.f32 %v5485_v58, %v5485_v58 }
 0x2de   : > { %v5396_v45 = vpop.f32.mrb[53].mxu0 }
 0x2df   : > { %2840 = vadd.xlane.f32.xlu1 %v2839_v44  ;;  %v2863_v44 = vsel %vm1259_vm4, %v2765_v29, 0.0  ;;  %v2548_v57 = vsel %vm1259_vm4, %v5492_v37, 0.0  ;;  %v2767_v3 = vmul.f32 %v5492_v37, %v5492_v37 }
 0x2e1   : > { %2522 = vadd.xlane.f32.xlu0 %v2521_v48  ;;  %v5402_v52 = vpop.f32.mrb[54].mxu0  ;;  %v2869_v13 = vsel %vm1259_vm4, %v2767_v3, 0.0 }
 0x2e2   : > { %v5408_v59 = vpop.f32.mrb[55].mxu0 }
 0x2e3   : > { %2525 = vadd.xlane.f32.xlu1 %v2524_v54  ;;  %v5537_v30 = vadd.f32 %v5300_v38, %v5408_v59 }
 0x2e5   : > { %2843 = vadd.xlane.f32.xlu0 %v2842_v0  ;;  %v5414_v1 = vpop.f32.mrb[56].mxu0  ;;  %6664 = vst [vmem:[#allocation7_spill] sm:$0xff] %v5537_v30  ;;  %v2557_v29 = vsel %vm1259_vm4, %v5537_v30, 0.0  ;;  %v2770_v59 = vmul.f32 %v5537_v30, %v5537_v30 }
 0x2e6   : > { %v5420_v5 = vpop.f32.mrb[57].mxu0 }
 0x2e7   : > { %2846 = vadd.xlane.f32.xlu1 %v2845_v4  ;;  %v5511_v4 = vadd.f32 %v5300_v38, %v5396_v45 }
 0x2e9   : > { %2528 = vadd.xlane.f32.xlu0 %v2527_v8  ;;  %v5426_v11 = vpop.f32.mrb[58].mxu0  ;;  %6662 = vst [vmem:[#allocation5_spill] sm:$0xff] %v5511_v4  ;;  %v2866_v8 = vsel %vm1259_vm4, %v2766_v23, 0.0  ;;  %v2768_v45 = vmul.f32 %v5511_v4, %v5511_v4  ;;  %v5563_v23 = vadd.f32 %v5300_v38, %v5420_v5 }
 0x2ea   : > { %v5432_v18 = vpop.f32.mrb[59].mxu0 }
 0x2eb   : > { %2531 = vadd.xlane.f32.xlu1 %v2530_v12  ;;  %v5518_v12 = vadd.f32 %v5390_v39, %v5300_v38  ;;  %6666 = vst [vmem:[#allocation9_spill] sm:$0xff] %v5563_v23  ;;  %v2772_v5 = vmul.f32 %v5563_v23, %v5563_v23 }
 0x2ed   : > { %2849 = vadd.xlane.f32.xlu0 %v2848_v25  ;;  %v5438_v26 = vpop.f32.mrb[60].mxu0  ;;  %6663 = vst [vmem:[#allocation6_spill] sm:$0xff] %v5518_v12  ;;  %v2554_v15 = vsel %vm1259_vm4, %v5518_v12, 0.0  ;;  %v2769_v39 = vmul.f32 %v5518_v12, %v5518_v12 }
 0x2ee   : > { %v5444_v28 = vpop.f32.mrb[61].mxu0 }
 0x2ef   : > { %2852 = vadd.xlane.f32.xlu1 %v2851_v27  ;;  %v2551_v27 = vsel %vm1259_vm4, %v5511_v4, 0.0  ;;  %v2875_v17 = vsel %vm1259_vm4, %v2769_v39, 0.0 }
 0x2f1   : > { %2534 = vadd.xlane.f32.xlu0 %v2533_v31  ;;  %v5450_v35 = vpop.f32.mrb[62].mxu0 }
 0x2f2   : > { %v5456_v40 = vpop.f32.mrb[63].mxu0 }
 0x2f3   : > { %2537 = vadd.xlane.f32.xlu1 %v2536_v33 }
 0x2f5   : > { %2855 = vadd.xlane.f32.xlu0 %v2854_v50  ;;  %v5462_v63 = vpop.f32.mrb[64].mxu0  ;;  %v2872_v50 = vsel %vm1259_vm4, %v2768_v45, 0.0  ;;  %v2563_v45 = vsel %vm1259_vm4, %v5563_v23, 0.0 }
 0x2f6   : > { %v5469_v9 = vpop.f32.mrb[65].mxu0 }
 0x2f7   : > { %2858 = vadd.xlane.f32.xlu1 %v2857_v60 }
 0x2f9   : > { %2540 = vadd.xlane.f32.xlu0 %v2539_v6  ;;  %v5475_v42 = vpop.f32.mrb[66].mxu0  ;;  %v5544_v6 = vadd.f32 %v5402_v52, %v5300_v38 }
 0x2fa   : > { %v5481_v55 = vpop.f32.mrb[67].mxu0 }
 0x2fb   : > { %2543 = vadd.xlane.f32.xlu1 %v2542_v46  ;;  %6665 = vst [vmem:[#allocation8_spill] sm:$0xff] %v5544_v6  ;;  %v2771_v52 = vmul.f32 %v5544_v6, %v5544_v6 }
 0x2fd   : > { %2861 = vadd.xlane.f32.xlu0 %v2860_v7  ;;  %v5488_v16 = vpop.f32.mrb[68].mxu0 }
 0x2fe   : > { %v5495_v48 = vpop.f32.mrb[69].mxu0 }
 0x2ff   : > { %2864 = vadd.xlane.f32.xlu1 %v2863_v44  ;;  %v2560_v44 = vsel %vm1259_vm4, %v5544_v6, 0.0 }
 0x301   : > { %2546 = vadd.xlane.f32.xlu0 %v2545_v51  ;;  %v5501_v54 = vpop.f32.mrb[70].mxu0 }
 0x302   : > { %v5507_v0 = vpop.f32.mrb[71].mxu0 }
 0x303   : > { %2549 = vadd.xlane.f32.xlu1 %v2548_v57  ;;  %v2878_v57 = vsel %vm1259_vm4, %v2770_v59, 0.0 }
 0x305   : > { %2867 = vadd.xlane.f32.xlu0 %v2866_v8  ;;  %v5514_v10 = vpop.f32.mrb[72].mxu0  ;;  %v5570_v8 = vadd.f32 %v5414_v1, %v5300_v38 }
 0x306   : > { %v5521_v25 = vpop.f32.mrb[73].mxu0 }
 0x307   : > { %2870 = vadd.xlane.f32.xlu1 %v2869_v13  ;;  %6667 = vst [vmem:[#allocation10_spill] sm:$0xff] %v5570_v8  ;;  %v2881_v13 = vsel %vm1259_vm4, %v2771_v52, 0.0  ;;  %v2566_v39 = vsel %vm1259_vm4, %v5570_v8, 0.0  ;;  %v2773_v1 = vmul.f32 %v5570_v8, %v5570_v8 }
 0x309   : > { %2552 = vadd.xlane.f32.xlu0 %v2551_v27  ;;  %v5527_v31 = vpop.f32.mrb[74].mxu0  ;;  %v2887_v52 = vsel %vm1259_vm4, %v2773_v1, 0.0  ;;  %v5615_v1 = vadd.f32 %v5300_v38, %v5444_v28 }
 0x30a   : > { %v5533_v33 = vpop.f32.mrb[75].mxu0 }
 0x30b   : > { %2555 = vadd.xlane.f32.xlu1 %v2554_v15  ;;  %6670 = vst [vmem:[#allocation13_spill] sm:$0xff] %v5615_v1  ;;  %v2776_v28 = vmul.f32 %v5615_v1, %v5615_v1 }
 0x30d   : > { %2873 = vadd.xlane.f32.xlu0 %v2872_v50  ;;  %v5540_v60 = vpop.f32.mrb[76].mxu0 }
 0x30e   : > { %v5547_v46 = vpop.f32.mrb[77].mxu0 }
 0x30f   : > { %2876 = vadd.xlane.f32.xlu1 %v2875_v17  ;;  %v5589_v17 = vadd.f32 %v5300_v38, %v5432_v18 }
 0x311   : > { %2558 = vadd.xlane.f32.xlu0 %v2557_v29  ;;  %v5553_v7 = vpop.f32.mrb[78].mxu0  ;;  %6668 = vst [vmem:[#allocation11_spill] sm:$0xff] %v5589_v17  ;;  %v2884_v29 = vsel %vm1259_vm4, %v2772_v5, 0.0  ;;  %v2774_v18 = vmul.f32 %v5589_v17, %v5589_v17 }
 0x312   : > { %v5559_v51 = vpop.f32.mrb[79].mxu0 }
 0x313   : > { %2561 = vadd.xlane.f32.xlu1 %v2560_v44  ;;  %v5596_v44 = vadd.f32 %v5426_v11, %v5300_v38 }
 0x315   : > { %2879 = vadd.xlane.f32.xlu0 %v2878_v57  ;;  %v5566_v3 = vpop.f32.mrb[80].mxu0  ;;  %6669 = vst [vmem:[#allocation12_spill] sm:$0xff] %v5596_v44  ;;  %v2572_v5 = vsel %vm1259_vm4, %v5596_v44, 0.0  ;;  %v2775_v11 = vmul.f32 %v5596_v44, %v5596_v44 }
 0x316   : > { %v5573_v27 = vpop.f32.mrb[81].mxu0 }
 0x317   : > { %2882 = vadd.xlane.f32.xlu1 %v2881_v13  ;;  %v2569_v13 = vsel %vm1259_vm4, %v5589_v17, 0.0  ;;  %v2893_v17 = vsel %vm1259_vm4, %v2775_v11, 0.0  ;;  %v2896_v11 = vsel %vm1259_vm4, %v2776_v28, 0.0 }
 0x319   : > { %2564 = vadd.xlane.f32.xlu0 %v2563_v45  ;;  %v5579_v15 = vpop.f32.mrb[82].mxu0 }
 0x31a   : > { %v5585_v50 = vpop.f32.mrb[83].mxu0 }
 0x31b   : > { %2567 = vadd.xlane.f32.xlu1 %v2566_v39 }
 0x31d   : > { %2885 = vadd.xlane.f32.xlu0 %v2884_v29  ;;  %v5592_v59 = vpop.f32.mrb[84].mxu0  ;;  %v2890_v29 = vsel %vm1259_vm4, %v2774_v18, 0.0 }
 0x31e   : > { %v5599_v57 = vpop.f32.mrb[85].mxu0 }
 0x31f   : > { %2888 = vadd.xlane.f32.xlu1 %v2887_v52 }
 0x321   : > { %2570 = vadd.xlane.f32.xlu0 %v2569_v13  ;;  %v5605_v45 = vpop.f32.mrb[86].mxu0  ;;  %v5622_v13 = vadd.f32 %v5438_v26, %v5300_v38 }
 0x322   : > { %v5611_v39 = vpop.f32.mrb[87].mxu0 }
 0x323   : > { %2573 = vadd.xlane.f32.xlu1 %v2572_v5  ;;  %6671 = vst [vmem:[#allocation14_spill] sm:$0xff] %v5622_v13  ;;  %v2575_v5 = vsel %vm1259_vm4, %v5615_v1, 0.0  ;;  %v2777_v26 = vmul.f32 %v5622_v13, %v5622_v13 }
 0x325   : > { %2891 = vadd.xlane.f32.xlu0 %v2890_v29  ;;  %v5618_v52 = vpop.f32.mrb[88].mxu0  ;;  %v2578_v29 = vsel %vm1259_vm4, %v5622_v13, 0.0  ;;  %v2899_v23 = vsel %vm1259_vm4, %v2777_v26, 0.0 }
 0x326   : > { %v5625_v8 = vpop.f32.mrb[89].mxu0 }
 0x327   : > { %2894 = vadd.xlane.f32.xlu1 %v2893_v17  ;;  %v5641_v17 = vadd.f32 %v5300_v38, %v5456_v40 }
 0x329   : > { %2576 = vadd.xlane.f32.xlu0 %v2575_v5  ;;  %v5631_v18 = vpop.f32.mrb[90].mxu0  ;;  %6672 = vst [vmem:[#allocation15_spill] sm:$0xff] %v5641_v17  ;;  %v5648_v5 = vadd.f32 %v5450_v35, %v5300_v38  ;;  %v2778_v40 = vmul.f32 %v5641_v17, %v5641_v17 }
 0x32a   : > { %v5637_v44 = vpop.f32.mrb[91].mxu0 }
 0x32b   : > { %2579 = vadd.xlane.f32.xlu1 %v2578_v29  ;;  %6674 = vst [vmem:[#allocation17_spill] sm:$0xff] %v5648_v5  ;;  %v2581_v29 = vsel %vm1259_vm4, %v5641_v17, 0.0  ;;  %v2779_v35 = vmul.f32 %v5648_v5, %v5648_v5  ;;  %v2902_v26 = vsel %vm1259_vm4, %v2778_v40, 0.0 }
 0x32d   : > { %2897 = vadd.xlane.f32.xlu0 %v2896_v11  ;;  %v5644_v1 = vpop.f32.mrb[92].mxu0  ;;  %v2584_v11 = vsel %vm1259_vm4, %v5648_v5, 0.0  ;;  %v2905_v17 = vsel %vm1259_vm4, %v2779_v35, 0.0  ;;  %v5690_v35 = vadd.f32 %v5475_v42, %v5300_v38  ;;  %v5703_v42 = vadd.f32 %v5300_v38, %v5495_v48 }
 0x32e   : > { %6673 = vst [vmem:[#allocation16_spill] sm:$0xff] %v5644_v1  ;;  %v5651_v6 = vpop.f32.mrb[93].mxu0 }
 0x32f   : > { %2900 = vadd.xlane.f32.xlu1 %v2899_v23  ;;  %v5667_v23 = vadd.f32 %v5300_v38, %v5469_v9  ;;  %6680 = vst [vmem:[#allocation23_spill] sm:$0xff] %v5690_v35  ;;  %6681 = vst [vmem:[#allocation24_spill] sm:$0xff] %v5703_v42  ;;  %v2599_v48 = vsel %vm1259_vm4, %v5703_v42, 0.0 }
 0x331   : > { %2582 = vadd.xlane.f32.xlu0 %v2581_v29  ;;  %v5657_v28 = vpop.f32.mrb[94].mxu0  ;;  %6677 = vst [vmem:[#allocation20_spill] sm:$0xff] %v5667_v23  ;;  %v5672_v29 = vadd.f32 %v5462_v63, %v5300_v38  ;;  %v2587_v5 = vsel %vm1259_vm4, %v5667_v23, 0.0  ;;  %v5685_v63 = vadd.f32 %v5300_v38, %v5481_v55  ;;  %v2596_v55 = vsel %vm1259_vm4, %v5690_v35, 0.0 }
 0x332   : > { %6675 = vst [vmem:[#allocation18_spill] sm:$0xff] %v5657_v28  ;;  %v5663_v13 = vpop.f32.mrb[95].mxu0 }
 0x333   : > { %6676 = vst [vmem:[#allocation19_spill] sm:$0xff] %v5663_v13  ;;  %2585 = vadd.xlane.f32.xlu1 %v2584_v11  ;;  %6678 = vst [vmem:[#allocation21_spill] sm:$0xff] %v5672_v29  ;;  %v2780_v11 = vmul.f32 %v5667_v23, %v5667_v23  ;;  %v2590_v9 = vsel %vm1259_vm4, %v5672_v29, 0.0  ;;  %v2781_v40 = vmul.f32 %v5672_v29, %v5672_v29 }
 0x334   : > { %6679 = vst [vmem:[#allocation22_spill] sm:$0xff] %v5685_v63 }
 0x335   : > { %2903 = vadd.xlane.f32.xlu0 %v2902_v26  ;;  %v2593_v26 = vsel %vm1259_vm4, %v5685_v63, 0.0 }
 0x337   : > { %2906 = vadd.xlane.f32.xlu1 %v2905_v17  ;;  %v2908_v17 = vsel %vm1259_vm4, %v2780_v11, 0.0  ;;  %v2783_v11 = vmul.f32 %v5690_v35, %v5690_v35 }
 0x339   : > { %2588 = vadd.xlane.f32.xlu0 %v2587_v5  ;;  %v2911_v5 = vsel %vm1259_vm4, %v2781_v40, 0.0 }
 0x33b   : > { %2591 = vadd.xlane.f32.xlu1 %v2590_v9  ;;  %v2782_v9 = vmul.f32 %v5685_v63, %v5685_v63 }
 0x33d   : > { %2909 = vadd.xlane.f32.xlu0 %v2908_v17  ;;  %v2914_v40 = vsel %vm1259_vm4, %v2782_v9, 0.0  ;;  %v5708_v17 = vadd.f32 %v5488_v16, %v5300_v38  ;;  %v2784_v9 = vmul.f32 %v5703_v42, %v5703_v42  ;;  %v5733_v42 = vadd.f32 %v5300_v38, %v5507_v0 }
 0x33f   : > { %2912 = vadd.xlane.f32.xlu1 %v2911_v5  ;;  %6682 = vst [vmem:[#allocation25_spill] sm:$0xff] %v5708_v17  ;;  %6683 = vst [vmem:[#allocation26_spill] sm:$0xff] %v5733_v42 }
 0x341   : > { %2594 = vadd.xlane.f32.xlu0 %v2593_v26  ;;  %v2917_v26 = vsel %vm1259_vm4, %v2783_v11, 0.0 }
 0x343   : > { %2597 = vadd.xlane.f32.xlu1 %v2596_v55 }
 0x345   : > { %2915 = vadd.xlane.f32.xlu0 %v2914_v40 }
 0x346   : > { %v2496_v5 = vpop.xlane.xlu0 %2495 }
 0x347   : > { %v5714_v63 = vmul.f32 0.03125, %v2496_v5  ;;  %2918 = vadd.xlane.f32.xlu1 %v2917_v26  ;;  %v2602_v5 = vsel %vm1259_vm4, %v5708_v17, 0.0  ;;  %v2785_v26 = vmul.f32 %v5708_v17, %v5708_v17  ;;  %v5739_v17 = vadd.f32 %v5501_v54, %v5300_v38 }
 0x348   : > { %v2817_v55 = vpop.xlane.xlu1 %2816  ;;  %v2786_v54 = vmul.f32 %v5733_v42, %v5733_v42 }
 0x349   : > { %v3069_v16 = vmul.f32 %v5714_v63, %v5714_v63  ;;  %v3005_v40 = vmul.f32 0.03125, %v2817_v55  ;;  %2600 = vadd.xlane.f32.xlu0 %v2599_v48  ;;  %v2920_v55 = vsel %vm1259_vm4, %v2784_v9, 0.0  ;;  %6684 = vst [vmem:[#allocation27_spill] sm:$0xff] %v5739_v17  ;;  %v2605_v9 = vsel %vm1259_vm4, %v5733_v42, 0.0 }
 0x34a   : > { %v2493_v11 = vpop.xlane.xlu0 %2492 }
 0x34b   : > { %v3133_v35 = vsub.f32 %v3005_v40, %v3069_v16  ;;  %v5729_v29 = vmul.f32 0.03125, %v2493_v11  ;;  %2603 = vadd.xlane.f32.xlu1 %v2602_v5  ;;  %v2923_v40 = vsel %vm1259_vm4, %v2785_v26, 0.0 }
 0x34c   : > { %v2502_v23 = vpop.xlane.xlu1 %2501 }
 0x34d   : > { %v3261_v48 = vadd.f32 1e-05, %v3133_v35  ;;  %2921 = vadd.xlane.f32.xlu0 %v2920_v55  ;;  %v3068_v0 = vmul.f32 %v5729_v29, %v5729_v29  ;;  %v5749_v5 = vmul.f32 0.03125, %v2502_v23  ;;  %v5767_v23 = vadd.f32 %v5300_v38, %v5521_v25 }
 0x34e   : > { %v2814_v16 = vpop.xlane.xlu0 %2813  ;;  %v5779_v25 = vadd.f32 %v5514_v10, %v5300_v38 }
 0x34f   : > { %4555 = vrsqrt.f32 %v3261_v48  ;;  %v3004_v11 = vmul.f32 0.03125, %v2814_v16  ;;  %2924 = vadd.xlane.f32.xlu1 %v2923_v40  ;;  %v2608_v16 = vsel %vm1259_vm4, %v5739_v17, 0.0  ;;  %v2787_v40 = vmul.f32 %v5739_v17, %v5739_v17  ;;  %6685 = vst [vmem:[#allocation28_spill] sm:$0xff] %v5767_v23 }
 0x350   : > { %v2499_v35 = vpop.xlane.xlu1 %2498  ;;  %6686 = vst [vmem:[#allocation29_spill] sm:$0xff] %v5779_v25  ;;  %v2611_v10 = vsel %vm1259_vm4, %v5767_v23, 0.0 }
 0x351   : > { %v3132_v55 = vsub.f32 %v3004_v11, %v3068_v0  ;;  %v5751_v26 = vmul.f32 0.03125, %v2499_v35  ;;  %2606 = vadd.xlane.f32.xlu0 %v2605_v9  ;;  %v2926_v11 = vsel %vm1259_vm4, %v2786_v54, 0.0  ;;  %v3071_v35 = vmul.f32 %v5749_v5, %v5749_v5 }
 0x352   : > { %v2820_v48 = vpop.xlane.xlu0 %2819  ;;  %v2929_v54 = vsel %vm1259_vm4, %v2787_v40, 0.0 }
 0x353   : > { %v3260_v30 = vadd.f32 1e-05, %v3132_v55  ;;  %v3070_v28 = vmul.f32 %v5751_v26, %v5751_v26  ;;  %v3006_v42 = vmul.f32 0.03125, %v2820_v48  ;;  %2609 = vadd.xlane.f32.xlu1 %v2608_v16 }
 0x354   : > { %v2823_v0 = vpop.xlane.xlu1 %2822 }
 0x355   : > { %4557 = vrsqrt.f32 %v3260_v30  ;;  %v3134_v9 = vsub.f32 %v3006_v42, %v3070_v28  ;;  %v3007_v55 = vmul.f32 0.03125, %v2823_v0  ;;  %2927 = vadd.xlane.f32.xlu0 %v2926_v11  ;;  %v3197_v30 = vsub.f32 %v5303_v47, %v5714_v63  ;;  %v5796_v0 = vld [vmem:[%s5775_s17] ss:$0 sm:$0xff] }
 0x356   : > { %v2505_v48 = vpop.xlane.xlu0 %2504  ;;  %v2788_v42 = vmul.f32 %v5767_v23, %v5767_v23 }
 0x357   : > { %v3262_v16 = vadd.f32 1e-05, %v3134_v9  ;;  %v3135_v17 = vsub.f32 %v3007_v55, %v3071_v35  ;;  %v5782_v12 = vmul.f32 0.03125, %v2505_v48  ;;  %2930 = vadd.xlane.f32.xlu1 %v2929_v54  ;;  %v2614_v9 = vsel %vm1259_vm4, %v5779_v25, 0.0  ;;  %v5805_v48 = vld [vmem:[%s5789_s23] ss:$0 sm:$0xff] }
 0x358   : > { %v2508_v28 = vpop.xlane.xlu1 %2507  ;;  %v2789_v55 = vmul.f32 %v5779_v25, %v5779_v25 }
 0x359   : > { %v4556_v40 = vpop.eup %4555  ;;  %4559 = vrsqrt.f32 %v3262_v16  ;;  %v3263_v11 = vadd.f32 1e-05, %v3135_v17  ;;  %2612 = vadd.xlane.f32.xlu0 %v2611_v10  ;;  %v5798_v63 = vmul.f32 0.03125, %v2508_v28  ;;  %v3072_v54 = vmul.f32 %v5782_v12, %v5782_v12 }
 0x35a   : > { %v3389_v47 = vmul.f32 %v4556_v40, %v3197_v30  ;;  %v2826_v35 = vpop.xlane.xlu0 %2825  ;;  %v5812_v30 = vadd.f32 %v5300_v38, %v5533_v33  ;;  %v2932_v10 = vsel %vm1259_vm4, %v2788_v42, 0.0  ;;  %v3196_v42 = vsub.f32 %v5306_v49, %v5729_v29 }
 0x35b   : > { %4561 = vrsqrt.f32 %v3263_v11  ;;  %v3008_v16 = vmul.f32 0.03125, %v2826_v35  ;;  %2615 = vadd.xlane.f32.xlu1 %v2614_v9  ;;  %v3073_v40 = vmul.f32 %v5798_v63, %v5798_v63  ;;  %v5826_v11 = vadd.f32 %v5527_v31, %v5300_v38 }
 0x35c   : > { %v3459_v17 = vmul.f32 %v5796_v0, %v3389_v47  ;;  %v2829_v28 = vpop.xlane.xlu1 %2828  ;;  %v2935_v25 = vsel %vm1259_vm4, %v2789_v55, 0.0 }
 0x35d   : > { %v3136_v47 = vsub.f32 %v3008_v16, %v3072_v54  ;;  %v3009_v33 = vmul.f32 0.03125, %v2829_v28  ;;  %2933 = vadd.xlane.f32.xlu0 %v2932_v10  ;;  %v2617_v16 = vsel %vm1259_vm4, %v5812_v30, 0.0  ;;  %v2620_v29 = vsel %vm1259_vm4, %v5826_v11, 0.0 }
 0x35e   : > { %v3529_v35 = vadd.f32 %v5805_v48, %v3459_v17  ;;  %v2511_v9 = vpop.xlane.xlu0 %2510  ;;  %v2790_v17 = vmul.f32 %v5812_v30, %v5812_v30  ;;  %v2791_v10 = vmul.f32 %v5826_v11, %v5826_v11 }
 0x35f   : > { %v4558_v23 = vpop.eup %4557  ;;  %v3264_v13 = vadd.f32 1e-05, %v3136_v47  ;;  %v3137_v4 = vsub.f32 %v3009_v33, %v3073_v40  ;;  %v5832_v1 = vmul.f32 0.03125, %v2511_v9  ;;  %2936 = vadd.xlane.f32.xlu1 %v2935_v25  ;;  %v3198_v25 = vsub.f32 %v5317_v61, %v5751_v26 }
 0x360   : > { %3593 = vst.msk [vmem:[%s5820_s26 + $0x8] sm:$0xff] %vm1259_vm4, %v3529_v35  ;;  %v3388_v31 = vmul.f32 %v4558_v23, %v3196_v42  ;;  %v2514_v54 = vpop.xlane.xlu1 %2513  ;;  %v3199_v61 = vsub.f32 %v5313_v56, %v5749_v5  ;;  %v2938_v42 = vsel %vm1259_vm4, %v2790_v17, 0.0  ;;  %v2941_v17 = vsel %vm1259_vm4, %v2791_v10, 0.0 }
 0x361   : > { %4563 = vrsqrt.f32 %v3264_v13  ;;  %v3265_v49 = vadd.f32 1e-05, %v3137_v4  ;;  %2618 = vadd.xlane.f32.xlu0 %v2617_v16  ;;  %v5845_v28 = vmul.f32 0.03125, %v2514_v54  ;;  %v3074_v4 = vmul.f32 %v5832_v1, %v5832_v1 }
 0x362   : > { %v3458_v55 = vmul.f32 %v5796_v0, %v3388_v31  ;;  %v2832_v23 = vpop.xlane.xlu0 %2831  ;;  %v5853_v13 = vadd.f32 %v5300_v38, %v5547_v46  ;;  %v5863_v54 = vadd.f32 %v5540_v60, %v5300_v38 }
 0x363   : > { %v4560_v40 = vpop.eup %4559  ;;  %4565 = vrsqrt.f32 %v3265_v49  ;;  %v3010_v47 = vmul.f32 0.03125, %v2832_v23  ;;  %2621 = vadd.xlane.f32.xlu1 %v2620_v29  ;;  %v3075_v31 = vmul.f32 %v5845_v28, %v5845_v28 }
 0x364   : > { %v3528_v26 = vadd.f32 %v5805_v48, %v3458_v55  ;;  %v3390_v33 = vmul.f32 %v4560_v40, %v3198_v25  ;;  %v2835_v35 = vpop.xlane.xlu1 %2834  ;;  %v2626_v10 = vsel %vm1259_vm4, %v5863_v54, 0.0 }
 0x365   : > { %v4562_v9 = vpop.eup %4561  ;;  %v3138_v46 = vsub.f32 %v3010_v47, %v3074_v4  ;;  %v3011_v16 = vmul.f32 0.03125, %v2835_v35  ;;  %2939 = vadd.xlane.f32.xlu0 %v2938_v42  ;;  %v2623_v4 = vsel %vm1259_vm4, %v5853_v13, 0.0  ;;  %v2792_v47 = vmul.f32 %v5853_v13, %v5853_v13 }
 0x366   : > { %3592 = vst.msk [vmem:[%s5820_s26] sm:$0xff] %vm1259_vm4, %v3528_v26  ;;  %v3460_v56 = vmul.f32 %v5796_v0, %v3390_v33  ;;  %v3391_v5 = vmul.f32 %v4562_v9, %v3199_v61  ;;  %v2517_v49 = vpop.xlane.xlu0 %2516  ;;  %v3200_v33 = vsub.f32 %v5333_v14, %v5782_v12  ;;  %v2793_v9 = vmul.f32 %v5863_v54, %v5863_v54 }
 0x367   : > { %v3266_v29 = vadd.f32 1e-05, %v3138_v46  ;;  %v3139_v55 = vsub.f32 %v3011_v16, %v3075_v31  ;;  %v5869_v25 = vmul.f32 0.03125, %v2517_v49  ;;  %2942 = vadd.xlane.f32.xlu1 %v2941_v17  ;;  %v5896_v14 = vadd.f32 %v5300_v38, %v5559_v51 }
 0x368   : > { %v3530_v60 = vadd.f32 %v5805_v48, %v3460_v56  ;;  %v3461_v23 = vmul.f32 %v5796_v0, %v3391_v5  ;;  %v2520_v40 = vpop.xlane.xlu1 %2519  ;;  %v3201_v56 = vsub.f32 %v5337_v24, %v5798_v63  ;;  %v2944_v49 = vsel %vm1259_vm4, %v2792_v47, 0.0 }
 0x369   : > { %4567 = vrsqrt.f32 %v3266_v29  ;;  %v3267_v61 = vadd.f32 1e-05, %v3139_v55  ;;  %2624 = vadd.xlane.f32.xlu0 %v2623_v4  ;;  %v5884_v35 = vmul.f32 0.03125, %v2520_v40  ;;  %v3076_v46 = vmul.f32 %v5869_v25, %v5869_v25 }
 0x36a   : > { %3594 = vst.msk [vmem:[%s5820_s26 + $0x10] sm:$0xff] %vm1259_vm4, %v3530_v60  ;;  %v3531_v26 = vadd.f32 %v5805_v48, %v3461_v23  ;;  %v2838_v42 = vpop.xlane.xlu0 %2837  ;;  %v5901_v29 = vadd.f32 %v5553_v7, %v5300_v38  ;;  %v2947_v40 = vsel %vm1259_vm4, %v2793_v9, 0.0 }
 0x36b   : > { %v4564_v31 = vpop.eup %4563  ;;  %4569 = vrsqrt.f32 %v3267_v61  ;;  %v3012_v16 = vmul.f32 0.03125, %v2838_v42  ;;  %2627 = vadd.xlane.f32.xlu1 %v2626_v10  ;;  %v3077_v55 = vmul.f32 %v5884_v35, %v5884_v35  ;;  %v2794_v42 = vmul.f32 %v5896_v14, %v5896_v14 }
 0x36c   : > { %3595 = vst.msk [vmem:[%s5820_s26 + $0x18] sm:$0xff] %vm1259_vm4, %v3531_v26  ;;  %v3392_v5 = vmul.f32 %v4564_v31, %v3200_v33  ;;  %v2841_v12 = vpop.xlane.xlu1 %2840  ;;  %v2629_v33 = vsel %vm1259_vm4, %v5896_v14, 0.0  ;;  %v2632_v9 = vsel %vm1259_vm4, %v5901_v29, 0.0 }
 0x36d   : > { %v4566_v17 = vpop.eup %4565  ;;  %v3140_v60 = vsub.f32 %v3012_v16, %v3076_v46  ;;  %v3013_v23 = vmul.f32 0.03125, %v2841_v12  ;;  %2945 = vadd.xlane.f32.xlu0 %v2944_v49  ;;  %v3202_v16 = vsub.f32 %v5349_v21, %v5832_v1  ;;  %v2795_v12 = vmul.f32 %v5901_v29, %v5901_v29 }
 0x36e   : > { %v3462_v24 = vmul.f32 %v5796_v0, %v3392_v5  ;;  %v3393_v63 = vmul.f32 %v4566_v17, %v3201_v56  ;;  %v2523_v51 = vpop.xlane.xlu0 %2522  ;;  %v5934_v21 = vadd.f32 %v5300_v38, %v5573_v27 }
 0x36f   : > { %v3268_v4 = vadd.f32 1e-05, %v3140_v60  ;;  %v3141_v47 = vsub.f32 %v3013_v23, %v3077_v55  ;;  %v5907_v61 = vmul.f32 0.03125, %v2523_v51  ;;  %2948 = vadd.xlane.f32.xlu1 %v2947_v40  ;;  %v3203_v60 = vsub.f32 %v5353_v43, %v5845_v28 }
 0x370   : > { %v3532_v7 = vadd.f32 %v5805_v48, %v3462_v24  ;;  %v3463_v10 = vmul.f32 %v5796_v0, %v3393_v63  ;;  %v2526_v26 = vpop.xlane.xlu1 %2525  ;;  %v2950_v24 = vsel %vm1259_vm4, %v2794_v42, 0.0  ;;  %v5939_v51 = vadd.f32 %v5566_v3, %v5300_v38 }
 0x371   : > { %4571 = vrsqrt.f32 %v3268_v4  ;;  %v3269_v31 = vadd.f32 1e-05, %v3141_v47  ;;  %2630 = vadd.xlane.f32.xlu0 %v2629_v33  ;;  %v5922_v56 = vmul.f32 0.03125, %v2526_v26  ;;  %v3078_v17 = vmul.f32 %v5907_v61, %v5907_v61 }
 0x372   : > { %3596 = vst.msk [vmem:[%s5820_s26 + $0x20] sm:$0xff] %vm1259_vm4, %v3532_v7  ;;  %v3533_v46 = vadd.f32 %v5805_v48, %v3463_v10  ;;  %v2844_v5 = vpop.xlane.xlu0 %2843  ;;  %v2953_v7 = vsel %vm1259_vm4, %v2795_v12, 0.0  ;;  %v3204_v12 = vsub.f32 %v5365_v20, %v5869_v25  ;;  %v5971_v20 = vld [vmem:[%s5297_s13] ss:$0 sm:$0xff] }
 0x373   : > { %v4568_v49 = vpop.eup %4567  ;;  %4573 = vrsqrt.f32 %v3269_v31  ;;  %v3014_v55 = vmul.f32 0.03125, %v2844_v5  ;;  %2633 = vadd.xlane.f32.xlu1 %v2632_v9  ;;  %v3079_v40 = vmul.f32 %v5922_v56, %v5922_v56  ;;  %v2635_v31 = vsel %vm1259_vm4, %v5934_v21, 0.0 }
 0x374   : > { %3597 = vst.msk [vmem:[%s5820_s26 + $0x28] sm:$0xff] %vm1259_vm4, %v3533_v46  ;;  %v3394_v23 = vmul.f32 %v4568_v49, %v3202_v16  ;;  %v2847_v1 = vpop.xlane.xlu1 %2846  ;;  %v2796_v9 = vmul.f32 %v5934_v21, %v5934_v21  ;;  %v2638_v16 = vsel %vm1259_vm4, %v5939_v51, 0.0  ;;  %v5975_v25 = vadd.f32 %v5971_v20, %v5585_v50 }
 0x375   : > { %v4570_v63 = vpop.eup %4569  ;;  %v3142_v4 = vsub.f32 %v3014_v55, %v3078_v17  ;;  %v3015_v47 = vmul.f32 0.03125, %v2847_v1  ;;  %2951 = vadd.xlane.f32.xlu0 %v2950_v24  ;;  %v2797_v55 = vmul.f32 %v5939_v51, %v5939_v51  ;;  %v3205_v24 = vsub.f32 %v5371_v34, %v5884_v35 }
 0x376   : > { %v3464_v43 = vmul.f32 %v5796_v0, %v3394_v23  ;;  %v3395_v28 = vmul.f32 %v4570_v63, %v3203_v60  ;;  %v2529_v27 = vpop.xlane.xlu0 %2528 }
 0x377   : > { %v3270_v10 = vadd.f32 1e-05, %v3142_v4  ;;  %v3143_v26 = vsub.f32 %v3015_v47, %v3079_v40  ;;  %v5945_v33 = vmul.f32 0.03125, %v2529_v27  ;;  %2954 = vadd.xlane.f32.xlu1 %v2953_v7  ;;  %v2956_v4 = vsel %vm1259_vm4, %v2796_v9, 0.0 }
 0x378   : > { %v3534_v38 = vadd.f32 %v5805_v48, %v3464_v43  ;;  %v3465_v3 = vmul.f32 %v5796_v0, %v3395_v28  ;;  %v2532_v42 = vpop.xlane.xlu1 %2531  ;;  %v5980_v43 = vadd.f32 %v5971_v20, %v5579_v15  ;;  %v2641_v9 = vsel %vm1259_vm4, %v5975_v25, 0.0 }
 0x379   : > { %4575 = vrsqrt.f32 %v3270_v10  ;;  %v3271_v46 = vadd.f32 1e-05, %v3143_v26  ;;  %2636 = vadd.xlane.f32.xlu0 %v2635_v31  ;;  %v5960_v49 = vmul.f32 0.03125, %v2532_v42  ;;  %v3080_v23 = vmul.f32 %v5945_v33, %v5945_v33 }
 0x37a   : > { %3598 = vst.msk [vmem:[%s5820_s26 + $0x30] sm:$0xff] %vm1259_vm4, %v3534_v38  ;;  %v3535_v5 = vadd.f32 %v5805_v48, %v3465_v3  ;;  %v2850_v17 = vpop.xlane.xlu0 %2849  ;;  %v2959_v10 = vsel %vm1259_vm4, %v2797_v55, 0.0 }
 0x37b   : > { %v4572_v60 = vpop.eup %4571  ;;  %4577 = vrsqrt.f32 %v3271_v46  ;;  %v3016_v1 = vmul.f32 0.03125, %v2850_v17  ;;  %2639 = vadd.xlane.f32.xlu1 %v2638_v16  ;;  %v3081_v28 = vmul.f32 %v5960_v49, %v5960_v49  ;;  %v2798_v46 = vmul.f32 %v5975_v25, %v5975_v25 }
 0x37c   : > { %3599 = vst.msk [vmem:[%s5820_s26 + $0x38] sm:$0xff] %vm1259_vm4, %v3535_v5  ;;  %v3396_v63 = vmul.f32 %v4572_v60, %v3204_v12  ;;  %v2853_v40 = vpop.xlane.xlu1 %2852  ;;  %v2644_v5 = vsel %vm1259_vm4, %v5980_v43, 0.0  ;;  %v3206_v17 = vsub.f32 %v5387_v32, %v5907_v61  ;;  %v6013_v32 = vadd.f32 %v5971_v20, %v5599_v57 }
 0x37d   : > { %v4574_v47 = vpop.eup %4573  ;;  %v3144_v27 = vsub.f32 %v3016_v1, %v3080_v23  ;;  %v3017_v34 = vmul.f32 0.03125, %v2853_v40  ;;  %2957 = vadd.xlane.f32.xlu0 %v2956_v4  ;;  %v2799_v23 = vmul.f32 %v5980_v43, %v5980_v43  ;;  %v3207_v40 = vsub.f32 %v5393_v41, %v5922_v56 }
 0x37e   : > { %v3466_v35 = vmul.f32 %v5796_v0, %v3396_v63  ;;  %v3397_v7 = vmul.f32 %v4574_v47, %v3205_v24  ;;  %v2535_v50 = vpop.xlane.xlu0 %2534  ;;  %v2962_v47 = vsel %vm1259_vm4, %v2798_v46, 0.0 }
 0x37f   : > { %v3272_v26 = vadd.f32 1e-05, %v3144_v27  ;;  %v3145_v38 = vsub.f32 %v3017_v34, %v3081_v28  ;;  %v5986_v3 = vmul.f32 0.03125, %v2535_v50  ;;  %2960 = vadd.xlane.f32.xlu1 %v2959_v10  ;;  %v6018_v27 = vadd.f32 %v5971_v20, %v5592_v59 }
 0x380   : > { %v3536_v15 = vadd.f32 %v5805_v48, %v3466_v35  ;;  %v3467_v42 = vmul.f32 %v5796_v0, %v3397_v7  ;;  %v2538_v31 = vpop.xlane.xlu1 %2537  ;;  %v2965_v50 = vsel %vm1259_vm4, %v2799_v23, 0.0 }
 0x381   : > { %4579 = vrsqrt.f32 %v3272_v26  ;;  %v3273_v16 = vadd.f32 1e-05, %v3145_v38  ;;  %2642 = vadd.xlane.f32.xlu0 %v2641_v9  ;;  %v6001_v55 = vmul.f32 0.03125, %v2538_v31  ;;  %v3082_v24 = vmul.f32 %v5986_v3, %v5986_v3 }
 0x382   : > { %3600 = vst.msk [vmem:[%s5820_s26 + $0x40] sm:$0xff] %vm1259_vm4, %v3536_v15  ;;  %v3537_v12 = vadd.f32 %v5805_v48, %v3467_v42  ;;  %v2856_v60 = vpop.xlane.xlu0 %2855  ;;  %v2647_v31 = vsel %vm1259_vm4, %v6013_v32, 0.0  ;;  %v2800_v9 = vmul.f32 %v6013_v32, %v6013_v32  ;;  %v2801_v23 = vmul.f32 %v6018_v27, %v6018_v27 }
 0x383   : > { %v4576_v1 = vpop.eup %4575  ;;  %4581 = vrsqrt.f32 %v3273_v16  ;;  %v3018_v63 = vmul.f32 0.03125, %v2856_v60  ;;  %2645 = vadd.xlane.f32.xlu1 %v2644_v5  ;;  %v3083_v34 = vmul.f32 %v6001_v55, %v6001_v55  ;;  %v2650_v16 = vsel %vm1259_vm4, %v6018_v27, 0.0 }
 0x384   : > { %3601 = vst.msk [vmem:[%s5820_s26 + $0x48] sm:$0xff] %vm1259_vm4, %v3537_v12  ;;  %v3398_v4 = vmul.f32 %v4576_v1, %v3206_v17  ;;  %v2859_v61 = vpop.xlane.xlu1 %2858  ;;  %v3208_v12 = vsub.f32 %v5411_v62, %v5945_v33  ;;  %v3209_v62 = vsub.f32 %v5417_v2, %v5960_v49  ;;  %v2971_v49 = vsel %vm1259_vm4, %v2801_v23, 0.0 }
 0x385   : > { %v4578_v28 = vpop.eup %4577  ;;  %v3146_v35 = vsub.f32 %v3018_v63, %v3082_v24  ;;  %v3019_v7 = vmul.f32 0.03125, %v2859_v61  ;;  %2963 = vadd.xlane.f32.xlu0 %v2962_v47  ;;  %v2968_v61 = vsel %vm1259_vm4, %v2800_v9, 0.0 }
 0x386   : > { %v3468_v41 = vmul.f32 %v5796_v0, %v3398_v4  ;;  %v3399_v56 = vmul.f32 %v4578_v28, %v3207_v40  ;;  %v2541_v57 = vpop.xlane.xlu0 %2540  ;;  %v6049_v40 = vadd.f32 %v5971_v20, %v5611_v39  ;;  %v6056_v28 = vadd.f32 %v5971_v20, %v5605_v45 }
 0x387   : > { %v3274_v10 = vadd.f32 1e-05, %v3146_v35  ;;  %v3147_v26 = vsub.f32 %v3019_v7, %v3083_v34  ;;  %v6024_v38 = vmul.f32 0.03125, %v2541_v57  ;;  %2966 = vadd.xlane.f32.xlu1 %v2965_v50 }
 0x388   : > { %v3538_v59 = vadd.f32 %v5805_v48, %v3468_v41  ;;  %v3469_v15 = vmul.f32 %v5796_v0, %v3399_v56  ;;  %v2544_v42 = vpop.xlane.xlu1 %2543 }
 0x389   : > { %4583 = vrsqrt.f32 %v3274_v10  ;;  %v3275_v46 = vadd.f32 1e-05, %v3147_v26  ;;  %2648 = vadd.xlane.f32.xlu0 %v2647_v31  ;;  %v6039_v17 = vmul.f32 0.03125, %v2544_v42  ;;  %v3084_v24 = vmul.f32 %v6024_v38, %v6024_v38 }
 0x38a   : > { %3602 = vst.msk [vmem:[%s5820_s26 + $0x50] sm:$0xff] %vm1259_vm4, %v3538_v59  ;;  %v3539_v5 = vadd.f32 %v5805_v48, %v3469_v15  ;;  %v2862_v60 = vpop.xlane.xlu0 %2861  ;;  %v2653_v59 = vsel %vm1259_vm4, %v6049_v40, 0.0  ;;  %v2802_v15 = vmul.f32 %v6049_v40, %v6049_v40  ;;  %v2656_v31 = vsel %vm1259_vm4, %v6056_v28, 0.0 }
 0x38b   : > { %v4580_v1 = vpop.eup %4579  ;;  %4585 = vrsqrt.f32 %v3275_v46  ;;  %v3020_v63 = vmul.f32 0.03125, %v2862_v60  ;;  %2651 = vadd.xlane.f32.xlu1 %v2650_v16  ;;  %v3085_v34 = vmul.f32 %v6039_v17, %v6039_v17  ;;  %v3210_v46 = vsub.f32 %v5435_v19, %v5986_v3 }
 0x38c   : > { %3603 = vst.msk [vmem:[%s5820_s26 + $0x58] sm:$0xff] %vm1259_vm4, %v3539_v5  ;;  %v3400_v33 = vmul.f32 %v4580_v1, %v3208_v12  ;;  %v2865_v4 = vpop.xlane.xlu1 %2864  ;;  %v2803_v12 = vmul.f32 %v6056_v28, %v6056_v28  ;;  %v3211_v19 = vsub.f32 %v5441_v22, %v6001_v55 }
 0x38d   : > { %v4582_v47 = vpop.eup %4581  ;;  %v3148_v35 = vsub.f32 %v3020_v63, %v3084_v24  ;;  %v3021_v7 = vmul.f32 0.03125, %v2865_v4  ;;  %2969 = vadd.xlane.f32.xlu0 %v2968_v61  ;;  %v6085_v24 = vadd.f32 %v5971_v20, %v5625_v8  ;;  %v6094_v4 = vadd.f32 %v5971_v20, %v5618_v52 }
 0x38e   : > { %v3470_v39 = vmul.f32 %v5796_v0, %v3400_v33  ;;  %v3401_v41 = vmul.f32 %v4582_v47, %v3209_v62  ;;  %v2547_v2 = vpop.xlane.xlu0 %2546  ;;  %v2974_v62 = vsel %vm1259_vm4, %v2802_v15, 0.0  ;;  %v2977_v55 = vsel %vm1259_vm4, %v2803_v12, 0.0 }
 0x38f   : > { %v3276_v56 = vadd.f32 1e-05, %v3148_v35  ;;  %v3149_v57 = vsub.f32 %v3021_v7, %v3085_v34  ;;  %v6062_v50 = vmul.f32 0.03125, %v2547_v2  ;;  %2972 = vadd.xlane.f32.xlu1 %v2971_v49  ;;  %v6123_v12 = vadd.f32 %v5971_v20, %v5637_v44 }
 0x390   : > { %v3540_v45 = vadd.f32 %v5805_v48, %v3470_v39  ;;  %v3471_v10 = vmul.f32 %v5796_v0, %v3401_v41  ;;  %v2550_v26 = vpop.xlane.xlu1 %2549 }
 0x391   : > { %4587 = vrsqrt.f32 %v3276_v56  ;;  %v3277_v42 = vadd.f32 1e-05, %v3149_v57  ;;  %2654 = vadd.xlane.f32.xlu0 %v2653_v59  ;;  %v6077_v16 = vmul.f32 0.03125, %v2550_v26  ;;  %v3086_v23 = vmul.f32 %v6062_v50, %v6062_v50 }
 0x392   : > { %3604 = vst.msk [vmem:[%s5820_s26 + $0x60] sm:$0xff] %vm1259_vm4, %v3540_v45  ;;  %v3541_v9 = vadd.f32 %v5805_v48, %v3471_v10  ;;  %v2868_v5 = vpop.xlane.xlu0 %2867  ;;  %v2659_v56 = vsel %vm1259_vm4, %v6085_v24, 0.0  ;;  %v2804_v57 = vmul.f32 %v6085_v24, %v6085_v24  ;;  %v2662_v10 = vsel %vm1259_vm4, %v6094_v4, 0.0 }
 0x393   : > { %v4584_v60 = vpop.eup %4583  ;;  %4589 = vrsqrt.f32 %v3277_v42  ;;  %v3022_v1 = vmul.f32 0.03125, %v2868_v5  ;;  %2657 = vadd.xlane.f32.xlu1 %v2656_v31  ;;  %v3087_v61 = vmul.f32 %v6077_v16, %v6077_v16  ;;  %v3212_v59 = vsub.f32 %v5459_v53, %v6024_v38 }
 0x394   : > { %3605 = vst.msk [vmem:[%s5820_s26 + $0x68] sm:$0xff] %vm1259_vm4, %v3541_v9  ;;  %v3402_v3 = vmul.f32 %v4584_v60, %v3210_v46  ;;  %v2871_v63 = vpop.xlane.xlu1 %2870  ;;  %v2805_v31 = vmul.f32 %v6094_v4, %v6094_v4  ;;  %v3213_v53 = vsub.f32 %v5466_v36, %v6039_v17 }
 0x395   : > { %v4586_v33 = vpop.eup %4585  ;;  %v3150_v47 = vsub.f32 %v3022_v1, %v3086_v23  ;;  %v3023_v8 = vmul.f32 0.03125, %v2871_v63  ;;  %2975 = vadd.xlane.f32.xlu0 %v2974_v62  ;;  %v2980_v23 = vsel %vm1259_vm4, %v2804_v57, 0.0 }
 0x396   : > { %v3472_v34 = vmul.f32 %v5796_v0, %v3402_v3  ;;  %v3403_v35 = vmul.f32 %v4586_v33, %v3211_v19  ;;  %v2553_v22 = vpop.xlane.xlu0 %2552  ;;  %v6132_v19 = vadd.f32 %v5971_v20, %v5631_v18  ;;  %v2983_v17 = vsel %vm1259_vm4, %v2805_v31, 0.0 }
 0x397   : > { %v3278_v7 = vadd.f32 1e-05, %v3150_v47  ;;  %v3151_v39 = vsub.f32 %v3023_v8, %v3087_v61  ;;  %v6100_v41 = vmul.f32 0.03125, %v2553_v22  ;;  %2978 = vadd.xlane.f32.xlu1 %v2977_v55  ;;  %v2665_v22 = vsel %vm1259_vm4, %v6123_v12, 0.0 }
 0x398   : > { %v3542_v52 = vadd.f32 %v5805_v48, %v3472_v34  ;;  %v3473_v2 = vmul.f32 %v5796_v0, %v3403_v35  ;;  %v2556_v49 = vpop.xlane.xlu1 %2555  ;;  %v2806_v55 = vmul.f32 %v6123_v12, %v6123_v12  ;;  %v2807_v57 = vmul.f32 %v6132_v19, %v6132_v19 }
 0x399   : > { %4591 = vrsqrt.f32 %v3278_v7  ;;  %v3279_v45 = vadd.f32 1e-05, %v3151_v39  ;;  %2660 = vadd.xlane.f32.xlu0 %v2659_v56  ;;  %v6115_v15 = vmul.f32 0.03125, %v2556_v49  ;;  %v3088_v46 = vmul.f32 %v6100_v41, %v6100_v41 }
 0x39a   : > { %3606 = vst.msk [vmem:[%s5820_s26 + $0x70] sm:$0xff] %vm1259_vm4, %v3542_v52  ;;  %v3543_v26 = vadd.f32 %v5805_v48, %v3473_v2  ;;  %v2874_v42 = vpop.xlane.xlu0 %2873  ;;  %v2668_v39 = vsel %vm1259_vm4, %v6132_v19, 0.0  ;;  %v3214_v2 = vsub.f32 %v5485_v58, %v6062_v50  ;;  %v3215_v58 = vsub.f32 %v5492_v37, %v6077_v16 }
 0x39b   : > { %v4588_v9 = vpop.eup %4587  ;;  %4593 = vrsqrt.f32 %v3279_v45  ;;  %v3024_v5 = vmul.f32 0.03125, %v2874_v42  ;;  %2663 = vadd.xlane.f32.xlu1 %v2662_v10  ;;  %v3089_v3 = vmul.f32 %v6115_v15, %v6115_v15  ;;  %v2986_v31 = vsel %vm1259_vm4, %v2806_v55, 0.0 }
 0x39c   : > { %3607 = vst.msk [vmem:[%s5820_s26 + $0x78] sm:$0xff] %vm1259_vm4, %v3543_v26  ;;  %v3404_v38 = vmul.f32 %v4588_v9, %v3212_v59  ;;  %v2877_v60 = vpop.xlane.xlu1 %2876  ;;  %v6161_v59 = vadd.f32 %v5971_v20, %v5651_v6  ;;  %v2989_v16 = vsel %vm1259_vm4, %v2807_v57, 0.0 }
 0x39d   : > { %v4590_v1 = vpop.eup %4589  ;;  %v3152_v63 = vsub.f32 %v3024_v5, %v3088_v46  ;;  %v3025_v44 = vmul.f32 0.03125, %v2877_v60  ;;  %2981 = vadd.xlane.f32.xlu0 %v2980_v23  ;;  %v6687_v46 = vld [vmem:[#allocation16_spill] sm:$0xff] }
 0x39e   : > { %v3474_v62 = vmul.f32 %v5796_v0, %v3404_v38  ;;  %v3405_v33 = vmul.f32 %v4590_v1, %v3213_v53  ;;  %v2559_v36 = vpop.xlane.xlu0 %2558  ;;  %v6170_v5 = vadd.f32 %v5971_v20, %v6687_v46 }
 0x39f   : > { %v3280_v61 = vadd.f32 1e-05, %v3152_v63  ;;  %v3153_v47 = vsub.f32 %v3025_v44, %v3089_v3  ;;  %v6138_v8 = vmul.f32 0.03125, %v2559_v36  ;;  %2984 = vadd.xlane.f32.xlu1 %v2983_v17  ;;  %v2671_v36 = vsel %vm1259_vm4, %v6161_v59, 0.0 }
 0x3a0   : > { %v3544_v18 = vadd.f32 %v5805_v48, %v3474_v62  ;;  %v3475_v34 = vmul.f32 %v5796_v0, %v3405_v33  ;;  %v2562_v35 = vpop.xlane.xlu1 %2561  ;;  %v2808_v17 = vmul.f32 %v6161_v59, %v6161_v59 }
 0x3a1   : > { %4595 = vrsqrt.f32 %v3280_v61  ;;  %v3281_v7 = vadd.f32 1e-05, %v3153_v47  ;;  %2666 = vadd.xlane.f32.xlu0 %v2665_v22  ;;  %v6153_v49 = vmul.f32 0.03125, %v2562_v35  ;;  %v3090_v10 = vmul.f32 %v6138_v8, %v6138_v8 }
 0x3a2   : > { %3608 = vst.msk [vmem:[%s5820_s26 + $0x80] sm:$0xff] %vm1259_vm4, %v3544_v18  ;;  %v3545_v52 = vadd.f32 %v5805_v48, %v3475_v34  ;;  %v2880_v56 = vpop.xlane.xlu0 %2879  ;;  %v2674_v47 = vsel %vm1259_vm4, %v6170_v5, 0.0  ;;  %v6688_v34 = vld [vmem:[#allocation5_spill] sm:$0xff] }
 0x3a3   : > { %v4592_v45 = vpop.eup %4591  ;;  %4597 = vrsqrt.f32 %v3281_v7  ;;  %v3026_v26 = vmul.f32 0.03125, %v2880_v56  ;;  %2669 = vadd.xlane.f32.xlu1 %v2668_v39  ;;  %v3091_v53 = vmul.f32 %v6153_v49, %v6153_v49  ;;  %v3216_v35 = vsub.f32 %v6688_v34, %v6100_v41  ;;  %v6689_v56 = vld [vmem:[#allocation19_spill] sm:$0xff]  ;;  %v6690_v41 = vld [vmem:[#allocation6_spill] sm:$0xff] }
 0x3a4   : > { %3609 = vst.msk [vmem:[%s5820_s26 + $0x88] sm:$0xff] %vm1259_vm4, %v3545_v52  ;;  %v3406_v50 = vmul.f32 %v4592_v45, %v3214_v2  ;;  %v2883_v42 = vpop.xlane.xlu1 %2882  ;;  %v2809_v7 = vmul.f32 %v6170_v5, %v6170_v5  ;;  %v6199_v57 = vadd.f32 %v5971_v20, %v6689_v56  ;;  %v3217_v45 = vsub.f32 %v6690_v41, %v6115_v15 }
 0x3a5   : > { %v4594_v9 = vpop.eup %4593  ;;  %v3154_v38 = vsub.f32 %v3026_v26, %v3090_v10  ;;  %v3027_v6 = vmul.f32 0.03125, %v2883_v42  ;;  %2987 = vadd.xlane.f32.xlu0 %v2986_v31  ;;  %v6691_v42 = vld [vmem:[#allocation18_spill] sm:$0xff] }
 0x3a6   : > { %v3476_v60 = vmul.f32 %v5796_v0, %v3406_v50  ;;  %v3407_v23 = vmul.f32 %v4594_v9, %v3215_v58  ;;  %v2565_v37 = vpop.xlane.xlu0 %2564  ;;  %v2992_v58 = vsel %vm1259_vm4, %v2808_v17, 0.0  ;;  %v6208_v31 = vadd.f32 %v5971_v20, %v6691_v42 }
 0x3a7   : > { %v3282_v1 = vadd.f32 1e-05, %v3154_v38  ;;  %v3155_v3 = vsub.f32 %v3027_v6, %v3091_v53  ;;  %v6176_v63 = vmul.f32 0.03125, %v2565_v37  ;;  %2990 = vadd.xlane.f32.xlu1 %v2989_v16 }
 0x3a8   : > { %v3546_v44 = vadd.f32 %v5805_v48, %v3476_v60  ;;  %v3477_v62 = vmul.f32 %v5796_v0, %v3407_v23  ;;  %v2568_v33 = vpop.xlane.xlu1 %2567  ;;  %v2995_v60 = vsel %vm1259_vm4, %v2809_v7, 0.0 }
 0x3a9   : > { %4599 = vrsqrt.f32 %v3282_v1  ;;  %v3283_v61 = vadd.f32 1e-05, %v3155_v3  ;;  %2672 = vadd.xlane.f32.xlu0 %v2671_v36  ;;  %v6191_v22 = vmul.f32 0.03125, %v2568_v33  ;;  %v3092_v52 = vmul.f32 %v6176_v63, %v6176_v63 }
 0x3aa   : > { %3610 = vst.msk [vmem:[%s5820_s26 + $0x90] sm:$0xff] %vm1259_vm4, %v3546_v44  ;;  %v3547_v18 = vadd.f32 %v5805_v48, %v3477_v62  ;;  %v2886_v55 = vpop.xlane.xlu0 %2885  ;;  %v2677_v44 = vsel %vm1259_vm4, %v6199_v57, 0.0  ;;  %v2810_v62 = vmul.f32 %v6199_v57, %v6199_v57  ;;  %v2680_v36 = vsel %vm1259_vm4, %v6208_v31, 0.0 }
 0x3ab   : > { %v4596_v39 = vpop.eup %4595  ;;  %4601 = vrsqrt.f32 %v3283_v61  ;;  %v3028_v2 = vmul.f32 0.03125, %v2886_v55  ;;  %2675 = vadd.xlane.f32.xlu1 %v2674_v47  ;;  %v3093_v9 = vmul.f32 %v6191_v22, %v6191_v22  ;;  %v6692_v61 = vld [vmem:[#allocation7_spill] sm:$0xff] }
 0x3ac   : > { %3611 = vst.msk [vmem:[%s5820_s26 + $0x98] sm:$0xff] %vm1259_vm4, %v3547_v18  ;;  %v3408_v10 = vmul.f32 %v4596_v39, %v3216_v35  ;;  %v2889_v26 = vpop.xlane.xlu1 %2888  ;;  %v3218_v47 = vsub.f32 %v6692_v61, %v6138_v8  ;;  %v2811_v35 = vmul.f32 %v6208_v31, %v6208_v31  ;;  %v2998_v41 = vsel %vm1259_vm4, %v2810_v62, 0.0 }
 0x3ad   : > { %v4598_v50 = vpop.eup %4597  ;;  %v3156_v46 = vsub.f32 %v3028_v2, %v3092_v52  ;;  %v3029_v53 = vmul.f32 0.03125, %v2889_v26  ;;  %2993 = vadd.xlane.f32.xlu0 %v2992_v58  ;;  %v6693_v52 = vld [vmem:[#allocation8_spill] sm:$0xff] }
 0x3ae   : > { %v3478_v38 = vmul.f32 %v5796_v0, %v3408_v10  ;;  %v3409_v6 = vmul.f32 %v4598_v50, %v3217_v45  ;;  %v2571_v15 = vpop.xlane.xlu0 %2570  ;;  %v3219_v2 = vsub.f32 %v6693_v52, %v6153_v49 }
 0x3af   : > { %v3284_v23 = vadd.f32 1e-05, %v3156_v46  ;;  %v3157_v37 = vsub.f32 %v3029_v53, %v3093_v9  ;;  %v6214_v16 = vmul.f32 0.03125, %v2571_v15  ;;  %2996 = vadd.xlane.f32.xlu1 %v2995_v60  ;;  %v3001_v46 = vsel %vm1259_vm4, %v2811_v35, 0.0 }
 0x3b0   : > { %v3548_v20 = vadd.f32 %v5805_v48, %v3478_v38  ;;  %v3479_v1 = vmul.f32 %v5796_v0, %v3409_v6  ;;  %v2574_v3 = vpop.xlane.xlu1 %2573 }
 0x3b1   : > { %4603 = vrsqrt.f32 %v3284_v23  ;;  %v3285_v33 = vadd.f32 1e-05, %v3157_v37  ;;  %2678 = vadd.xlane.f32.xlu0 %v2677_v44  ;;  %v6229_v18 = vmul.f32 0.03125, %v2574_v3  ;;  %v3094_v7 = vmul.f32 %v6214_v16, %v6214_v16 }
 0x3b2   : > { %3612 = vst.msk [vmem:[%s5820_s26 + $0xa0] sm:$0xff] %vm1259_vm4, %v3548_v20  ;;  %v3549_v17 = vadd.f32 %v5805_v48, %v3479_v1  ;;  %v2892_v34 = vpop.xlane.xlu0 %2891  ;;  %v6694_v20 = vld [vmem:[#allocation9_spill] sm:$0xff] }
 0x3b3   : > { %v4600_v55 = vpop.eup %4599  ;;  %4605 = vrsqrt.f32 %v3285_v33  ;;  %v3030_v39 = vmul.f32 0.03125, %v2892_v34  ;;  %2681 = vadd.xlane.f32.xlu1 %v2680_v36  ;;  %v3095_v10 = vmul.f32 %v6229_v18, %v6229_v18  ;;  %v3220_v1 = vsub.f32 %v6694_v20, %v6176_v63 }
 0x3b4   : > { %3613 = vst.msk [vmem:[%s5820_s26 + $0xa8] sm:$0xff] %vm1259_vm4, %v3549_v17  ;;  %v3410_v56 = vmul.f32 %v4600_v55, %v3218_v47  ;;  %v2895_v8 = vpop.xlane.xlu1 %2894  ;;  %v6695_v17 = vld [vmem:[#allocation10_spill] sm:$0xff] }
 0x3b5   : > { %v4602_v45 = vpop.eup %4601  ;;  %v3158_v26 = vsub.f32 %v3030_v39, %v3094_v7  ;;  %v3031_v58 = vmul.f32 0.03125, %v2895_v8  ;;  %2999 = vadd.xlane.f32.xlu0 %v2998_v41  ;;  %v3221_v61 = vsub.f32 %v6695_v17, %v6191_v22 }
 0x3b6   : > { %v3480_v50 = vmul.f32 %v5796_v0, %v3410_v56  ;;  %v3411_v42 = vmul.f32 %v4602_v45, %v3219_v2  ;;  %v2577_v9 = vpop.xlane.xlu0 %2576 }
 0x3b7   : > { %v3286_v53 = vadd.f32 1e-05, %v3158_v26  ;;  %v3159_v49 = vsub.f32 %v3031_v58, %v3095_v10  ;;  %v6244_v38 = vmul.f32 0.03125, %v2577_v9  ;;  %3002 = vadd.xlane.f32.xlu1 %v3001_v46 }
 0x3b8   : > { %v3550_v6 = vadd.f32 %v5805_v48, %v3480_v50  ;;  %v3481_v15 = vmul.f32 %v5796_v0, %v3411_v42  ;;  %v2580_v60 = vpop.xlane.xlu1 %2579  ;;  %v6696_v50 = vld [vmem:[#allocation11_spill] sm:$0xff] }
 0x3b9   : > { %4607 = vrsqrt.f32 %v3286_v53  ;;  %v3287_v23 = vadd.f32 1e-05, %v3159_v49  ;;  %v6253_v3 = vmul.f32 0.03125, %v2580_v60  ;;  %v3096_v33 = vmul.f32 %v6244_v38, %v6244_v38 }
 0x3ba   : > { %3614 = vst.msk [vmem:[%s5820_s26 + $0xb0] sm:$0xff] %vm1259_vm4, %v3550_v6  ;;  %v3551_v37 = vadd.f32 %v5805_v48, %v3481_v15  ;;  %v2898_v44 = vpop.xlane.xlu0 %2897  ;;  %v3222_v42 = vsub.f32 %v6696_v50, %v6214_v16  ;;  %v6697_v6 = vld [vmem:[#allocation12_spill] sm:$0xff] }
 0x3bb   : > { %v4604_v62 = vpop.eup %4603  ;;  %4609 = vrsqrt.f32 %v3287_v23  ;;  %v3032_v36 = vmul.f32 0.03125, %v2898_v44  ;;  %v3097_v63 = vmul.f32 %v6253_v3, %v6253_v3  ;;  %v3223_v15 = vsub.f32 %v6697_v6, %v6229_v18  ;;  %v6290_v18 = vld [vmem:[%s5789_s23] ss:$0 sm:$0xff] }
 0x3bc   : > { %3615 = vst.msk [vmem:[%s5820_s26 + $0xb8] sm:$0xff] %vm1259_vm4, %v3551_v37  ;;  %v3412_v47 = vmul.f32 %v4604_v62, %v3220_v1  ;;  %v2901_v34 = vpop.xlane.xlu1 %2900  ;;  %v6284_v1 = vld [vmem:[%s5775_s17] ss:$0 sm:$0xff] }
 0x3bd   : > { %v4606_v35 = vpop.eup %4605  ;;  %v3160_v55 = vsub.f32 %v3032_v36, %v3096_v33  ;;  %v3033_v7 = vmul.f32 0.03125, %v2901_v34 }
 0x3be   : > { %v3482_v39 = vmul.f32 %v5796_v0, %v3412_v47  ;;  %v3413_v52 = vmul.f32 %v4606_v35, %v3221_v61  ;;  %v2583_v2 = vpop.xlane.xlu0 %2582 }
 0x3bf   : > { %v3288_v56 = vadd.f32 1e-05, %v3160_v55  ;;  %v3161_v8 = vsub.f32 %v3033_v7, %v3097_v63  ;;  %v6264_v41 = vmul.f32 0.03125, %v2583_v2  ;;  %v6698_v7 = vld [vmem:[#allocation13_spill] sm:$0xff] }
 0x3c0   : > { %v3552_v22 = vadd.f32 %v5805_v48, %v3482_v39  ;;  %v3483_v45 = vmul.f32 %v5796_v0, %v3413_v52  ;;  %v2586_v10 = vpop.xlane.xlu1 %2585  ;;  %v3224_v39 = vsub.f32 %v6698_v7, %v6244_v38 }
 0x3c1   : > { %4611 = vrsqrt.f32 %v3288_v56  ;;  %v3289_v26 = vadd.f32 1e-05, %v3161_v8  ;;  %v6273_v9 = vmul.f32 0.03125, %v2586_v10  ;;  %v3098_v49 = vmul.f32 %v6264_v41, %v6264_v41 }
 0x3c2   : > { %3616 = vst.msk [vmem:[%s5820_s26 + $0xc0] sm:$0xff] %vm1259_vm4, %v3552_v22  ;;  %v3553_v58 = vadd.f32 %v5805_v48, %v3483_v45  ;;  %v2904_v46 = vpop.xlane.xlu0 %2903  ;;  %v6699_v45 = vld [vmem:[#allocation14_spill] sm:$0xff] }
 0x3c3   : > { %v4608_v53 = vpop.eup %4607  ;;  %4613 = vrsqrt.f32 %v3289_v26  ;;  %v3034_v0 = vmul.f32 0.03125, %v2904_v46  ;;  %v3099_v16 = vmul.f32 %v6273_v9, %v6273_v9  ;;  %v3225_v10 = vsub.f32 %v6699_v45, %v6253_v3 }
 0x3c4   : > { %3617 = vst.msk [vmem:[%s5820_s26 + $0xc8] sm:$0xff] %vm1259_vm4, %v3553_v58  ;;  %v3414_v48 = vmul.f32 %v4608_v53, %v3222_v42  ;;  %v2907_v60 = vpop.xlane.xlu1 %2906 }
 0x3c5   : > { %v4610_v23 = vpop.eup %4609  ;;  %v3162_v37 = vsub.f32 %v3034_v0, %v3098_v49  ;;  %v3035_v20 = vmul.f32 0.03125, %v2907_v60 }
 0x3c6   : > { %v3484_v44 = vmul.f32 %v6284_v1, %v3414_v48  ;;  %v3415_v62 = vmul.f32 %v4610_v23, %v3223_v15  ;;  %v2589_v33 = vpop.xlane.xlu0 %2588 }
 0x3c7   : > { %v3290_v36 = vadd.f32 1e-05, %v3162_v37  ;;  %v3163_v17 = vsub.f32 %v3035_v20, %v3099_v16  ;;  %v6287_v61 = vmul.f32 0.03125, %v2589_v33  ;;  %v6700_v20 = vld [vmem:[#allocation15_spill] sm:$0xff] }
 0x3c8   : > { %v3554_v47 = vadd.f32 %v6290_v18, %v3484_v44  ;;  %v3485_v34 = vmul.f32 %v6284_v1, %v3415_v62  ;;  %v2592_v35 = vpop.xlane.xlu1 %2591  ;;  %v3226_v44 = vsub.f32 %v6700_v20, %v6264_v41 }
 0x3c9   : > { %4615 = vrsqrt.f32 %v3290_v36  ;;  %v3291_v63 = vadd.f32 1e-05, %v3163_v17  ;;  %v6299_v52 = vmul.f32 0.03125, %v2592_v35  ;;  %v3100_v8 = vmul.f32 %v6287_v61, %v6287_v61 }
 0x3ca   : > { %3618 = vst.msk [vmem:[%s5820_s26 + $0xd0] sm:$0xff] %vm1259_vm4, %v3554_v47  ;;  %v3555_v55 = vadd.f32 %v6290_v18, %v3485_v34  ;;  %v2910_v2 = vpop.xlane.xlu0 %2909  ;;  %v6701_v34 = vld [vmem:[#allocation17_spill] sm:$0xff] }
 0x3cb   : > { %v4612_v56 = vpop.eup %4611  ;;  %4617 = vrsqrt.f32 %v3291_v63  ;;  %v3036_v22 = vmul.f32 0.03125, %v2910_v2  ;;  %v3101_v38 = vmul.f32 %v6299_v52, %v6299_v52  ;;  %v3227_v35 = vsub.f32 %v6701_v34, %v6273_v9 }
 0x3cc   : > { %3619 = vst.msk [vmem:[%s5820_s26 + $0xd8] sm:$0xff] %vm1259_vm4, %v3555_v55  ;;  %v3416_v26 = vmul.f32 %v4612_v56, %v3224_v39  ;;  %v2913_v58 = vpop.xlane.xlu1 %2912 }
 0x3cd   : > { %v4614_v50 = vpop.eup %4613  ;;  %v3164_v42 = vsub.f32 %v3036_v22, %v3100_v8  ;;  %v3037_v46 = vmul.f32 0.03125, %v2913_v58 }
 0x3ce   : > { %v3486_v53 = vmul.f32 %v6284_v1, %v3416_v26  ;;  %v3417_v49 = vmul.f32 %v4614_v50, %v3225_v10  ;;  %v2595_v0 = vpop.xlane.xlu0 %2594 }
 0x3cf   : > { %v3292_v6 = vadd.f32 1e-05, %v3164_v42  ;;  %v3165_v15 = vsub.f32 %v3037_v46, %v3101_v38  ;;  %v6310_v48 = vmul.f32 0.03125, %v2595_v0  ;;  %v6702_v46 = vld [vmem:[#allocation20_spill] sm:$0xff] }
 0x3d0   : > { %v3556_v3 = vadd.f32 %v6290_v18, %v3486_v53  ;;  %v3487_v60 = vmul.f32 %v6284_v1, %v3417_v49  ;;  %v2598_v23 = vpop.xlane.xlu1 %2597  ;;  %v3228_v53 = vsub.f32 %v6702_v46, %v6287_v61 }
 0x3d1   : > { %4619 = vrsqrt.f32 %v3292_v6  ;;  %v3293_v16 = vadd.f32 1e-05, %v3165_v15  ;;  %v6319_v62 = vmul.f32 0.03125, %v2598_v23  ;;  %v3102_v17 = vmul.f32 %v6310_v48, %v6310_v48 }
 0x3d2   : > { %3620 = vst.msk [vmem:[%s5820_s26 + $0xe0] sm:$0xff] %vm1259_vm4, %v3556_v3  ;;  %v3557_v37 = vadd.f32 %v6290_v18, %v3487_v60  ;;  %v2916_v33 = vpop.xlane.xlu0 %2915  ;;  %v6703_v60 = vld [vmem:[#allocation21_spill] sm:$0xff] }
 0x3d3   : > { %v4616_v36 = vpop.eup %4615  ;;  %4621 = vrsqrt.f32 %v3293_v16  ;;  %v3038_v47 = vmul.f32 0.03125, %v2916_v33  ;;  %v3103_v41 = vmul.f32 %v6319_v62, %v6319_v62  ;;  %v3229_v23 = vsub.f32 %v6703_v60, %v6299_v52 }
 0x3d4   : > { %3621 = vst.msk [vmem:[%s5820_s26 + $0xe8] sm:$0xff] %vm1259_vm4, %v3557_v37  ;;  %v3418_v63 = vmul.f32 %v4616_v36, %v3226_v44  ;;  %v2919_v55 = vpop.xlane.xlu1 %2918 }
 0x3d5   : > { %v4618_v7 = vpop.eup %4617  ;;  %v3166_v39 = vsub.f32 %v3038_v47, %v3102_v17  ;;  %v3039_v2 = vmul.f32 0.03125, %v2919_v55 }
 0x3d6   : > { %v3488_v56 = vmul.f32 %v6284_v1, %v3418_v63  ;;  %v3419_v8 = vmul.f32 %v4618_v7, %v3227_v35  ;;  %v2601_v22 = vpop.xlane.xlu0 %2600 }
 0x3d7   : > { %v3294_v45 = vadd.f32 1e-05, %v3166_v39  ;;  %v3167_v10 = vsub.f32 %v3039_v2, %v3103_v41  ;;  %v6330_v26 = vmul.f32 0.03125, %v2601_v22  ;;  %v6704_v2 = vld [vmem:[#allocation22_spill] sm:$0xff] }
 0x3d8   : > { %v3558_v9 = vadd.f32 %v6290_v18, %v3488_v56  ;;  %v3489_v58 = vmul.f32 %v6284_v1, %v3419_v8  ;;  %v2604_v50 = vpop.xlane.xlu1 %2603  ;;  %v3230_v56 = vsub.f32 %v6704_v2, %v6310_v48 }
 0x3d9   : > { %4623 = vrsqrt.f32 %v3294_v45  ;;  %v3295_v38 = vadd.f32 1e-05, %v3167_v10  ;;  %v6339_v49 = vmul.f32 0.03125, %v2604_v50  ;;  %v3104_v15 = vmul.f32 %v6330_v26, %v6330_v26 }
 0x3da   : > { %3622 = vst.msk [vmem:[%s5820_s26 + $0xf0] sm:$0xff] %vm1259_vm4, %v3558_v9  ;;  %v3559_v42 = vadd.f32 %v6290_v18, %v3489_v58  ;;  %v2922_v0 = vpop.xlane.xlu0 %2921  ;;  %v6705_v58 = vld [vmem:[#allocation23_spill] sm:$0xff] }
 0x3db   : > { %v4620_v6 = vpop.eup %4619  ;;  %4625 = vrsqrt.f32 %v3295_v38  ;;  %v3040_v3 = vmul.f32 0.03125, %v2922_v0  ;;  %v3105_v61 = vmul.f32 %v6339_v49, %v6339_v49  ;;  %v3231_v50 = vsub.f32 %v6705_v58, %v6319_v62 }
 0x3dc   : > { %3623 = vst.msk [vmem:[%s5820_s26 + $0xf8] sm:$0xff] %vm1259_vm4, %v3559_v42  ;;  %v3420_v16 = vmul.f32 %v4620_v6, %v3228_v53  ;;  %v2925_v37 = vpop.xlane.xlu1 %2924 }
 0x3dd   : > { %v4622_v20 = vpop.eup %4621  ;;  %v3168_v44 = vsub.f32 %v3040_v3, %v3104_v15  ;;  %v3041_v33 = vmul.f32 0.03125, %v2925_v37 }
 0x3de   : > { %v3490_v36 = vmul.f32 %v6284_v1, %v3420_v16  ;;  %v3421_v17 = vmul.f32 %v4622_v20, %v3229_v23  ;;  %v2607_v47 = vpop.xlane.xlu0 %2606 }
 0x3df   : > { %v3296_v34 = vadd.f32 1e-05, %v3168_v44  ;;  %v3169_v35 = vsub.f32 %v3041_v33, %v3105_v61  ;;  %v6350_v63 = vmul.f32 0.03125, %v2607_v47  ;;  %v6706_v33 = vld [vmem:[#allocation24_spill] sm:$0xff] }
 0x3e0   : > { %v3560_v52 = vadd.f32 %v6290_v18, %v3490_v36  ;;  %v3491_v55 = vmul.f32 %v6284_v1, %v3421_v17  ;;  %v2610_v7 = vpop.xlane.xlu1 %2609  ;;  %v3232_v36 = vsub.f32 %v6706_v33, %v6330_v26 }
 0x3e1   : > { %4627 = vrsqrt.f32 %v3296_v34  ;;  %v3297_v41 = vadd.f32 1e-05, %v3169_v35  ;;  %v6359_v8 = vmul.f32 0.03125, %v2610_v7  ;;  %v3106_v10 = vmul.f32 %v6350_v63, %v6350_v63 }
 0x3e2   : > { %3624 = vst.msk [vmem:[%s5820_s26 + $0x100] sm:$0xff] %vm1259_vm4, %v3560_v52  ;;  %v3561_v39 = vadd.f32 %v6290_v18, %v3491_v55  ;;  %v2928_v22 = vpop.xlane.xlu0 %2927  ;;  %v6707_v55 = vld [vmem:[#allocation25_spill] sm:$0xff] }
 0x3e3   : > { %v4624_v45 = vpop.eup %4623  ;;  %4629 = vrsqrt.f32 %v3297_v41  ;;  %v3042_v9 = vmul.f32 0.03125, %v2928_v22  ;;  %v3107_v48 = vmul.f32 %v6359_v8, %v6359_v8  ;;  %v3233_v7 = vsub.f32 %v6707_v55, %v6339_v49 }
 0x3e4   : > { %3625 = vst.msk [vmem:[%s5820_s26 + $0x108] sm:$0xff] %vm1259_vm4, %v3561_v39  ;;  %v3422_v38 = vmul.f32 %v4624_v45, %v3230_v56  ;;  %v2931_v42 = vpop.xlane.xlu1 %2930 }
 0x3e5   : > { %v4626_v46 = vpop.eup %4625  ;;  %v3170_v53 = vsub.f32 %v3042_v9, %v3106_v10  ;;  %v3043_v0 = vmul.f32 0.03125, %v2931_v42 }
 0x3e6   : > { %v3492_v6 = vmul.f32 %v6284_v1, %v3422_v38  ;;  %v3423_v15 = vmul.f32 %v4626_v46, %v3231_v50  ;;  %v2613_v3 = vpop.xlane.xlu0 %2612 }
 0x3e7   : > { %v3298_v60 = vadd.f32 1e-05, %v3170_v53  ;;  %v3171_v23 = vsub.f32 %v3043_v0, %v3107_v48  ;;  %v6370_v16 = vmul.f32 0.03125, %v2613_v3  ;;  %v6708_v0 = vld [vmem:[#allocation26_spill] sm:$0xff] }
 0x3e8   : > { %v3562_v62 = vadd.f32 %v6290_v18, %v3492_v6  ;;  %v3493_v37 = vmul.f32 %v6284_v1, %v3423_v15  ;;  %v2616_v20 = vpop.xlane.xlu1 %2615  ;;  %v3234_v6 = vsub.f32 %v6708_v0, %v6350_v63 }
 0x3e9   : > { %4631 = vrsqrt.f32 %v3298_v60  ;;  %v3299_v61 = vadd.f32 1e-05, %v3171_v23  ;;  %v6379_v17 = vmul.f32 0.03125, %v2616_v20  ;;  %v3108_v35 = vmul.f32 %v6370_v16, %v6370_v16 }
 0x3ea   : > { %3626 = vst.msk [vmem:[%s5820_s26 + $0x110] sm:$0xff] %vm1259_vm4, %v3562_v62  ;;  %v3563_v44 = vadd.f32 %v6290_v18, %v3493_v37  ;;  %v2934_v47 = vpop.xlane.xlu0 %2933  ;;  %v6709_v37 = vld [vmem:[#allocation27_spill] sm:$0xff] }
 0x3eb   : > { %v4628_v34 = vpop.eup %4627  ;;  %4633 = vrsqrt.f32 %v3299_v61  ;;  %v3044_v52 = vmul.f32 0.03125, %v2934_v47  ;;  %v3109_v26 = vmul.f32 %v6379_v17, %v6379_v17  ;;  %v3235_v20 = vsub.f32 %v6709_v37, %v6359_v8 }
 0x3ec   : > { %3627 = vst.msk [vmem:[%s5820_s26 + $0x118] sm:$0xff] %vm1259_vm4, %v3563_v44  ;;  %v3424_v41 = vmul.f32 %v4628_v34, %v3232_v36  ;;  %v2937_v39 = vpop.xlane.xlu1 %2936 }
 0x3ed   : > { %v4630_v2 = vpop.eup %4629  ;;  %v3172_v56 = vsub.f32 %v3044_v52, %v3108_v35  ;;  %v3045_v22 = vmul.f32 0.03125, %v2937_v39 }
 0x3ee   : > { %v3494_v45 = vmul.f32 %v6284_v1, %v3424_v41  ;;  %v3425_v10 = vmul.f32 %v4630_v2, %v3233_v7  ;;  %v2619_v9 = vpop.xlane.xlu0 %2618 }
 0x3ef   : > { %v3300_v58 = vadd.f32 1e-05, %v3172_v56  ;;  %v3173_v50 = vsub.f32 %v3045_v22, %v3109_v26  ;;  %v6390_v38 = vmul.f32 0.03125, %v2619_v9  ;;  %v6710_v22 = vld [vmem:[#allocation28_spill] sm:$0xff] }
 0x3f0   : > { %v3564_v49 = vadd.f32 %v6290_v18, %v3494_v45  ;;  %v3495_v42 = vmul.f32 %v6284_v1, %v3425_v10  ;;  %v2622_v46 = vpop.xlane.xlu1 %2621  ;;  %v3236_v45 = vsub.f32 %v6710_v22, %v6370_v16 }
 0x3f1   : > { %4635 = vrsqrt.f32 %v3300_v58  ;;  %v3301_v48 = vadd.f32 1e-05, %v3173_v50  ;;  %v6399_v15 = vmul.f32 0.03125, %v2622_v46  ;;  %v3110_v23 = vmul.f32 %v6390_v38, %v6390_v38 }
 0x3f2   : > { %3628 = vst.msk [vmem:[%s5820_s26 + $0x120] sm:$0xff] %vm1259_vm4, %v3564_v49  ;;  %v3565_v53 = vadd.f32 %v6290_v18, %v3495_v42  ;;  %v2940_v3 = vpop.xlane.xlu0 %2939  ;;  %v6711_v42 = vld [vmem:[#allocation29_spill] sm:$0xff] }
 0x3f3   : > { %v4632_v60 = vpop.eup %4631  ;;  %4637 = vrsqrt.f32 %v3301_v48  ;;  %v3046_v62 = vmul.f32 0.03125, %v2940_v3  ;;  %v3111_v63 = vmul.f32 %v6399_v15, %v6399_v15  ;;  %v3237_v46 = vsub.f32 %v6711_v42, %v6379_v17 }
 0x3f4   : > { %3629 = vst.msk [vmem:[%s5820_s26 + $0x128] sm:$0xff] %vm1259_vm4, %v3565_v53  ;;  %v3426_v61 = vmul.f32 %v4632_v60, %v3234_v6  ;;  %v2943_v44 = vpop.xlane.xlu1 %2942 }
 0x3f5   : > { %v4634_v33 = vpop.eup %4633  ;;  %v3174_v36 = vsub.f32 %v3046_v62, %v3110_v23  ;;  %v3047_v47 = vmul.f32 0.03125, %v2943_v44 }
 0x3f6   : > { %v3496_v34 = vmul.f32 %v6284_v1, %v3426_v61  ;;  %v3427_v35 = vmul.f32 %v4634_v33, %v3235_v20  ;;  %v2625_v52 = vpop.xlane.xlu0 %2624 }
 0x3f7   : > { %v3302_v55 = vadd.f32 1e-05, %v3174_v36  ;;  %v3175_v7 = vsub.f32 %v3047_v47, %v3111_v63  ;;  %v6410_v41 = vmul.f32 0.03125, %v2625_v52  ;;  %v3238_v47 = vsub.f32 %v5812_v30, %v6390_v38 }
 0x3f8   : > { %v3566_v8 = vadd.f32 %v6290_v18, %v3496_v34  ;;  %v3497_v39 = vmul.f32 %v6284_v1, %v3427_v35  ;;  %v2628_v2 = vpop.xlane.xlu1 %2627 }
 0x3f9   : > { %4639 = vrsqrt.f32 %v3302_v55  ;;  %v3303_v26 = vadd.f32 1e-05, %v3175_v7  ;;  %v6419_v10 = vmul.f32 0.03125, %v2628_v2  ;;  %v3112_v50 = vmul.f32 %v6410_v41, %v6410_v41 }
 0x3fa   : > { %3630 = vst.msk [vmem:[%s5820_s26 + $0x130] sm:$0xff] %vm1259_vm4, %v3566_v8  ;;  %v3567_v56 = vadd.f32 %v6290_v18, %v3497_v39  ;;  %v2946_v9 = vpop.xlane.xlu0 %2945  ;;  %v3239_v8 = vsub.f32 %v5826_v11, %v6399_v15 }
 0x3fb   : > { %v4636_v58 = vpop.eup %4635  ;;  %4641 = vrsqrt.f32 %v3303_v26  ;;  %v3048_v49 = vmul.f32 0.03125, %v2946_v9  ;;  %v3113_v16 = vmul.f32 %v6419_v10, %v6419_v10 }
 0x3fc   : > { %3631 = vst.msk [vmem:[%s5820_s26 + $0x138] sm:$0xff] %vm1259_vm4, %v3567_v56  ;;  %v3428_v48 = vmul.f32 %v4636_v58, %v3236_v45  ;;  %v2949_v53 = vpop.xlane.xlu1 %2948 }
 0x3fd   : > { %v4638_v0 = vpop.eup %4637  ;;  %v3176_v6 = vsub.f32 %v3048_v49, %v3112_v50  ;;  %v3049_v3 = vmul.f32 0.03125, %v2949_v53  ;;  %v3240_v53 = vsub.f32 %v5853_v13, %v6410_v41 }
 0x3fe   : > { %v3498_v60 = vmul.f32 %v6284_v1, %v3428_v48  ;;  %v3429_v23 = vmul.f32 %v4638_v0, %v3237_v46  ;;  %v2631_v62 = vpop.xlane.xlu0 %2630 }
 0x3ff   : > { %v3304_v37 = vadd.f32 1e-05, %v3176_v6  ;;  %v3177_v20 = vsub.f32 %v3049_v3, %v3113_v16  ;;  %v6430_v61 = vmul.f32 0.03125, %v2631_v62 }
 0x400   : > { %v3568_v17 = vadd.f32 %v6290_v18, %v3498_v60  ;;  %v3499_v44 = vmul.f32 %v6284_v1, %v3429_v23  ;;  %v2634_v33 = vpop.xlane.xlu1 %2633  ;;  %v3241_v23 = vsub.f32 %v5863_v54, %v6419_v10 }
 0x401   : > { %4643 = vrsqrt.f32 %v3304_v37  ;;  %v3305_v63 = vadd.f32 1e-05, %v3177_v20  ;;  %v6439_v34 = vmul.f32 0.03125, %v2634_v33  ;;  %v3114_v55 = vmul.f32 %v6430_v61, %v6430_v61 }
 0x402   : > { %3632 = vst.msk [vmem:[%s5820_s26 + $0x140] sm:$0xff] %vm1259_vm4, %v3568_v17  ;;  %v3569_v36 = vadd.f32 %v6290_v18, %v3499_v44  ;;  %v2952_v35 = vpop.xlane.xlu0 %2951 }
 0x403   : > { %v4640_v52 = vpop.eup %4639  ;;  %4645 = vrsqrt.f32 %v3305_v63  ;;  %v3050_v7 = vmul.f32 0.03125, %v2952_v35  ;;  %v3115_v30 = vmul.f32 %v6439_v34, %v6439_v34 }
 0x404   : > { %3633 = vst.msk [vmem:[%s5820_s26 + $0x148] sm:$0xff] %vm1259_vm4, %v3569_v36  ;;  %v3430_v39 = vmul.f32 %v4640_v52, %v3238_v47  ;;  %v2955_v2 = vpop.xlane.xlu1 %2954 }
 0x405   : > { %v4642_v26 = vpop.eup %4641  ;;  %v3178_v38 = vsub.f32 %v3050_v7, %v3114_v55  ;;  %v3051_v56 = vmul.f32 0.03125, %v2955_v2 }
 0x406   : > { %v3500_v22 = vmul.f32 %v6284_v1, %v3430_v39  ;;  %v3431_v45 = vmul.f32 %v4642_v26, %v3239_v8  ;;  %v2637_v9 = vpop.xlane.xlu0 %2636  ;;  %v3242_v8 = vsub.f32 %v5896_v14, %v6430_v61 }
 0x407   : > { %v3306_v58 = vadd.f32 1e-05, %v3178_v38  ;;  %v3179_v50 = vsub.f32 %v3051_v56, %v3115_v30  ;;  %v6450_v49 = vmul.f32 0.03125, %v2637_v9  ;;  %v3243_v56 = vsub.f32 %v5901_v29, %v6439_v34 }
 0x408   : > { %v3570_v11 = vadd.f32 %v6290_v18, %v3500_v22  ;;  %v3501_v15 = vmul.f32 %v6284_v1, %v3431_v45  ;;  %v2640_v42 = vpop.xlane.xlu1 %2639 }
 0x409   : > { %4647 = vrsqrt.f32 %v3306_v58  ;;  %v3307_v46 = vadd.f32 1e-05, %v3179_v50  ;;  %v6459_v0 = vmul.f32 0.03125, %v2640_v42  ;;  %v3116_v3 = vmul.f32 %v6450_v49, %v6450_v49 }
 0x40a   : > { %3634 = vst.msk [vmem:[%s5820_s26 + $0x150] sm:$0xff] %vm1259_vm4, %v3570_v11  ;;  %v3571_v48 = vadd.f32 %v6290_v18, %v3501_v15  ;;  %v2958_v16 = vpop.xlane.xlu0 %2957 }
 0x40b   : > { %v4644_v6 = vpop.eup %4643  ;;  %4649 = vrsqrt.f32 %v3307_v46  ;;  %v3052_v60 = vmul.f32 0.03125, %v2958_v16  ;;  %v3117_v13 = vmul.f32 %v6459_v0, %v6459_v0 }
 0x40c   : > { %3635 = vst.msk [vmem:[%s5820_s26 + $0x158] sm:$0xff] %vm1259_vm4, %v3571_v48  ;;  %v3432_v62 = vmul.f32 %v4644_v6, %v3240_v53  ;;  %v2961_v37 = vpop.xlane.xlu1 %2960 }
 0x40d   : > { %v4646_v20 = vpop.eup %4645  ;;  %v3180_v41 = vsub.f32 %v3052_v60, %v3116_v3  ;;  %v3053_v17 = vmul.f32 0.03125, %v2961_v37  ;;  %v3244_v3 = vsub.f32 %v5934_v21, %v6450_v49 }
 0x40e   : > { %v3502_v44 = vmul.f32 %v6284_v1, %v3432_v62  ;;  %v3433_v33 = vmul.f32 %v4646_v20, %v3241_v23  ;;  %v2643_v63 = vpop.xlane.xlu0 %2642 }
 0x40f   : > { %v3308_v36 = vadd.f32 1e-05, %v3180_v41  ;;  %v3181_v47 = vsub.f32 %v3053_v17, %v3117_v13  ;;  %v6470_v35 = vmul.f32 0.03125, %v2643_v63  ;;  %v3245_v13 = vsub.f32 %v5939_v51, %v6459_v0 }
 0x410   : > { %v3572_v54 = vadd.f32 %v6290_v18, %v3502_v44  ;;  %v3503_v10 = vmul.f32 %v6284_v1, %v3433_v33  ;;  %v2646_v52 = vpop.xlane.xlu1 %2645 }
 0x411   : > { %4651 = vrsqrt.f32 %v3308_v36  ;;  %v3309_v55 = vadd.f32 1e-05, %v3181_v47  ;;  %v6479_v39 = vmul.f32 0.03125, %v2646_v52  ;;  %v3118_v30 = vmul.f32 %v6470_v35, %v6470_v35 }
 0x412   : > { %3636 = vst.msk [vmem:[%s5820_s26 + $0x160] sm:$0xff] %vm1259_vm4, %v3572_v54  ;;  %v3573_v7 = vadd.f32 %v6290_v18, %v3503_v10  ;;  %v2964_v2 = vpop.xlane.xlu0 %2963 }
 0x413   : > { %v4648_v26 = vpop.eup %4647  ;;  %4653 = vrsqrt.f32 %v3309_v55  ;;  %v3054_v38 = vmul.f32 0.03125, %v2964_v2  ;;  %v3119_v14 = vmul.f32 %v6479_v39, %v6479_v39  ;;  %v3246_v2 = vsub.f32 %v5975_v25, %v6470_v35 }
 0x414   : > { %3637 = vst.msk [vmem:[%s5820_s26 + $0x168] sm:$0xff] %vm1259_vm4, %v3573_v7  ;;  %v3434_v22 = vmul.f32 %v4648_v26, %v3242_v8  ;;  %v2967_v45 = vpop.xlane.xlu1 %2966 }
 0x415   : > { %v4650_v9 = vpop.eup %4649  ;;  %v3182_v61 = vsub.f32 %v3054_v38, %v3118_v30  ;;  %v3055_v58 = vmul.f32 0.03125, %v2967_v45  ;;  %v3247_v45 = vsub.f32 %v5980_v43, %v6479_v39 }
 0x416   : > { %v3504_v50 = vmul.f32 %v6284_v1, %v3434_v22  ;;  %v3435_v11 = vmul.f32 %v4650_v9, %v3243_v56  ;;  %v2649_v15 = vpop.xlane.xlu0 %2648 }
 0x417   : > { %v3310_v42 = vadd.f32 1e-05, %v3182_v61  ;;  %v3183_v46 = vsub.f32 %v3055_v58, %v3119_v14  ;;  %v6490_v48 = vmul.f32 0.03125, %v2649_v15 }
 0x418   : > { %v3574_v29 = vadd.f32 %v6290_v18, %v3504_v50  ;;  %v3505_v34 = vmul.f32 %v6284_v1, %v3435_v11  ;;  %v2652_v53 = vpop.xlane.xlu1 %2651 }
 0x419   : > { %4655 = vrsqrt.f32 %v3310_v42  ;;  %v3311_v16 = vadd.f32 1e-05, %v3183_v46  ;;  %v6499_v60 = vmul.f32 0.03125, %v2652_v53  ;;  %v3120_v37 = vmul.f32 %v6490_v48, %v6490_v48 }
 0x41a   : > { %3638 = vst.msk [vmem:[%s5820_s26 + $0x170] sm:$0xff] %vm1259_vm4, %v3574_v29  ;;  %v3575_v6 = vadd.f32 %v6290_v18, %v3505_v34  ;;  %v2970_v23 = vpop.xlane.xlu0 %2969 }
 0x41b   : > { %v4652_v62 = vpop.eup %4651  ;;  %4657 = vrsqrt.f32 %v3311_v16  ;;  %v3056_v20 = vmul.f32 0.03125, %v2970_v23  ;;  %v3121_v21 = vmul.f32 %v6499_v60, %v6499_v60 }
 0x41c   : > { %3639 = vst.msk [vmem:[%s5820_s26 + $0x178] sm:$0xff] %vm1259_vm4, %v3575_v6  ;;  %v3436_v41 = vmul.f32 %v4652_v62, %v3244_v3  ;;  %v2973_v17 = vpop.xlane.xlu1 %2972  ;;  %v3248_v6 = vsub.f32 %v6013_v32, %v6490_v48 }
 0x41d   : > { %v4654_v44 = vpop.eup %4653  ;;  %v3184_v49 = vsub.f32 %v3056_v20, %v3120_v37  ;;  %v3057_v33 = vmul.f32 0.03125, %v2973_v17 }
 0x41e   : > { %v3506_v63 = vmul.f32 %v6284_v1, %v3436_v41  ;;  %v3437_v36 = vmul.f32 %v4654_v44, %v3245_v13  ;;  %v2655_v47 = vpop.xlane.xlu0 %2654  ;;  %v3249_v13 = vsub.f32 %v6018_v27, %v6499_v60 }
 0x41f   : > { %v3312_v54 = vadd.f32 1e-05, %v3184_v49  ;;  %v3185_v10 = vsub.f32 %v3057_v33, %v3121_v21  ;;  %v6510_v52 = vmul.f32 0.03125, %v2655_v47 }
 0x420   : > { %v3576_v51 = vadd.f32 %v6290_v18, %v3506_v63  ;;  %v3507_v0 = vmul.f32 %v6284_v1, %v3437_v36  ;;  %v2658_v55 = vpop.xlane.xlu1 %2657 }
 0x421   : > { %4659 = vrsqrt.f32 %v3312_v54  ;;  %v3313_v7 = vadd.f32 1e-05, %v3185_v10  ;;  %v6519_v26 = vmul.f32 0.03125, %v2658_v55  ;;  %v3122_v56 = vmul.f32 %v6510_v52, %v6510_v52 }
 0x422   : > { %3640 = vst.msk [vmem:[%s5820_s26 + $0x180] sm:$0xff] %vm1259_vm4, %v3576_v51  ;;  %v3577_v8 = vadd.f32 %v6290_v18, %v3507_v0  ;;  %v2976_v30 = vpop.xlane.xlu0 %2975  ;;  %v3250_v55 = vsub.f32 %v6049_v40, %v6510_v52 }
 0x423   : > { %v4656_v38 = vpop.eup %4655  ;;  %4661 = vrsqrt.f32 %v3313_v7  ;;  %v3058_v22 = vmul.f32 0.03125, %v2976_v30  ;;  %v3123_v25 = vmul.f32 %v6519_v26, %v6519_v26 }
 0x424   : > { %3641 = vst.msk [vmem:[%s5820_s26 + $0x188] sm:$0xff] %vm1259_vm4, %v3577_v8  ;;  %v3438_v9 = vmul.f32 %v4656_v38, %v3246_v2  ;;  %v2979_v14 = vpop.xlane.xlu1 %2978 }
 0x425   : > { %v4658_v61 = vpop.eup %4657  ;;  %v3186_v35 = vsub.f32 %v3058_v22, %v3122_v56  ;;  %v3059_v58 = vmul.f32 0.03125, %v2979_v14  ;;  %v3251_v56 = vsub.f32 %v6056_v28, %v6519_v26 }
 0x426   : > { %v3508_v50 = vmul.f32 %v6284_v1, %v3438_v9  ;;  %v3439_v11 = vmul.f32 %v4658_v61, %v3247_v45  ;;  %v2661_v15 = vpop.xlane.xlu0 %2660 }
 0x427   : > { %v3314_v42 = vadd.f32 1e-05, %v3186_v35  ;;  %v3187_v46 = vsub.f32 %v3059_v58, %v3123_v25  ;;  %v6530_v29 = vmul.f32 0.03125, %v2661_v15 }
 0x428   : > { %v3578_v43 = vadd.f32 %v6290_v18, %v3508_v50  ;;  %v3509_v39 = vmul.f32 %v6284_v1, %v3439_v11  ;;  %v2664_v34 = vpop.xlane.xlu1 %2663 }
 0x429   : > { %4663 = vrsqrt.f32 %v3314_v42  ;;  %v3315_v53 = vadd.f32 1e-05, %v3187_v46  ;;  %v6539_v3 = vmul.f32 0.03125, %v2664_v34  ;;  %v3124_v37 = vmul.f32 %v6530_v29, %v6530_v29 }
 0x42a   : > { %3642 = vst.msk [vmem:[%s5820_s26 + $0x190] sm:$0xff] %vm1259_vm4, %v3578_v43  ;;  %v3579_v16 = vadd.f32 %v6290_v18, %v3509_v39  ;;  %v2982_v23 = vpop.xlane.xlu0 %2981  ;;  %v3252_v43 = vsub.f32 %v6085_v24, %v6530_v29 }
 0x42b   : > { %v4660_v62 = vpop.eup %4659  ;;  %4665 = vrsqrt.f32 %v3315_v53  ;;  %v3060_v20 = vmul.f32 0.03125, %v2982_v23  ;;  %v3125_v32 = vmul.f32 %v6539_v3, %v6539_v3  ;;  %v3253_v23 = vsub.f32 %v6094_v4, %v6539_v3 }
 0x42c   : > { %3643 = vst.msk [vmem:[%s5820_s26 + $0x198] sm:$0xff] %vm1259_vm4, %v3579_v16  ;;  %v3440_v41 = vmul.f32 %v4660_v62, %v3248_v6  ;;  %v2985_v17 = vpop.xlane.xlu1 %2984 }
 0x42d   : > { %v4662_v44 = vpop.eup %4661  ;;  %v3188_v48 = vsub.f32 %v3060_v20, %v3124_v37  ;;  %v3061_v21 = vmul.f32 0.03125, %v2985_v17 }
 0x42e   : > { %v3510_v49 = vmul.f32 %v6284_v1, %v3440_v41  ;;  %v3441_v33 = vmul.f32 %v4662_v44, %v3249_v13  ;;  %v2667_v63 = vpop.xlane.xlu0 %2666 }
 0x42f   : > { %v3316_v36 = vadd.f32 1e-05, %v3188_v48  ;;  %v3189_v47 = vsub.f32 %v3061_v21, %v3125_v32  ;;  %v6550_v54 = vmul.f32 0.03125, %v2667_v63 }
 0x430   : > { %v3580_v27 = vadd.f32 %v6290_v18, %v3510_v49  ;;  %v3511_v60 = vmul.f32 %v6284_v1, %v3441_v33  ;;  %v2670_v10 = vpop.xlane.xlu1 %2669 }
 0x431   : > { %4667 = vrsqrt.f32 %v3316_v36  ;;  %v3317_v51 = vadd.f32 1e-05, %v3189_v47  ;;  %v6559_v7 = vmul.f32 0.03125, %v2670_v10  ;;  %v3126_v30 = vmul.f32 %v6550_v54, %v6550_v54 }
 0x432   : > { %3644 = vst.msk [vmem:[%s5820_s26 + $0x1a0] sm:$0xff] %vm1259_vm4, %v3580_v27  ;;  %v3581_v0 = vadd.f32 %v6290_v18, %v3511_v60  ;;  %v2988_v8 = vpop.xlane.xlu0 %2987  ;;  %v3254_v36 = vsub.f32 %v6123_v12, %v6550_v54 }
 0x433   : > { %v4664_v2 = vpop.eup %4663  ;;  %4669 = vrsqrt.f32 %v3317_v51  ;;  %v3062_v38 = vmul.f32 0.03125, %v2988_v8  ;;  %v3127_v40 = vmul.f32 %v6559_v7, %v6559_v7 }
 0x434   : > { %3645 = vst.msk [vmem:[%s5820_s26 + $0x1a8] sm:$0xff] %vm1259_vm4, %v3581_v0  ;;  %v3442_v22 = vmul.f32 %v4664_v2, %v3250_v55  ;;  %v2991_v45 = vpop.xlane.xlu1 %2990  ;;  %v3255_v0 = vsub.f32 %v6132_v19, %v6559_v7 }
 0x435   : > { %v4666_v9 = vpop.eup %4665  ;;  %v3190_v52 = vsub.f32 %v3062_v38, %v3126_v30  ;;  %v3063_v14 = vmul.f32 0.03125, %v2991_v45 }
 0x436   : > { %v3512_v61 = vmul.f32 %v6284_v1, %v3442_v22  ;;  %v3443_v25 = vmul.f32 %v4666_v9, %v3251_v56  ;;  %v2673_v35 = vpop.xlane.xlu0 %2672 }
 0x437   : > { %v3318_v58 = vadd.f32 1e-05, %v3190_v52  ;;  %v3191_v50 = vsub.f32 %v3063_v14, %v3127_v40  ;;  %v6570_v11 = vmul.f32 0.03125, %v2673_v35 }
 0x438   : > { %v3582_v28 = vadd.f32 %v6290_v18, %v3512_v61  ;;  %v3513_v26 = vmul.f32 %v6284_v1, %v3443_v25  ;;  %v2676_v15 = vpop.xlane.xlu1 %2675 }
 0x439   : > { %4671 = vrsqrt.f32 %v3318_v58  ;;  %v3319_v42 = vadd.f32 1e-05, %v3191_v50  ;;  %v2745_v39 = vmul.f32 0.03125, %v2676_v15  ;;  %v3128_v16 = vmul.f32 %v6570_v11, %v6570_v11 }
 0x43a   : > { %3646 = vst.msk [vmem:[%s5820_s26 + $0x1b0] sm:$0xff] %vm1259_vm4, %v3582_v28  ;;  %v3583_v46 = vadd.f32 %v6290_v18, %v3513_v26  ;;  %v2994_v34 = vpop.xlane.xlu0 %2993  ;;  %v3256_v7 = vsub.f32 %v6161_v59, %v6570_v11 }
 0x43b   : > { %v4668_v53 = vpop.eup %4667  ;;  %4673 = vrsqrt.f32 %v3319_v42  ;;  %v3064_v6 = vmul.f32 0.03125, %v2994_v34  ;;  %v3129_v13 = vmul.f32 %v2745_v39, %v2745_v39  ;;  %v3257_v61 = vsub.f32 %v6170_v5, %v2745_v39 }
 0x43c   : > { %3647 = vst.msk [vmem:[%s5820_s26 + $0x1b8] sm:$0xff] %vm1259_vm4, %v3583_v46  ;;  %v3444_v62 = vmul.f32 %v4668_v53, %v3252_v43  ;;  %v2997_v37 = vpop.xlane.xlu1 %2996 }
 0x43d   : > { %v4670_v20 = vpop.eup %4669  ;;  %v3192_v41 = vsub.f32 %v3064_v6, %v3128_v16  ;;  %v3065_v24 = vmul.f32 0.03125, %v2997_v37 }
 0x43e   : > { %v3514_v29 = vmul.f32 %v6284_v1, %v3444_v62  ;;  %v3445_v17 = vmul.f32 %v4670_v20, %v3253_v23  ;;  %v2679_v44 = vpop.xlane.xlu0 %2678 }
 0x43f   : > { %v3320_v32 = vadd.f32 1e-05, %v3192_v41  ;;  %v3193_v48 = vsub.f32 %v3065_v24, %v3129_v13  ;;  %v2746_v21 = vmul.f32 0.03125, %v2679_v44 }
 0x440   : > { %v3584_v49 = vadd.f32 %v6290_v18, %v3514_v29  ;;  %v3515_v33 = vmul.f32 %v6284_v1, %v3445_v17  ;;  %v2682_v4 = vpop.xlane.xlu1 %2681 }
 0x441   : > { %4675 = vrsqrt.f32 %v3320_v32  ;;  %v3321_v3 = vadd.f32 1e-05, %v3193_v48  ;;  %v2747_v47 = vmul.f32 0.03125, %v2682_v4  ;;  %v3130_v10 = vmul.f32 %v2746_v21, %v2746_v21 }
 0x442   : > { %3648 = vst.msk [vmem:[%s5820_s26 + $0x1c0] sm:$0xff] %vm1259_vm4, %v3584_v49  ;;  %v3585_v63 = vadd.f32 %v6290_v18, %v3515_v33  ;;  %v3000_v27 = vpop.xlane.xlu0 %2999  ;;  %v3258_v11 = vsub.f32 %v6199_v57, %v2746_v21 }
 0x443   : > { %v4672_v60 = vpop.eup %4671  ;;  %4677 = vrsqrt.f32 %v3321_v3  ;;  %v3066_v51 = vmul.f32 0.03125, %v3000_v27  ;;  %v3131_v30 = vmul.f32 %v2747_v47, %v2747_v47  ;;  %v3259_v5 = vsub.f32 %v6208_v31, %v2747_v47 }
 0x444   : > { %3649 = vst.msk [vmem:[%s5820_s26 + $0x1c8] sm:$0xff] %vm1259_vm4, %v3585_v63  ;;  %v3446_v55 = vmul.f32 %v4672_v60, %v3254_v36  ;;  %v3003_v8 = vpop.xlane.xlu1 %3002 }
 0x445   : > { %v4674_v2 = vpop.eup %4673  ;;  %v3194_v38 = vsub.f32 %v3066_v51, %v3130_v10  ;;  %v3067_v56 = vmul.f32 0.03125, %v3003_v8 }
 0x446   : > { %v3516_v12 = vmul.f32 %v6284_v1, %v3446_v55  ;;  %v3447_v54 = vmul.f32 %v4674_v2, %v3255_v0 }
 0x447   : > { %v3322_v22 = vadd.f32 1e-05, %v3194_v38  ;;  %v3195_v45 = vsub.f32 %v3067_v56, %v3131_v30 }
 0x448   : > { %v3586_v9 = vadd.f32 %v6290_v18, %v3516_v12  ;;  %v3517_v40 = vmul.f32 %v6284_v1, %v3447_v54 }
 0x449   : > { %4679 = vrsqrt.f32 %v3322_v22  ;;  %v3323_v52 = vadd.f32 1e-05, %v3195_v45 }
 0x44a   : > { %3650 = vst.msk [vmem:[%s5820_s26 + $0x1d0] sm:$0xff] %vm1259_vm4, %v3586_v9  ;;  %v3587_v19 = vadd.f32 %v6290_v18, %v3517_v40 }
 0x44b   : > { %v4676_v14 = vpop.eup %4675  ;;  %4681 = vrsqrt.f32 %v3323_v52 }
 0x44c   : > { %3651 = vst.msk [vmem:[%s5820_s26 + $0x1d8] sm:$0xff] %vm1259_vm4, %v3587_v19  ;;  %v3448_v25 = vmul.f32 %v4676_v14, %v3256_v7 }
 0x44d   : > { %v4678_v35 = vpop.eup %4677 }
 0x44e   : > { %v3518_v58 = vmul.f32 %v6284_v1, %v3448_v25  ;;  %v3449_v50 = vmul.f32 %v4678_v35, %v3257_v61 }
 0x450   : > { %v3588_v28 = vadd.f32 %v6290_v18, %v3518_v58  ;;  %v3519_v26 = vmul.f32 %v6284_v1, %v3449_v50 }
 0x452   : > { %3652 = vst.msk [vmem:[%s5820_s26 + $0x1e0] sm:$0xff] %vm1259_vm4, %v3588_v28  ;;  %v3589_v59 = vadd.f32 %v6290_v18, %v3519_v26 }
 0x453   : > { %v4680_v15 = vpop.eup %4679 }
 0x454   : > { %3653 = vst.msk [vmem:[%s5820_s26 + $0x1e8] sm:$0xff] %vm1259_vm4, %v3589_v59  ;;  %v3450_v42 = vmul.f32 %v4680_v15, %v3258_v11 }
 0x455   : > { %v4682_v46 = vpop.eup %4681 }
 0x456   : > { %v3520_v43 = vmul.f32 %v6284_v1, %v3450_v42  ;;  %v3451_v39 = vmul.f32 %v4682_v46, %v3259_v5 }
 0x458   : > { %v3590_v34 = vadd.f32 %v6290_v18, %v3520_v43  ;;  %v3521_v53 = vmul.f32 %v6284_v1, %v3451_v39 }
 0x45a   : > { %3654 = vst.msk [vmem:[%s5820_s26 + $0x1f0] sm:$0xff] %vm1259_vm4, %v3590_v34  ;;  %v3591_v16 = vadd.f32 %v6290_v18, %v3521_v53 }
 0x45c   : > { %3655 = vst.msk [vmem:[%s5820_s26 + $0x1f8] sm:$0xff] %vm1259_vm4, %v3591_v16 }
 0x45d PF: > { %s26_s18 = sadd.s32 1, %s4706_s18  }
 0x45e   : > { %p23_p3 = scmp.ge.s32.totalorder %s26_s18, 4  }
 0x460   :  { %25 = sbr.rel (!%p23_p3) target bundleno = 16 (0x10), region = 110 }

</bundles_post_ra>
